<compile_context>
chip_gen: v5e
topology: v5e:2x2
jax: 0.10.0
libtpu: 0.0.40
codegen_flags: <defaults>
</compile_context>

<pallas_src>
import math

import jax
import jax.numpy as jnp
from jax.experimental import pallas as pl
from jax.experimental.pallas import tpu as pltpu


def _build_fused_cnn_kernel(L, G, Bp, P, Cr, Cpad, K0, Kr, Kp):
    """One grid step = G samples.  Layer 0 is a single [G*Bp, K0] @ [K0, Cpad] matmul;
    each stride-1 layer builds its im2col LHS in VMEM at real K (9*Cr, padded to Kp)
    and issues ONE [G*Bp, Kp] @ [Kp, Cpad] MXU matmul."""
    taps = [(i, j) for i in range(3) for j in range(3)]
    GB = G * Bp

    def kernel(p0_ref, w0_ref, wr_ref, b_ref, out_ref, buf0, buf1, lhs_ref):
        # ----- layer 0 (strided conv): one big MXU matmul over all G samples -----
        lhs0 = p0_ref[...].reshape(GB, K0)                        # bf16, tile-aligned collapse
        acc = jnp.dot(lhs0, w0_ref[...], preferred_element_type=jnp.float32)
        act = jnp.maximum(acc + b_ref[0, :, :], 0.0)              # [GB, Cpad] f32
        if L == 1:
            out_ref[...] = act.reshape(G, Bp, Cpad)
            return

        buf0[:, pl.ds(0, Bp), :] = act[:, 0:Cr].reshape(G, Bp, Cr)

        # Lanes Kr..Kp of the im2col scratch are never touched by the tap loop and their
        # weight rows are zero; zero them once per grid step so stale VMEM (possibly NaN)
        # cannot reach the matmul (NaN * 0 = NaN).
        if Kp > Kr:
            lhs_ref[:, :, pl.ds(Kr, Kp - Kr)] = jnp.zeros((G, Bp, Kp - Kr), jnp.bfloat16)

        # Halo rows (Bp..R) of buf0/buf1 are never written and may hold stale VMEM.  They
        # are only read for wrap-around/garbage output rows, which the wrapper crops;
        # matmul rows are independent, so garbage there can never reach a valid output.

        bufs = (buf0, buf1)
        for l in range(1, L):
            src = bufs[(l - 1) % 2]
            # In-VMEM im2col at real K: nine shifted row-slices of the wide activation
            # buffer (row pitch P), cast to bf16 (32 lanes each) and packed
            # tap-major / channel-minor into the LHS scratch.
            for t, (i, j) in enumerate(taps):
                off = i * P + j                                   # static tap offset
                lhs_ref[:, :, pl.ds(t * Cr, Cr)] = (
                    src[:, pl.ds(off, Bp), :].astype(jnp.bfloat16))
            acc = jnp.dot(lhs_ref[...].reshape(GB, Kp), wr_ref[l - 1],
                          preferred_element_type=jnp.float32)     # in-MXU accumulation
            act = jnp.maximum(acc + b_ref[l, :, :], 0.0)          # f32 epilogue
            if l == L - 1:
                out_ref[...] = act.reshape(G, Bp, Cpad)
            else:
                bufs[l % 2][:, pl.ds(0, Bp), :] = act[:, 0:Cr].reshape(G, Bp, Cr)

    return kernel


def cnn_forward_pallas(x_nchw, params, group=16):
    """Fused forward of the conv stack.  x_nchw: [N, Cin, H, W] float32.
    params: list of (w [Cout,Cin,3,3], b [Cout], stride); stride!=1 only on layer 0.
    NOTE: inputs and weights are quantized to bf16 for the MXU (f32 accumulation)."""
    N, Cin, H, W = x_nchw.shape
    L = len(params)
    Cout = params[0][0].shape[0]
    assert Cout <= 128, "kernel assumes out_channels fits a single 128-lane tile"
    Cpad, Cr = 128, Cout

    s0 = params[0][2]
    OH0 = (H - 3) // s0 + 1
    OW0 = (W - 3) // s0 + 1
    P, B = OW0, OH0 * OW0
    HL = OH0 - 2 * (L - 1)
    WL = OW0 - 2 * (L - 1)
    assert HL >= 1 and WL >= 1, (
        f"input {H}x{W} too small for depth {L - 1}: final map would be {HL}x{WL}")

    K0 = 9 * Cin                                  # real contraction of layer 0
    Kr = 9 * Cout                                 # real contraction of stride-1 layers
    Kp = -(-Kr // 128) * 128                      # rounded up to full MXU K chunks

    # Rows per sample padded to a multiple of 16 so bf16 [G,Bp,*] -> [G*Bp,*] reshapes
    # are tile-aligned (free) and activation stores are unmasked full sublane groups.
    Bp = -(-B // 16) * 16
    R = -(-(Bp + 2 * P + 2) // 8) * 8             # rows + 3x3 halo reachable by taps

    # Samples per grid step: amortizes fixed per-step cost and fills the MXU M dim.
    # (On v7x, pick N so ceil(N/G) is even for perfect megacore balance.)
    G = max(1, min(group, N))
    nsteps = -(-N // G)
    Ngrid = nsteps * G

    # --- layer-0 im2col (stride s0), tap-major / channel-minor (matches weights) ---
    x = jnp.transpose(x_nchw, (0, 2, 3, 1))       # NHWC
    taps0 = [x[:, i:i + s0 * OH0:s0, j:j + s0 * OW0:s0, :]
             for i in range(3) for j in range(3)]
    p0 = jnp.stack(taps0, axis=-2).reshape(N, B, K0)
    p0 = jnp.pad(p0, ((0, Ngrid - N), (0, Bp - B), (0, 0))).astype(jnp.bfloat16)

    # --- weights / biases, zero-padded, bf16 for the MXU ----------------------------
    w0 = params[0][0]
    w0_mat = jnp.transpose(w0, (2, 3, 1, 0)).reshape(K0, Cout)
    w0_mat = jnp.pad(w0_mat, ((0, 0), (0, Cpad - Cout))).astype(jnp.bfloat16)

    Lr = max(L - 1, 1)
    if L > 1:
        wr = []
        for (w, _, stride) in params[1:]:
            assert stride == 1, "only layer 0 may be strided (module default)"
            wt = jnp.transpose(w, (2, 3, 1, 0)).reshape(Kr, Cout)   # [(tap,cin), cout]
            wt = jnp.pad(wt, ((0, Kp - Kr), (0, Cpad - Cout)))      # zero phantom rows
            wr.append(wt)
        wr = jnp.stack(wr).astype(jnp.bfloat16)   # [L-1, Kp, Cpad]
    else:
        wr = jnp.zeros((Lr, Kp, Cpad), jnp.bfloat16)                # unused dummy

    b_all = jnp.stack([jnp.pad(b, (0, Cpad - Cout)) for (_, b, _) in params])
    b_all = b_all.reshape(L, 1, Cpad).astype(jnp.float32)

    kernel = _build_fused_cnn_kernel(L, G, Bp, P, Cr, Cpad, K0, Kr, Kp)

    flops = int(Ngrid * (2 * Bp * K0 * Cpad + (L - 1) * 2 * Bp * Kp * Cpad))
    bytes_accessed = int(p0.size * 2 + w0_mat.size * 2 + wr.size * 2
                         + b_all.size * 4 + Ngrid * Bp * Cpad * 4)

    out_wide = pl.pallas_call(
        kernel,
        out_shape=jax.ShapeDtypeStruct((Ngrid, Bp, Cpad), jnp.float32),
        grid=(nsteps,),
        in_specs=[
            pl.BlockSpec((G, Bp, K0), lambda n: (n, 0, 0)),          # layer-0 patches
            pl.BlockSpec((K0, Cpad), lambda n: (0, 0)),              # layer-0 weights
            pl.BlockSpec((Lr, Kp, Cpad), lambda n: (0, 0, 0)),       # layer 1+ weights
            pl.BlockSpec((L, 1, Cpad), lambda n: (0, 0, 0)),         # biases
        ],
        out_specs=pl.BlockSpec((G, Bp, Cpad), lambda n: (n, 0, 0)),
        scratch_shapes=[pltpu.VMEM((G, R, Cr), jnp.float32),         # ping
                        pltpu.VMEM((G, R, Cr), jnp.float32),         # pong
                        pltpu.VMEM((G, Bp, Kp), jnp.bfloat16)],      # real-K im2col LHS
        compiler_params=pltpu.CompilerParams(dimension_semantics=("parallel",)),
        cost_estimate=pl.CostEstimate(flops=flops, transcendentals=0,
                                      bytes_accessed=bytes_accessed),
    )(p0, w0_mat, wr, b_all)

    # Crop the valid spatial region / real channels from the wide lane-dense output.
    out = out_wide[:N, :B, :Cout].reshape(N, OH0, OW0, Cout)[:, :HL, :WL, :]
    return jnp.transpose(out, (0, 3, 1, 2))       # back to NCHW


class CNNPallas:
    """Default-config CNN: depth+1 conv(3x3)+ReLU blocks, trunk/projection = Identity."""

    # TODO(synk): batch_norm=True and output_dim!=None branches of __init__ are not
    # exercised by the default config and are not implemented here.

    def __init__(self, input_shape, out_channels=32, depth=3, key=None):
        self.input_shape = tuple(input_shape)
        in_channels = input_shape[0]
        self.out_channels = out_channels
        key = jax.random.PRNGKey(0) if key is None else key
        # Deterministic, PyTorch-Conv2d-style uniform init (Utils.weight_init is
        # external; replaced with a deterministic synthetic init).
        self.params = []
        for i in range(depth + 1):
            cin = in_channels if i == 0 else out_channels
            key, wk, bk = jax.random.split(key, 3)
            fan_in = cin * 3 * 3
            bound = 1.0 / math.sqrt(fan_in)
            w = jax.random.uniform(wk, (out_channels, cin, 3, 3), jnp.float32, -bound, bound)
            bb = jax.random.uniform(bk, (out_channels,), jnp.float32, -bound, bound)
            stride = 2 if i == 0 else 1
            self.params.append((w, bb, stride))

    def __call__(self, *xs):
        chw = self.input_shape
        spatial = math.prod(chw[1:])
        # Reproduce the torch.cat([...], dim=-3) input-massaging logic.
        parts = []
        for c in xs:
            if c.size == 0:
                continue
            if c.ndim > 3:
                parts.append(c.reshape(*c.shape[:-3], -1, *chw[1:]))
            elif c.shape[-1] % spatial == 0:
                parts.append(c.reshape(*c.shape[:-1], -1, *chw[1:]))
            else:
                parts.append(jnp.broadcast_to(c.reshape(*c.shape, 1, 1),
                                              (*c.shape, *chw[1:])))
        x = jnp.concatenate(parts, axis=-3)

        lead_shape = x.shape[:-3]
        x = x.reshape(-1, *x.shape[-3:])            # [N, C, H, W]  (NCHW)
        # trunk = Identity
        y = cnn_forward_pallas(x, self.params)      # fused conv stack (one pallas_call)
        # projection = Identity (output_dim=None)
        out = y.reshape(*lead_shape, *y.shape[1:])
        return out


def _reference(x_nchw, params):
    """Pure-JAX f32 reference of the same forward (correctness sanity check)."""
    x = x_nchw
    for (w, b, stride) in params:
        x = jax.lax.conv_general_dilated(
            x, w, window_strides=(stride, stride), padding='VALID',
            dimension_numbers=('NCHW', 'OIHW', 'NCHW'))
        x = jnp.maximum(x + b[None, :, None, None], 0.0)
    return x


if __name__ == "__main__":
    key = jax.random.PRNGKey(0)
    # input_shape = (4, 16, 16), batch = 2  ->  x: [2, 4, 16, 16] (NCHW)
    x = jax.random.normal(key, (2, 4, 16, 16), jnp.float32)

    model = CNNPallas((4, 16, 16), out_channels=32, depth=3)
    out = model(x)
    out = jax.block_until_ready(out)

    ref = _reference(x.reshape(-1, 4, 16, 16), model.params).reshape(out.shape)
    assert out.shape == ref.shape, (out.shape, ref.shape)
    # bf16 MXU operands (inputs + weights) with f32 accumulation: small tolerance
    # vs the pure-f32 reference.
    assert jnp.allclose(out, ref, atol=2e-2, rtol=2e-2), \
        float(jnp.max(jnp.abs(out - ref)))

    print("KERNEL_OK")
</pallas_src>

<mosaic_0001>
module attributes {stable_mosaic.version = 11 : i64} {
  func.func @kernel(%arg0: i32, %arg1: memref<2x64x36xbf16, #tpu.memory_space<vmem>>, %arg2: memref<36x128xbf16, #tpu.memory_space<vmem>>, %arg3: memref<3x384x128xbf16, #tpu.memory_space<vmem>>, %arg4: memref<4x1x128xf32, #tpu.memory_space<vmem>>, %arg5: memref<2x64x128xf32, #tpu.memory_space<vmem>>, %arg6: memref<2x80x32xf32, #tpu.memory_space<vmem>>, %arg7: memref<2x80x32xf32, #tpu.memory_space<vmem>>, %arg8: memref<2x64x384xbf16, #tpu.memory_space<vmem>>) attributes {dimension_semantics = [#tpu.dimension_semantics<parallel>], iteration_bounds = array<i64: 1>, scalar_prefetch = 0 : i64, scratch_operands = 3 : i64, tpu.core_type = #tpu.core_type<tc>, window_params = [{transform_indices = @transform_0, window_bounds = array<i64: 2, 64, 36>}, {pipeline_mode = #tpu.pipeline_mode<synchronous>, transform_indices = @transform_1, window_bounds = array<i64: 36, 128>}, {pipeline_mode = #tpu.pipeline_mode<synchronous>, transform_indices = @transform_2, window_bounds = array<i64: 3, 384, 128>}, {pipeline_mode = #tpu.pipeline_mode<synchronous>, transform_indices = @transform_3, window_bounds = array<i64: 4, 1, 128>}, {transform_indices = @transform_4, window_bounds = array<i64: 2, 64, 128>}]} {
    %c0 = arith.constant 0 : index
    %c0_0 = arith.constant 0 : index
    %c0_1 = arith.constant 0 : index
    %0 = vector.load %arg1[%c0, %c0_0, %c0_1] : memref<2x64x36xbf16, #tpu.memory_space<vmem>>, vector<2x64x36xbf16>
    %1 = vector.shape_cast %0 : vector<2x64x36xbf16> to vector<128x36xbf16>
    %c0_2 = arith.constant 0 : index
    %c0_3 = arith.constant 0 : index
    %2 = vector.load %arg2[%c0_2, %c0_3] : memref<36x128xbf16, #tpu.memory_space<vmem>>, vector<36x128xbf16>
    %cst = arith.constant dense<0.000000e+00> : vector<128x128xf32>
    %3 = tpu.matmul %1, %2, %cst {dimension_numbers = #tpu.dot_dimension_numbers<[1], [0], [0], [1], [0, 0, 1, 1], [], []>} : vector<128x36xbf16>, vector<36x128xbf16>, vector<128x128xf32> -> vector<128x128xf32>
    %c0_4 = arith.constant 0 : index
    %c0_5 = arith.constant 0 : index
    %c0_6 = arith.constant 0 : index
    %4 = vector.load %arg4[%c0_4, %c0_5, %c0_6] : memref<4x1x128xf32, #tpu.memory_space<vmem>>, vector<1x1x128xf32>
    %5 = vector.shape_cast %4 : vector<1x1x128xf32> to vector<1x128xf32>
    %6 = vector.broadcast %5 : vector<1x128xf32> to vector<128x128xf32>
    %7 = arith.addf %3, %6 : vector<128x128xf32>
    %cst_7 = arith.constant 0.000000e+00 : f32
    %8 = vector.broadcast %cst_7 : f32 to vector<128x128xf32>
    %9 = arith.maximumf %7, %8 : vector<128x128xf32>
    %10 = vector.extract_strided_slice %9 {offsets = [0, 0], sizes = [128, 32], strides = [1, 1]} : vector<128x128xf32> to vector<128x32xf32>
    %11 = vector.shape_cast %10 : vector<128x32xf32> to vector<2x64x32xf32>
    %c0_8 = arith.constant 0 : index
    %c0_9 = arith.constant 0 : index
    %c0_10 = arith.constant 0 : index
    %12 = vector.load %arg6[%c0_8, %c0_9, %c0_10] : memref<2x80x32xf32, #tpu.memory_space<vmem>>, vector<2x64x32xf32>
    tpu.vector_store %arg6[%c0_8, %c0_9, %c0_10], %11 {strides = array<i32>} : memref<2x80x32xf32, #tpu.memory_space<vmem>>, vector<2x64x32xf32>,
    %cst_11 = arith.constant 0.000000e+00 : bf16
    %13 = vector.broadcast %cst_11 : bf16 to vector<2x64x96xbf16>
    %c0_12 = arith.constant 0 : index
    %c0_13 = arith.constant 0 : index
    %c288 = arith.constant 288 : index
    %14 = vector.load %arg8[%c0_12, %c0_13, %c288] : memref<2x64x384xbf16, #tpu.memory_space<vmem>>, vector<2x64x96xbf16>
    tpu.vector_store %arg8[%c0_12, %c0_13, %c288], %13 {strides = array<i32>} : memref<2x64x384xbf16, #tpu.memory_space<vmem>>, vector<2x64x96xbf16>,
    %c0_14 = arith.constant 0 : index
    %c0_15 = arith.constant 0 : index
    %c0_16 = arith.constant 0 : index
    %15 = vector.load %arg6[%c0_14, %c0_15, %c0_16] : memref<2x80x32xf32, #tpu.memory_space<vmem>>, vector<2x64x32xf32>
    %16 = arith.truncf %15 : vector<2x64x32xf32> to vector<2x64x32xbf16>
    %c0_17 = arith.constant 0 : index
    %c0_18 = arith.constant 0 : index
    %c0_19 = arith.constant 0 : index
    %17 = vector.load %arg8[%c0_17, %c0_18, %c0_19] : memref<2x64x384xbf16, #tpu.memory_space<vmem>>, vector<2x64x32xbf16>
    tpu.vector_store %arg8[%c0_17, %c0_18, %c0_19], %16 {strides = array<i32>} : memref<2x64x384xbf16, #tpu.memory_space<vmem>>, vector<2x64x32xbf16>,
    %c0_20 = arith.constant 0 : index
    %c1 = arith.constant 1 : index
    %c0_21 = arith.constant 0 : index
    %18 = vector.load %arg6[%c0_20, %c1, %c0_21] : memref<2x80x32xf32, #tpu.memory_space<vmem>>, vector<2x64x32xf32>
    %19 = arith.truncf %18 : vector<2x64x32xf32> to vector<2x64x32xbf16>
    %c0_22 = arith.constant 0 : index
    %c0_23 = arith.constant 0 : index
    %c32 = arith.constant 32 : index
    %20 = vector.load %arg8[%c0_22, %c0_23, %c32] : memref<2x64x384xbf16, #tpu.memory_space<vmem>>, vector<2x64x32xbf16>
    tpu.vector_store %arg8[%c0_22, %c0_23, %c32], %19 {strides = array<i32>} : memref<2x64x384xbf16, #tpu.memory_space<vmem>>, vector<2x64x32xbf16>,
    %c0_24 = arith.constant 0 : index
    %c2 = arith.constant 2 : index
    %c0_25 = arith.constant 0 : index
    %21 = vector.load %arg6[%c0_24, %c2, %c0_25] : memref<2x80x32xf32, #tpu.memory_space<vmem>>, vector<2x64x32xf32>
    %22 = arith.truncf %21 : vector<2x64x32xf32> to vector<2x64x32xbf16>
    %c0_26 = arith.constant 0 : index
    %c0_27 = arith.constant 0 : index
    %c64 = arith.constant 64 : index
    %23 = vector.load %arg8[%c0_26, %c0_27, %c64] : memref<2x64x384xbf16, #tpu.memory_space<vmem>>, vector<2x64x32xbf16>
    tpu.vector_store %arg8[%c0_26, %c0_27, %c64], %22 {strides = array<i32>} : memref<2x64x384xbf16, #tpu.memory_space<vmem>>, vector<2x64x32xbf16>,
    %c0_28 = arith.constant 0 : index
    %c7 = arith.constant 7 : index
    %c0_29 = arith.constant 0 : index
    %24 = vector.load %arg6[%c0_28, %c7, %c0_29] : memref<2x80x32xf32, #tpu.memory_space<vmem>>, vector<2x64x32xf32>
    %25 = arith.truncf %24 : vector<2x64x32xf32> to vector<2x64x32xbf16>
    %c0_30 = arith.constant 0 : index
    %c0_31 = arith.constant 0 : index
    %c96 = arith.constant 96 : index
    %26 = vector.load %arg8[%c0_30, %c0_31, %c96] : memref<2x64x384xbf16, #tpu.memory_space<vmem>>, vector<2x64x32xbf16>
    tpu.vector_store %arg8[%c0_30, %c0_31, %c96], %25 {strides = array<i32>} : memref<2x64x384xbf16, #tpu.memory_space<vmem>>, vector<2x64x32xbf16>,
    %c0_32 = arith.constant 0 : index
    %c8 = arith.constant 8 : index
    %c0_33 = arith.constant 0 : index
    %27 = vector.load %arg6[%c0_32, %c8, %c0_33] : memref<2x80x32xf32, #tpu.memory_space<vmem>>, vector<2x64x32xf32>
    %28 = arith.truncf %27 : vector<2x64x32xf32> to vector<2x64x32xbf16>
    %c0_34 = arith.constant 0 : index
    %c0_35 = arith.constant 0 : index
    %c128 = arith.constant 128 : index
    %29 = vector.load %arg8[%c0_34, %c0_35, %c128] : memref<2x64x384xbf16, #tpu.memory_space<vmem>>, vector<2x64x32xbf16>
    tpu.vector_store %arg8[%c0_34, %c0_35, %c128], %28 {strides = array<i32>} : memref<2x64x384xbf16, #tpu.memory_space<vmem>>, vector<2x64x32xbf16>,
    %c0_36 = arith.constant 0 : index
    %c9 = arith.constant 9 : index
    %c0_37 = arith.constant 0 : index
    %30 = vector.load %arg6[%c0_36, %c9, %c0_37] : memref<2x80x32xf32, #tpu.memory_space<vmem>>, vector<2x64x32xf32>
    %31 = arith.truncf %30 : vector<2x64x32xf32> to vector<2x64x32xbf16>
    %c0_38 = arith.constant 0 : index
    %c0_39 = arith.constant 0 : index
    %c160 = arith.constant 160 : index
    %32 = vector.load %arg8[%c0_38, %c0_39, %c160] : memref<2x64x384xbf16, #tpu.memory_space<vmem>>, vector<2x64x32xbf16>
    tpu.vector_store %arg8[%c0_38, %c0_39, %c160], %31 {strides = array<i32>} : memref<2x64x384xbf16, #tpu.memory_space<vmem>>, vector<2x64x32xbf16>,
    %c0_40 = arith.constant 0 : index
    %c14 = arith.constant 14 : index
    %c0_41 = arith.constant 0 : index
    %33 = vector.load %arg6[%c0_40, %c14, %c0_41] : memref<2x80x32xf32, #tpu.memory_space<vmem>>, vector<2x64x32xf32>
    %34 = arith.truncf %33 : vector<2x64x32xf32> to vector<2x64x32xbf16>
    %c0_42 = arith.constant 0 : index
    %c0_43 = arith.constant 0 : index
    %c192 = arith.constant 192 : index
    %35 = vector.load %arg8[%c0_42, %c0_43, %c192] : memref<2x64x384xbf16, #tpu.memory_space<vmem>>, vector<2x64x32xbf16>
    tpu.vector_store %arg8[%c0_42, %c0_43, %c192], %34 {strides = array<i32>} : memref<2x64x384xbf16, #tpu.memory_space<vmem>>, vector<2x64x32xbf16>,
    %c0_44 = arith.constant 0 : index
    %c15 = arith.constant 15 : index
    %c0_45 = arith.constant 0 : index
    %36 = vector.load %arg6[%c0_44, %c15, %c0_45] : memref<2x80x32xf32, #tpu.memory_space<vmem>>, vector<2x64x32xf32>
    %37 = arith.truncf %36 : vector<2x64x32xf32> to vector<2x64x32xbf16>
    %c0_46 = arith.constant 0 : index
    %c0_47 = arith.constant 0 : index
    %c224 = arith.constant 224 : index
    %38 = vector.load %arg8[%c0_46, %c0_47, %c224] : memref<2x64x384xbf16, #tpu.memory_space<vmem>>, vector<2x64x32xbf16>
    tpu.vector_store %arg8[%c0_46, %c0_47, %c224], %37 {strides = array<i32>} : memref<2x64x384xbf16, #tpu.memory_space<vmem>>, vector<2x64x32xbf16>,
    %c0_48 = arith.constant 0 : index
    %c16 = arith.constant 16 : index
    %c0_49 = arith.constant 0 : index
    %39 = vector.load %arg6[%c0_48, %c16, %c0_49] : memref<2x80x32xf32, #tpu.memory_space<vmem>>, vector<2x64x32xf32>
    %40 = arith.truncf %39 : vector<2x64x32xf32> to vector<2x64x32xbf16>
    %c0_50 = arith.constant 0 : index
    %c0_51 = arith.constant 0 : index
    %c256 = arith.constant 256 : index
    %41 = vector.load %arg8[%c0_50, %c0_51, %c256] : memref<2x64x384xbf16, #tpu.memory_space<vmem>>, vector<2x64x32xbf16>
    tpu.vector_store %arg8[%c0_50, %c0_51, %c256], %40 {strides = array<i32>} : memref<2x64x384xbf16, #tpu.memory_space<vmem>>, vector<2x64x32xbf16>,
    %c0_52 = arith.constant 0 : index
    %c0_53 = arith.constant 0 : index
    %c0_54 = arith.constant 0 : index
    %42 = vector.load %arg8[%c0_52, %c0_53, %c0_54] : memref<2x64x384xbf16, #tpu.memory_space<vmem>>, vector<2x64x384xbf16>
    %43 = vector.shape_cast %42 : vector<2x64x384xbf16> to vector<128x384xbf16>
    %c0_55 = arith.constant 0 : index
    %c0_56 = arith.constant 0 : index
    %c0_57 = arith.constant 0 : index
    %44 = vector.load %arg3[%c0_55, %c0_56, %c0_57] : memref<3x384x128xbf16, #tpu.memory_space<vmem>>, vector<1x384x128xbf16>
    %45 = vector.shape_cast %44 : vector<1x384x128xbf16> to vector<384x128xbf16>
    %cst_58 = arith.constant dense<0.000000e+00> : vector<128x128xf32>
    %46 = tpu.matmul %43, %45, %cst_58 {dimension_numbers = #tpu.dot_dimension_numbers<[1], [0], [0], [1], [0, 0, 1, 1], [], []>} : vector<128x384xbf16>, vector<384x128xbf16>, vector<128x128xf32> -> vector<128x128xf32>
    %c1_59 = arith.constant 1 : index
    %c0_60 = arith.constant 0 : index
    %c0_61 = arith.constant 0 : index
    %47 = vector.load %arg4[%c1_59, %c0_60, %c0_61] : memref<4x1x128xf32, #tpu.memory_space<vmem>>, vector<1x1x128xf32>
    %48 = vector.shape_cast %47 : vector<1x1x128xf32> to vector<1x128xf32>
    %49 = vector.broadcast %48 : vector<1x128xf32> to vector<128x128xf32>
    %50 = arith.addf %46, %49 : vector<128x128xf32>
    %cst_62 = arith.constant 0.000000e+00 : f32
    %51 = vector.broadcast %cst_62 : f32 to vector<128x128xf32>
    %52 = arith.maximumf %50, %51 : vector<128x128xf32>
    %53 = vector.extract_strided_slice %52 {offsets = [0, 0], sizes = [128, 32], strides = [1, 1]} : vector<128x128xf32> to vector<128x32xf32>
    %54 = vector.shape_cast %53 : vector<128x32xf32> to vector<2x64x32xf32>
    %c0_63 = arith.constant 0 : index
    %c0_64 = arith.constant 0 : index
    %c0_65 = arith.constant 0 : index
    %55 = vector.load %arg7[%c0_63, %c0_64, %c0_65] : memref<2x80x32xf32, #tpu.memory_space<vmem>>, vector<2x64x32xf32>
    tpu.vector_store %arg7[%c0_63, %c0_64, %c0_65], %54 {strides = array<i32>} : memref<2x80x32xf32, #tpu.memory_space<vmem>>, vector<2x64x32xf32>,
    %c0_66 = arith.constant 0 : index
    %c0_67 = arith.constant 0 : index
    %c0_68 = arith.constant 0 : index
    %56 = vector.load %arg7[%c0_66, %c0_67, %c0_68] : memref<2x80x32xf32, #tpu.memory_space<vmem>>, vector<2x64x32xf32>
    %57 = arith.truncf %56 : vector<2x64x32xf32> to vector<2x64x32xbf16>
    %c0_69 = arith.constant 0 : index
    %c0_70 = arith.constant 0 : index
    %c0_71 = arith.constant 0 : index
    %58 = vector.load %arg8[%c0_69, %c0_70, %c0_71] : memref<2x64x384xbf16, #tpu.memory_space<vmem>>, vector<2x64x32xbf16>
    tpu.vector_store %arg8[%c0_69, %c0_70, %c0_71], %57 {strides = array<i32>} : memref<2x64x384xbf16, #tpu.memory_space<vmem>>, vector<2x64x32xbf16>,
    %c0_72 = arith.constant 0 : index
    %c1_73 = arith.constant 1 : index
    %c0_74 = arith.constant 0 : index
    %59 = vector.load %arg7[%c0_72, %c1_73, %c0_74] : memref<2x80x32xf32, #tpu.memory_space<vmem>>, vector<2x64x32xf32>
    %60 = arith.truncf %59 : vector<2x64x32xf32> to vector<2x64x32xbf16>
    %c0_75 = arith.constant 0 : index
    %c0_76 = arith.constant 0 : index
    %c32_77 = arith.constant 32 : index
    %61 = vector.load %arg8[%c0_75, %c0_76, %c32_77] : memref<2x64x384xbf16, #tpu.memory_space<vmem>>, vector<2x64x32xbf16>
    tpu.vector_store %arg8[%c0_75, %c0_76, %c32_77], %60 {strides = array<i32>} : memref<2x64x384xbf16, #tpu.memory_space<vmem>>, vector<2x64x32xbf16>,
    %c0_78 = arith.constant 0 : index
    %c2_79 = arith.constant 2 : index
    %c0_80 = arith.constant 0 : index
    %62 = vector.load %arg7[%c0_78, %c2_79, %c0_80] : memref<2x80x32xf32, #tpu.memory_space<vmem>>, vector<2x64x32xf32>
    %63 = arith.truncf %62 : vector<2x64x32xf32> to vector<2x64x32xbf16>
    %c0_81 = arith.constant 0 : index
    %c0_82 = arith.constant 0 : index
    %c64_83 = arith.constant 64 : index
    %64 = vector.load %arg8[%c0_81, %c0_82, %c64_83] : memref<2x64x384xbf16, #tpu.memory_space<vmem>>, vector<2x64x32xbf16>
    tpu.vector_store %arg8[%c0_81, %c0_82, %c64_83], %63 {strides = array<i32>} : memref<2x64x384xbf16, #tpu.memory_space<vmem>>, vector<2x64x32xbf16>,
    %c0_84 = arith.constant 0 : index
    %c7_85 = arith.constant 7 : index
    %c0_86 = arith.constant 0 : index
    %65 = vector.load %arg7[%c0_84, %c7_85, %c0_86] : memref<2x80x32xf32, #tpu.memory_space<vmem>>, vector<2x64x32xf32>
    %66 = arith.truncf %65 : vector<2x64x32xf32> to vector<2x64x32xbf16>
    %c0_87 = arith.constant 0 : index
    %c0_88 = arith.constant 0 : index
    %c96_89 = arith.constant 96 : index
    %67 = vector.load %arg8[%c0_87, %c0_88, %c96_89] : memref<2x64x384xbf16, #tpu.memory_space<vmem>>, vector<2x64x32xbf16>
    tpu.vector_store %arg8[%c0_87, %c0_88, %c96_89], %66 {strides = array<i32>} : memref<2x64x384xbf16, #tpu.memory_space<vmem>>, vector<2x64x32xbf16>,
    %c0_90 = arith.constant 0 : index
    %c8_91 = arith.constant 8 : index
    %c0_92 = arith.constant 0 : index
    %68 = vector.load %arg7[%c0_90, %c8_91, %c0_92] : memref<2x80x32xf32, #tpu.memory_space<vmem>>, vector<2x64x32xf32>
    %69 = arith.truncf %68 : vector<2x64x32xf32> to vector<2x64x32xbf16>
    %c0_93 = arith.constant 0 : index
    %c0_94 = arith.constant 0 : index
    %c128_95 = arith.constant 128 : index
    %70 = vector.load %arg8[%c0_93, %c0_94, %c128_95] : memref<2x64x384xbf16, #tpu.memory_space<vmem>>, vector<2x64x32xbf16>
    tpu.vector_store %arg8[%c0_93, %c0_94, %c128_95], %69 {strides = array<i32>} : memref<2x64x384xbf16, #tpu.memory_space<vmem>>, vector<2x64x32xbf16>,
    %c0_96 = arith.constant 0 : index
    %c9_97 = arith.constant 9 : index
    %c0_98 = arith.constant 0 : index
    %71 = vector.load %arg7[%c0_96, %c9_97, %c0_98] : memref<2x80x32xf32, #tpu.memory_space<vmem>>, vector<2x64x32xf32>
    %72 = arith.truncf %71 : vector<2x64x32xf32> to vector<2x64x32xbf16>
    %c0_99 = arith.constant 0 : index
    %c0_100 = arith.constant 0 : index
    %c160_101 = arith.constant 160 : index
    %73 = vector.load %arg8[%c0_99, %c0_100, %c160_101] : memref<2x64x384xbf16, #tpu.memory_space<vmem>>, vector<2x64x32xbf16>
    tpu.vector_store %arg8[%c0_99, %c0_100, %c160_101], %72 {strides = array<i32>} : memref<2x64x384xbf16, #tpu.memory_space<vmem>>, vector<2x64x32xbf16>,
    %c0_102 = arith.constant 0 : index
    %c14_103 = arith.constant 14 : index
    %c0_104 = arith.constant 0 : index
    %74 = vector.load %arg7[%c0_102, %c14_103, %c0_104] : memref<2x80x32xf32, #tpu.memory_space<vmem>>, vector<2x64x32xf32>
    %75 = arith.truncf %74 : vector<2x64x32xf32> to vector<2x64x32xbf16>
    %c0_105 = arith.constant 0 : index
    %c0_106 = arith.constant 0 : index
    %c192_107 = arith.constant 192 : index
    %76 = vector.load %arg8[%c0_105, %c0_106, %c192_107] : memref<2x64x384xbf16, #tpu.memory_space<vmem>>, vector<2x64x32xbf16>
    tpu.vector_store %arg8[%c0_105, %c0_106, %c192_107], %75 {strides = array<i32>} : memref<2x64x384xbf16, #tpu.memory_space<vmem>>, vector<2x64x32xbf16>,
    %c0_108 = arith.constant 0 : index
    %c15_109 = arith.constant 15 : index
    %c0_110 = arith.constant 0 : index
    %77 = vector.load %arg7[%c0_108, %c15_109, %c0_110] : memref<2x80x32xf32, #tpu.memory_space<vmem>>, vector<2x64x32xf32>
    %78 = arith.truncf %77 : vector<2x64x32xf32> to vector<2x64x32xbf16>
    %c0_111 = arith.constant 0 : index
    %c0_112 = arith.constant 0 : index
    %c224_113 = arith.constant 224 : index
    %79 = vector.load %arg8[%c0_111, %c0_112, %c224_113] : memref<2x64x384xbf16, #tpu.memory_space<vmem>>, vector<2x64x32xbf16>
    tpu.vector_store %arg8[%c0_111, %c0_112, %c224_113], %78 {strides = array<i32>} : memref<2x64x384xbf16, #tpu.memory_space<vmem>>, vector<2x64x32xbf16>,
    %c0_114 = arith.constant 0 : index
    %c16_115 = arith.constant 16 : index
    %c0_116 = arith.constant 0 : index
    %80 = vector.load %arg7[%c0_114, %c16_115, %c0_116] : memref<2x80x32xf32, #tpu.memory_space<vmem>>, vector<2x64x32xf32>
    %81 = arith.truncf %80 : vector<2x64x32xf32> to vector<2x64x32xbf16>
    %c0_117 = arith.constant 0 : index
    %c0_118 = arith.constant 0 : index
    %c256_119 = arith.constant 256 : index
    %82 = vector.load %arg8[%c0_117, %c0_118, %c256_119] : memref<2x64x384xbf16, #tpu.memory_space<vmem>>, vector<2x64x32xbf16>
    tpu.vector_store %arg8[%c0_117, %c0_118, %c256_119], %81 {strides = array<i32>} : memref<2x64x384xbf16, #tpu.memory_space<vmem>>, vector<2x64x32xbf16>,
    %c0_120 = arith.constant 0 : index
    %c0_121 = arith.constant 0 : index
    %c0_122 = arith.constant 0 : index
    %83 = vector.load %arg8[%c0_120, %c0_121, %c0_122] : memref<2x64x384xbf16, #tpu.memory_space<vmem>>, vector<2x64x384xbf16>
    %84 = vector.shape_cast %83 : vector<2x64x384xbf16> to vector<128x384xbf16>
    %c1_123 = arith.constant 1 : index
    %c0_124 = arith.constant 0 : index
    %c0_125 = arith.constant 0 : index
    %85 = vector.load %arg3[%c1_123, %c0_124, %c0_125] : memref<3x384x128xbf16, #tpu.memory_space<vmem>>, vector<1x384x128xbf16>
    %86 = vector.shape_cast %85 : vector<1x384x128xbf16> to vector<384x128xbf16>
    %cst_126 = arith.constant dense<0.000000e+00> : vector<128x128xf32>
    %87 = tpu.matmul %84, %86, %cst_126 {dimension_numbers = #tpu.dot_dimension_numbers<[1], [0], [0], [1], [0, 0, 1, 1], [], []>} : vector<128x384xbf16>, vector<384x128xbf16>, vector<128x128xf32> -> vector<128x128xf32>
    %c2_127 = arith.constant 2 : index
    %c0_128 = arith.constant 0 : index
    %c0_129 = arith.constant 0 : index
    %88 = vector.load %arg4[%c2_127, %c0_128, %c0_129] : memref<4x1x128xf32, #tpu.memory_space<vmem>>, vector<1x1x128xf32>
    %89 = vector.shape_cast %88 : vector<1x1x128xf32> to vector<1x128xf32>
    %90 = vector.broadcast %89 : vector<1x128xf32> to vector<128x128xf32>
    %91 = arith.addf %87, %90 : vector<128x128xf32>
    %cst_130 = arith.constant 0.000000e+00 : f32
    %92 = vector.broadcast %cst_130 : f32 to vector<128x128xf32>
    %93 = arith.maximumf %91, %92 : vector<128x128xf32>
    %94 = vector.extract_strided_slice %93 {offsets = [0, 0], sizes = [128, 32], strides = [1, 1]} : vector<128x128xf32> to vector<128x32xf32>
    %95 = vector.shape_cast %94 : vector<128x32xf32> to vector<2x64x32xf32>
    %c0_131 = arith.constant 0 : index
    %c0_132 = arith.constant 0 : index
    %c0_133 = arith.constant 0 : index
    %96 = vector.load %arg6[%c0_131, %c0_132, %c0_133] : memref<2x80x32xf32, #tpu.memory_space<vmem>>, vector<2x64x32xf32>
    tpu.vector_store %arg6[%c0_131, %c0_132, %c0_133], %95 {strides = array<i32>} : memref<2x80x32xf32, #tpu.memory_space<vmem>>, vector<2x64x32xf32>,
    %c0_134 = arith.constant 0 : index
    %c0_135 = arith.constant 0 : index
    %c0_136 = arith.constant 0 : index
    %97 = vector.load %arg6[%c0_134, %c0_135, %c0_136] : memref<2x80x32xf32, #tpu.memory_space<vmem>>, vector<2x64x32xf32>
    %98 = arith.truncf %97 : vector<2x64x32xf32> to vector<2x64x32xbf16>
    %c0_137 = arith.constant 0 : index
    %c0_138 = arith.constant 0 : index
    %c0_139 = arith.constant 0 : index
    %99 = vector.load %arg8[%c0_137, %c0_138, %c0_139] : memref<2x64x384xbf16, #tpu.memory_space<vmem>>, vector<2x64x32xbf16>
    tpu.vector_store %arg8[%c0_137, %c0_138, %c0_139], %98 {strides = array<i32>} : memref<2x64x384xbf16, #tpu.memory_space<vmem>>, vector<2x64x32xbf16>,
    %c0_140 = arith.constant 0 : index
    %c1_141 = arith.constant 1 : index
    %c0_142 = arith.constant 0 : index
    %100 = vector.load %arg6[%c0_140, %c1_141, %c0_142] : memref<2x80x32xf32, #tpu.memory_space<vmem>>, vector<2x64x32xf32>
    %101 = arith.truncf %100 : vector<2x64x32xf32> to vector<2x64x32xbf16>
    %c0_143 = arith.constant 0 : index
    %c0_144 = arith.constant 0 : index
    %c32_145 = arith.constant 32 : index
    %102 = vector.load %arg8[%c0_143, %c0_144, %c32_145] : memref<2x64x384xbf16, #tpu.memory_space<vmem>>, vector<2x64x32xbf16>
    tpu.vector_store %arg8[%c0_143, %c0_144, %c32_145], %101 {strides = array<i32>} : memref<2x64x384xbf16, #tpu.memory_space<vmem>>, vector<2x64x32xbf16>,
    %c0_146 = arith.constant 0 : index
    %c2_147 = arith.constant 2 : index
    %c0_148 = arith.constant 0 : index
    %103 = vector.load %arg6[%c0_146, %c2_147, %c0_148] : memref<2x80x32xf32, #tpu.memory_space<vmem>>, vector<2x64x32xf32>
    %104 = arith.truncf %103 : vector<2x64x32xf32> to vector<2x64x32xbf16>
    %c0_149 = arith.constant 0 : index
    %c0_150 = arith.constant 0 : index
    %c64_151 = arith.constant 64 : index
    %105 = vector.load %arg8[%c0_149, %c0_150, %c64_151] : memref<2x64x384xbf16, #tpu.memory_space<vmem>>, vector<2x64x32xbf16>
    tpu.vector_store %arg8[%c0_149, %c0_150, %c64_151], %104 {strides = array<i32>} : memref<2x64x384xbf16, #tpu.memory_space<vmem>>, vector<2x64x32xbf16>,
    %c0_152 = arith.constant 0 : index
    %c7_153 = arith.constant 7 : index
    %c0_154 = arith.constant 0 : index
    %106 = vector.load %arg6[%c0_152, %c7_153, %c0_154] : memref<2x80x32xf32, #tpu.memory_space<vmem>>, vector<2x64x32xf32>
    %107 = arith.truncf %106 : vector<2x64x32xf32> to vector<2x64x32xbf16>
    %c0_155 = arith.constant 0 : index
    %c0_156 = arith.constant 0 : index
    %c96_157 = arith.constant 96 : index
    %108 = vector.load %arg8[%c0_155, %c0_156, %c96_157] : memref<2x64x384xbf16, #tpu.memory_space<vmem>>, vector<2x64x32xbf16>
    tpu.vector_store %arg8[%c0_155, %c0_156, %c96_157], %107 {strides = array<i32>} : memref<2x64x384xbf16, #tpu.memory_space<vmem>>, vector<2x64x32xbf16>,
    %c0_158 = arith.constant 0 : index
    %c8_159 = arith.constant 8 : index
    %c0_160 = arith.constant 0 : index
    %109 = vector.load %arg6[%c0_158, %c8_159, %c0_160] : memref<2x80x32xf32, #tpu.memory_space<vmem>>, vector<2x64x32xf32>
    %110 = arith.truncf %109 : vector<2x64x32xf32> to vector<2x64x32xbf16>
    %c0_161 = arith.constant 0 : index
    %c0_162 = arith.constant 0 : index
    %c128_163 = arith.constant 128 : index
    %111 = vector.load %arg8[%c0_161, %c0_162, %c128_163] : memref<2x64x384xbf16, #tpu.memory_space<vmem>>, vector<2x64x32xbf16>
    tpu.vector_store %arg8[%c0_161, %c0_162, %c128_163], %110 {strides = array<i32>} : memref<2x64x384xbf16, #tpu.memory_space<vmem>>, vector<2x64x32xbf16>,
    %c0_164 = arith.constant 0 : index
    %c9_165 = arith.constant 9 : index
    %c0_166 = arith.constant 0 : index
    %112 = vector.load %arg6[%c0_164, %c9_165, %c0_166] : memref<2x80x32xf32, #tpu.memory_space<vmem>>, vector<2x64x32xf32>
    %113 = arith.truncf %112 : vector<2x64x32xf32> to vector<2x64x32xbf16>
    %c0_167 = arith.constant 0 : index
    %c0_168 = arith.constant 0 : index
    %c160_169 = arith.constant 160 : index
    %114 = vector.load %arg8[%c0_167, %c0_168, %c160_169] : memref<2x64x384xbf16, #tpu.memory_space<vmem>>, vector<2x64x32xbf16>
    tpu.vector_store %arg8[%c0_167, %c0_168, %c160_169], %113 {strides = array<i32>} : memref<2x64x384xbf16, #tpu.memory_space<vmem>>, vector<2x64x32xbf16>,
    %c0_170 = arith.constant 0 : index
    %c14_171 = arith.constant 14 : index
    %c0_172 = arith.constant 0 : index
    %115 = vector.load %arg6[%c0_170, %c14_171, %c0_172] : memref<2x80x32xf32, #tpu.memory_space<vmem>>, vector<2x64x32xf32>
    %116 = arith.truncf %115 : vector<2x64x32xf32> to vector<2x64x32xbf16>
    %c0_173 = arith.constant 0 : index
    %c0_174 = arith.constant 0 : index
    %c192_175 = arith.constant 192 : index
    %117 = vector.load %arg8[%c0_173, %c0_174, %c192_175] : memref<2x64x384xbf16, #tpu.memory_space<vmem>>, vector<2x64x32xbf16>
    tpu.vector_store %arg8[%c0_173, %c0_174, %c192_175], %116 {strides = array<i32>} : memref<2x64x384xbf16, #tpu.memory_space<vmem>>, vector<2x64x32xbf16>,
    %c0_176 = arith.constant 0 : index
    %c15_177 = arith.constant 15 : index
    %c0_178 = arith.constant 0 : index
    %118 = vector.load %arg6[%c0_176, %c15_177, %c0_178] : memref<2x80x32xf32, #tpu.memory_space<vmem>>, vector<2x64x32xf32>
    %119 = arith.truncf %118 : vector<2x64x32xf32> to vector<2x64x32xbf16>
    %c0_179 = arith.constant 0 : index
    %c0_180 = arith.constant 0 : index
    %c224_181 = arith.constant 224 : index
    %120 = vector.load %arg8[%c0_179, %c0_180, %c224_181] : memref<2x64x384xbf16, #tpu.memory_space<vmem>>, vector<2x64x32xbf16>
    tpu.vector_store %arg8[%c0_179, %c0_180, %c224_181], %119 {strides = array<i32>} : memref<2x64x384xbf16, #tpu.memory_space<vmem>>, vector<2x64x32xbf16>,
    %c0_182 = arith.constant 0 : index
    %c16_183 = arith.constant 16 : index
    %c0_184 = arith.constant 0 : index
    %121 = vector.load %arg6[%c0_182, %c16_183, %c0_184] : memref<2x80x32xf32, #tpu.memory_space<vmem>>, vector<2x64x32xf32>
    %122 = arith.truncf %121 : vector<2x64x32xf32> to vector<2x64x32xbf16>
    %c0_185 = arith.constant 0 : index
    %c0_186 = arith.constant 0 : index
    %c256_187 = arith.constant 256 : index
    %123 = vector.load %arg8[%c0_185, %c0_186, %c256_187] : memref<2x64x384xbf16, #tpu.memory_space<vmem>>, vector<2x64x32xbf16>
    tpu.vector_store %arg8[%c0_185, %c0_186, %c256_187], %122 {strides = array<i32>} : memref<2x64x384xbf16, #tpu.memory_space<vmem>>, vector<2x64x32xbf16>,
    %c0_188 = arith.constant 0 : index
    %c0_189 = arith.constant 0 : index
    %c0_190 = arith.constant 0 : index
    %124 = vector.load %arg8[%c0_188, %c0_189, %c0_190] : memref<2x64x384xbf16, #tpu.memory_space<vmem>>, vector<2x64x384xbf16>
    %125 = vector.shape_cast %124 : vector<2x64x384xbf16> to vector<128x384xbf16>
    %c2_191 = arith.constant 2 : index
    %c0_192 = arith.constant 0 : index
    %c0_193 = arith.constant 0 : index
    %126 = vector.load %arg3[%c2_191, %c0_192, %c0_193] : memref<3x384x128xbf16, #tpu.memory_space<vmem>>, vector<1x384x128xbf16>
    %127 = vector.shape_cast %126 : vector<1x384x128xbf16> to vector<384x128xbf16>
    %cst_194 = arith.constant dense<0.000000e+00> : vector<128x128xf32>
    %128 = tpu.matmul %125, %127, %cst_194 {dimension_numbers = #tpu.dot_dimension_numbers<[1], [0], [0], [1], [0, 0, 1, 1], [], []>} : vector<128x384xbf16>, vector<384x128xbf16>, vector<128x128xf32> -> vector<128x128xf32>
    %c3 = arith.constant 3 : index
    %c0_195 = arith.constant 0 : index
    %c0_196 = arith.constant 0 : index
    %129 = vector.load %arg4[%c3, %c0_195, %c0_196] : memref<4x1x128xf32, #tpu.memory_space<vmem>>, vector<1x1x128xf32>
    %130 = vector.shape_cast %129 : vector<1x1x128xf32> to vector<1x128xf32>
    %131 = vector.broadcast %130 : vector<1x128xf32> to vector<128x128xf32>
    %132 = arith.addf %128, %131 : vector<128x128xf32>
    %cst_197 = arith.constant 0.000000e+00 : f32
    %133 = vector.broadcast %cst_197 : f32 to vector<128x128xf32>
    %134 = arith.maximumf %132, %133 : vector<128x128xf32>
    %135 = vector.shape_cast %134 : vector<128x128xf32> to vector<2x64x128xf32>
    %c0_198 = arith.constant 0 : index
    %c0_199 = arith.constant 0 : index
    %c0_200 = arith.constant 0 : index
    %136 = vector.load %arg5[%c0_198, %c0_199, %c0_200] : memref<2x64x128xf32, #tpu.memory_space<vmem>>, vector<2x64x128xf32>
    tpu.vector_store %arg5[%c0_198, %c0_199, %c0_200], %135 {strides = array<i32>} : memref<2x64x128xf32, #tpu.memory_space<vmem>>, vector<2x64x128xf32>,
    return
  }
  func.func @transform_0(%arg0: i32) -> (i32, i32, i32) {
    %c0_i32 = arith.constant 0 : i32
    %c0_i32_0 = arith.constant 0 : i32
    %c0_i32_1 = arith.constant 0 : i32
    return %arg0, %c0_i32, %c0_i32_0 : i32, i32, i32
  }
  func.func @transform_1(%arg0: i32) -> (i32, i32) {
    %c0_i32 = arith.constant 0 : i32
    %c0_i32_0 = arith.constant 0 : i32
    %c0_i32_1 = arith.constant 0 : i32
    return %c0_i32, %c0_i32_0 : i32, i32
  }
  func.func @transform_2(%arg0: i32) -> (i32, i32, i32) {
    %c0_i32 = arith.constant 0 : i32
    %c0_i32_0 = arith.constant 0 : i32
    %c0_i32_1 = arith.constant 0 : i32
    %c0_i32_2 = arith.constant 0 : i32
    return %c0_i32, %c0_i32_0, %c0_i32_1 : i32, i32, i32
  }
  func.func @transform_3(%arg0: i32) -> (i32, i32, i32) {
    %c0_i32 = arith.constant 0 : i32
    %c0_i32_0 = arith.constant 0 : i32
    %c0_i32_1 = arith.constant 0 : i32
    %c0_i32_2 = arith.constant 0 : i32
    return %c0_i32, %c0_i32_0, %c0_i32_1 : i32, i32, i32
  }
  func.func @transform_4(%arg0: i32) -> (i32, i32, i32) {
    %c0_i32 = arith.constant 0 : i32
    %c0_i32_0 = arith.constant 0 : i32
    %c0_i32_1 = arith.constant 0 : i32
    return %arg0, %c0_i32, %c0_i32_0 : i32, i32, i32
  }
}

</mosaic_0001>

<bundles_post_ra>
// kernel: tpu_custom_call.1
= control target key start
LH: loop header
LB: loop body
LE: loop exit
PB: predicated region body
PF: predicated region fallthrough
CT: control target
= control target key end

     0   :  { %9 = vsyncpa [#allocation6], 0  ;;  %s6329_s0 = inlined_call_operand.vmem [shape: bf16[2,64,36], index: 0, kind: input, shape index: {}]   ;;  %s6330_s1 = inlined_call_operand.vmem [shape: bf16[36,128], index: 1, kind: input, shape index: {}]   ;;  %s6331_s2 = inlined_call_operand.hbm [shape: bf16[3,384,128], index: 2, kind: input, shape index: {}]   ;;  %s6332_s3 = inlined_call_operand.vmem [shape: f32[4,1,128], index: 3, kind: input, shape index: {}]   ;;  %s6333_s4 = inlined_call_operand.hbm [shape: f32[2,64,128], index: 4, kind: output, shape index: {}]  }
   0x1   :  { %10 = vsyncpa [#allocation7], 0  ;;  %s19_s17 = sshll.u32 %s6331_s2, 4  ;;  %s5190_s18 = smov [#allocation5]   ;;  %s20_s17 = int_to_ptr.hbm [resolvable:$true] %s19_s17 }
   0x2   :  { %s21_s19 = sshll.u32 %s5190_s18, 4  ;;  %s5191_s20 = smov 64   ;;  %s22_s19 = int_to_ptr.vmem [resolvable:$true] %s21_s19 }
   0x3   :  { %s5192_s21 = smov 4  }
   0x4   :  { %27 = dma.hbm_to_vmem [thread:$0]  %s20_s17, 9216, %s22_s19, [#allocation6], %s5191_s20, %s5191_s20, %s5192_s21  }
   0x5   :  { %5186 = dma.done.wait [#allocation6], 9216  }
   0x6   :  { %5187 = vsyncadd [#allocation6], 4294958080  ;;  %v55_v0 = vld [vmem:[%s6330_s1 + $0x10] sm:$0x3]  ;;  %vm140_vm0 = vcmask 1041408   ;;  %v4960_v4 = vld [vmem:[%s6330_s1 + $0x8] sm:$0xff] }
   0x7   :  { %v109_v1 = vunpack.c.l.b16 %v55_v0  ;;  %v4959_v5 = vld [vmem:[%s6330_s1] sm:$0xff]  ;;  %v4956_v7 = vld [vmem:[%s6329_s0 + $0x28] sm:$0xff]  ;;  %vm115_vm1 = vcmask 293888   ;;  %v4957_v9 = vld [vmem:[%s6329_s0 + $0x30] sm:$0xff]  ;;  %s5193_s16 = smov 32   ;;  %vm226_vm2 = vcmask 1043712  }
   0x8   :  { %v4951_v6 = vld [vmem:[%s6329_s0] sm:$0xff]  ;;  %v4952_v8 = vld [vmem:[%s6329_s0 + $0x8] sm:$0xff]  ;;  %v4953_v10 = vld [vmem:[%s6329_s0 + $0x10] sm:$0xff]  ;;  %v5194_v16 = vmov 0   ;;  %vm209_vm3 = vcmask 261120   ;;  %vm275_vm4 = vcmask 257024  }
   0x9   :  { %v112_v2 = vpack.c.b16 %v109_v1, %v109_v1  ;;  %v4958_v11 = vld [vmem:[%s6329_s0 + $0x38] sm:$0xff]  ;;  %v4955_v13 = vld [vmem:[%s6329_s0 + $0x20] sm:$0xff]  ;;  %227 = vst.msk [vmem:[#allocation4 + $0x8] sm:$0xf] %vm226_vm2, %v5194_v16  ;;  %vm388_vm5 = vcmask 519424   ;;  %vm501_vm6 = vcmask 781824  }
   0xa   :  { %v4954_v12 = vld [vmem:[%s6329_s0 + $0x18] sm:$0xff]  ;;  %v686_v14 = vld [vmem:[#allocation2 + $0x41] sm:$0xff]  ;;  %228 = vst.msk [vmem:[#allocation4 + $0x14] sm:$0xf] %vm226_vm2, %v5194_v16  ;;  %v5269_v17 = vld [vmem:[%s6332_s3] ss:$0 sm:$0xff] }
   0xb   :  { %v142_v3 = vsel %vm140_vm0, %v112_v2, 0  ;;  %v702_v15 = vpack.c.bf16 %v686_v14, %v686_v14  ;;  %229 = vst.msk [vmem:[#allocation4 + $0x20] sm:$0xf] %vm226_vm2, %v5194_v16  ;;  %s5195_s0 = smov 96   ;;  %vm614_vm7 = vcmask 1044224   ;;  %s4311_s29 = sshll.u32 %s6333_s4, 4  ;;  %s4312_s29 = int_to_ptr.hbm [resolvable:$true] %s4311_s29 }
   0xc   :  { %149 = vmatpush.bf16.msra.mxu0 %v142_v3  ;;  %5105 = vmatpush.bf16.msra.mxu3 %v142_v3  ;;  %230 = vst.msk [vmem:[#allocation4 + $0x2c] sm:$0xf] %vm226_vm2, %v5194_v16  ;;  %s5197_s30 = smov 128   ;;  %s5198_s5 = smov 8  }
   0xd   :  { %741 = vrot.lane.b32.xlu1 %v702_v15, %s5193_s16  ;;  %231 = vst.msk [vmem:[#allocation4 + $0x38] sm:$0xf] %vm226_vm2, %v5194_v16 }
   0xe   :  { %232 = vst.msk [vmem:[#allocation4 + $0x44] sm:$0xf] %vm226_vm2, %v5194_v16 }
   0xf   :  { %233 = vst.msk [vmem:[#allocation4 + $0x50] sm:$0xf] %vm226_vm2, %v5194_v16 }
  0x10   :  { %150 = vmatpush.bf16.msra.mxu0 %v4960_v4  ;;  %5106 = vmatpush.bf16.msra.mxu3 %v4960_v4  ;;  %234 = vst.msk [vmem:[#allocation4 + $0x5c] sm:$0xf] %vm226_vm2, %v5194_v16 }
  0x11   :  { %235 = vst.msk [vmem:[#allocation4 + $0x68] sm:$0xf] %vm226_vm2, %v5194_v16 }
  0x12   :  { %236 = vst.msk [vmem:[#allocation4 + $0x74] sm:$0xf] %vm226_vm2, %v5194_v16 }
  0x13   :  { %237 = vst.msk [vmem:[#allocation4 + $0x80] sm:$0xf] %vm226_vm2, %v5194_v16 }
  0x14   :  { %151 = vmatpush.bf16.msra.mxu0 %v4959_v5  ;;  %5107 = vmatpush.bf16.msra.mxu3 %v4959_v5  ;;  %238 = vst.msk [vmem:[#allocation4 + $0x8c] sm:$0xf] %vm226_vm2, %v5194_v16 }
  0x15   :  { %239 = vst.msk [vmem:[#allocation4 + $0x98] sm:$0xf] %vm226_vm2, %v5194_v16 }
  0x16   :  { %240 = vst.msk [vmem:[#allocation4 + $0xa4] sm:$0xf] %vm226_vm2, %v5194_v16 }
  0x17   :  { %4364 = vmatmul.msk.bf16.vlgmr.msra.gmra.mxu0 %vm115_vm1, %v4951_v6  ;;  %4369 = vmatmul.msk.bf16.vlgmr.msra.gmra.mxu3 %vm115_vm1, %v4956_v7  ;;  %241 = vst.msk [vmem:[#allocation4 + $0xb0] sm:$0xf] %vm226_vm2, %v5194_v16 }
  0x18   :  { %242 = vst.msk [vmem:[#allocation4 + $0xbc] sm:$0xf] %vm226_vm2, %v5194_v16 }
  0x27   :  { %4365 = vmatmul.msk.bf16.gmra.mxu0 %vm115_vm1, %v4952_v8  ;;  %4370 = vmatmul.msk.bf16.gmra.mxu3 %vm115_vm1, %v4957_v9 }
  0x37   :  { %4366 = vmatmul.msk.bf16.gmra.mxu0 %vm115_vm1, %v4953_v10  ;;  %4371 = vmatmul.msk.bf16.gmra.mxu3 %vm115_vm1, %v4958_v11 }
  0x47   :  { %4367 = vmatmul.msk.bf16.gmra.mxu0 %vm115_vm1, %v4954_v12 }
  0x57   :  { %4368 = vmatmul.msk.bf16.gmra.mxu0 %vm115_vm1, %v4955_v13 }
  0x94   :  { %v153_v18 = vpop.f32.mrf.mxu0 }
  0x95   :  { %v154_v19 = vadd.f32 %v5269_v17, %v153_v18 }
  0x97   :  { %v193_v20 = vmax.f32 %v154_v19, 0.0 }
  0x99   :  { %210 = vst.msk [vmem:[#allocation2] sm:$0xff] %vm209_vm3, %v193_v20 }
  0x9a   :  { %v178_v21 = vpop.f32.mrf.mxu3 }
  0x9b   :  { %v179_v22 = vadd.f32 %v5269_v17, %v178_v21 }
  0x9c   :  { %v155_v23 = vpop.f32.mrf.mxu0 }
  0x9d   :  { %v203_v24 = vmax.f32 %v179_v22, 0.0  ;;  %v156_v25 = vadd.f32 %v5269_v17, %v155_v23 }
  0x9f   :  { %220 = vst.msk [vmem:[#allocation2 + $0x60] sm:$0xff] %vm209_vm3, %v203_v24  ;;  %v194_v26 = vmax.f32 %v156_v25, 0.0 }
  0xa0   :  { %v243_v27 = vld [vmem:[#allocation2] sm:$0xff] }
  0xa1   :  { %211 = vst.msk [vmem:[#allocation2 + $0x8] sm:$0xff] %vm209_vm3, %v194_v26  ;;  %v259_v28 = vpack.c.bf16 %v243_v27, %v243_v27 }
  0xa2   :  { %v180_v29 = vpop.f32.mrf.mxu3 }
  0xa3   :  { %v181_v30 = vadd.f32 %v5269_v17, %v180_v29  ;;  %276 = vst.msk [vmem:[#allocation4] sm:$0xf] %vm275_vm4, %v259_v28 }
  0xa4   :  { %v158_v31 = vpop.f32.mrf.mxu0 }
  0xa5   :  { %v204_v32 = vmax.f32 %v181_v30, 0.0  ;;  %v159_v33 = vadd.f32 %v5269_v17, %v158_v31 }
  0xa6   :  { %v1023_v34 = vld [vmem:[#allocation2 + $0x60] sm:$0xff] }
  0xa7   :  { %v1039_v35 = vpack.c.bf16 %v1023_v34, %v1023_v34  ;;  %221 = vst.msk [vmem:[#allocation2 + $0x68] sm:$0xff] %vm209_vm3, %v204_v32  ;;  %v195_v36 = vmax.f32 %v159_v33, 0.0  ;;  %v640_v37 = vld [vmem:[#allocation2 + $0x60] sm:$0xff] }
  0xa8   :  { %v518_v38 = vld [vmem:[#allocation2 + $0x7] sm:$0xff]  ;;  %v656_v47 = vpack.c.bf16 %v640_v37, %v640_v37 }
  0xa9   :  { %v405_v39 = vld [vmem:[#allocation2 + $0x2] sm:$0xff]  ;;  %212 = vst.msk [vmem:[#allocation2 + $0x10] sm:$0xff] %vm209_vm3, %v195_v36  ;;  %v534_v41 = vpack.c.bf16 %v518_v38, %v518_v38 }
  0xaa   :  { %v292_v40 = vld [vmem:[#allocation2 + $0x1] sm:$0xff]  ;;  %v421_v42 = vpack.c.bf16 %v405_v39, %v405_v39  ;;  %v183_v45 = vpop.f32.mrf.mxu3  ;;  %286 = vst.msk [vmem:[#allocation4 + $0x78] sm:$0xf] %vm275_vm4, %v1039_v35 }
  0xab   :  { %v308_v43 = vpack.c.bf16 %v292_v40, %v292_v40  ;;  %v631_v44 = vld [vmem:[#allocation2 + $0x8] sm:$0xff]  ;;  %v184_v48 = vadd.f32 %v5269_v17, %v183_v45  ;;  %566 = vrot.lane.b32.xlu2 %v534_v41, %s5195_s0  ;;  %1055 = vst.msk [vmem:[#allocation4 + $0x68] sm:$0xf] %vm275_vm4, %v1039_v35 }
  0xac   :  { %v647_v46 = vpack.c.bf16 %v631_v44, %v631_v44  ;;  %453 = vrot.lane.b32.xlu1 %v421_v42, %s5191_s20  ;;  %v160_v49 = vpop.f32.mrf.mxu0  ;;  %672 = vst.msk [vmem:[#allocation4 + $0x70] sm:$0xf] %vm275_vm4, %v656_v47 }
  0xad   :  { %340 = vrot.lane.b32.xlu0 %v308_v43, %s5193_s16  ;;  %v205_v50 = vmax.f32 %v184_v48, 0.0  ;;  %v161_v51 = vadd.f32 %v5269_v17, %v160_v49 }
  0xae   :  { %663 = vst.msk [vmem:[#allocation4 + $0x4] sm:$0xf] %vm275_vm4, %v647_v46  ;;  %v1024_v52 = vld [vmem:[#allocation2 + $0x68] sm:$0xff] }
  0xaf   :  { %277 = vst.msk [vmem:[#allocation4 + $0xc] sm:$0xf] %vm275_vm4, %v647_v46  ;;  %v528_v53 = vld [vmem:[#allocation2 + $0x67] sm:$0xff]  ;;  %v1040_v55 = vpack.c.bf16 %v1024_v52, %v1024_v52  ;;  %v196_v56 = vmax.f32 %v161_v51, 0.0 }
  0xb0   :  { %v302_v54 = vld [vmem:[#allocation2 + $0x61] sm:$0xff]  ;;  %222 = vst.msk [vmem:[#allocation2 + $0x70] sm:$0xff] %vm209_vm3, %v205_v50  ;;  %v1015_v58 = vld [vmem:[#allocation2 + $0x10] sm:$0xff]  ;;  %v5307_v60 = vpack.c.bf16 %v528_v53, %v528_v53 }
  0xb1   :  { %v415_v57 = vld [vmem:[#allocation2 + $0x62] sm:$0xff]  ;;  %v1031_v59 = vpack.c.bf16 %v1015_v58, %v1015_v58  ;;  %213 = vst.msk [vmem:[#allocation2 + $0x18] sm:$0xff] %vm209_vm3, %v196_v56  ;;  %v5309_v61 = vpack.c.bf16 %v302_v54, %v302_v54  ;;  %v406_v7 = vld [vmem:[#allocation2 + $0xa] sm:$0xff] }
  0xb2   :  { %v641_v62 = vld [vmem:[#allocation2 + $0x68] sm:$0xff]  ;;  %v431_v63 = vpack.c.bf16 %v415_v57, %v415_v57  ;;  %v185_v0 = vpop.f32.mrf.mxu3  ;;  %287 = vst.msk [vmem:[#allocation4 + $0x84] sm:$0xf] %vm275_vm4, %v1040_v55  ;;  %v422_v14 = vpack.c.bf16 %v406_v7, %v406_v7 }
  0xb3   :  { %586 = vrot.lane.b32.xlu2 %v5307_v60, %s5195_s0  ;;  %v186_v1 = vadd.f32 %v5269_v17, %v185_v0  ;;  %278 = vst.msk [vmem:[#allocation4 + $0x18] sm:$0xf] %vm275_vm4, %v1031_v59  ;;  %v657_v3 = vpack.c.bf16 %v641_v62, %v641_v62  ;;  %v791_v8 = vld [vmem:[#allocation2 + $0xe] sm:$0xff] }
  0xb4   :  { %360 = vrot.lane.b32.xlu1 %v5309_v61, %s5193_s16  ;;  %v163_v2 = vpop.f32.mrf.mxu0  ;;  %664 = vst.msk [vmem:[#allocation4 + $0x10] sm:$0xf] %vm275_vm4, %v1031_v59  ;;  %v293_v11 = vld [vmem:[#allocation2 + $0x9] sm:$0xff]  ;;  %v807_v15 = vpack.c.bf16 %v791_v8, %v791_v8 }
  0xb5   :  { %473 = vrot.lane.b32.xlu0 %v431_v63, %s5191_s20  ;;  %v164_v4 = vadd.f32 %v5269_v17, %v163_v2  ;;  %v206_v5 = vmax.f32 %v186_v1, 0.0  ;;  %1047 = vst.msk [vmem:[#allocation4 + $0x8] sm:$0xf] %vm275_vm4, %v1031_v59  ;;  %v309_v18 = vpack.c.bf16 %v293_v11, %v293_v11  ;;  %v903_v29 = vld [vmem:[#allocation2 + $0xf] sm:$0xff] }
  0xb6   :  { %1056 = vst.msk [vmem:[#allocation4 + $0x74] sm:$0xf] %vm275_vm4, %v1040_v55  ;;  %v919_v34 = vpack.c.bf16 %v903_v29, %v903_v29  ;;  %v638_v29 = vld [vmem:[#allocation2 + $0x40] sm:$0xff] }
  0xb7   :  { %v1025_v6 = vld [vmem:[#allocation2 + $0x70] sm:$0xff]  ;;  %v197_v10 = vmax.f32 %v164_v4, 0.0  ;;  %223 = vst.msk [vmem:[#allocation2 + $0x78] sm:$0xff] %vm209_vm3, %v206_v5 }
  0xb8   :  { %v1041_v9 = vpack.c.bf16 %v1025_v6, %v1025_v6  ;;  %v1016_v12 = vld [vmem:[#allocation2 + $0x18] sm:$0xff]  ;;  %673 = vst.msk [vmem:[#allocation4 + $0x7c] sm:$0xf] %vm275_vm4, %v657_v3  ;;  %v642_v16 = vld [vmem:[#allocation2 + $0x70] sm:$0xff] }
  0xb9   :  { %v1032_v13 = vpack.c.bf16 %v1016_v12, %v1016_v12  ;;  %214 = vst.msk [vmem:[#allocation2 + $0x20] sm:$0xff] %vm209_vm3, %v197_v10  ;;  %v658_v22 = vpack.c.bf16 %v642_v16, %v642_v16  ;;  %v416_v26 = vld [vmem:[#allocation2 + $0x6a] sm:$0xff]  ;;  %v792_v51 = vld [vmem:[#allocation2 + $0x16] sm:$0xff] }
  0xba   :  { %v188_v19 = vpop.f32.mrf.mxu3  ;;  %288 = vst.msk [vmem:[#allocation4 + $0x90] sm:$0xf] %vm275_vm4, %v1041_v9  ;;  %v432_v33 = vpack.c.bf16 %v416_v26, %v416_v26  ;;  %v303_v39 = vld [vmem:[#allocation2 + $0x69] sm:$0xff]  ;;  %v294_v40 = vld [vmem:[#allocation2 + $0x11] sm:$0xff]  ;;  %v808_v58 = vpack.c.bf16 %v792_v51, %v792_v51 }
  0xbb   :  { %455 = vrot.lane.b32.xlu2 %v422_v14, %s5191_s20  ;;  %v189_v20 = vadd.f32 %v5269_v17, %v188_v19  ;;  %279 = vst.msk [vmem:[#allocation4 + $0x24] sm:$0xf] %vm275_vm4, %v1032_v13  ;;  %v5350_v45 = vpack.c.bf16 %v303_v39, %v303_v39  ;;  %v5352_v46 = vpack.c.bf16 %v294_v40, %v294_v40  ;;  %v904_v52 = vld [vmem:[#allocation2 + $0x17] sm:$0xff]  ;;  %v529_v54 = vld [vmem:[#allocation2 + $0x6f] sm:$0xff] }
  0xbc   :  { %839 = vrot.lane.b32.xlu1 %v807_v15, %s5191_s20  ;;  %v165_v21 = vpop.f32.mrf.mxu0  ;;  %665 = vst.msk [vmem:[#allocation4 + $0x1c] sm:$0xf] %vm275_vm4, %v1032_v13  ;;  %v920_v59 = vpack.c.bf16 %v904_v52, %v904_v52  ;;  %v5367_v62 = vpack.c.bf16 %v529_v54, %v529_v54  ;;  %v407_v3 = vld [vmem:[#allocation2 + $0x12] sm:$0xff] }
  0xbd   :  { %342 = vrot.lane.b32.xlu0 %v309_v18, %s5193_s16  ;;  %v166_v23 = vadd.f32 %v5269_v17, %v165_v21  ;;  %v207_v24 = vmax.f32 %v189_v20, 0.0  ;;  %1048 = vst.msk [vmem:[#allocation4 + $0x14] sm:$0xf] %vm275_vm4, %v1032_v13  ;;  %v423_v8 = vpack.c.bf16 %v407_v3, %v407_v3  ;;  %v4992_v51 = vld [vmem:[#allocation5 + $0x38] sm:$0xff] }
  0xbe   :  { %v1026_v25 = vld [vmem:[#allocation2 + $0x78] sm:$0xff]  ;;  %1057 = vst.msk [vmem:[#allocation4 + $0x80] sm:$0xf] %vm275_vm4, %v1041_v9  ;;  %1420 = vmatpush.bf16.msra.mxu1 %v4992_v51  ;;  %5109 = vmatpush.bf16.msrb.mxu3 %v4992_v51 }
  0xbf   :  { %v1042_v27 = vpack.c.bf16 %v1026_v25, %v1026_v25  ;;  %v198_v28 = vmax.f32 %v166_v23, 0.0  ;;  %224 = vst.msk [vmem:[#allocation2 + $0x80] sm:$0xff] %vm209_vm3, %v207_v24  ;;  %v643_v31 = vld [vmem:[#allocation2 + $0x78] sm:$0xff]  ;;  %5108 = vmatpush.bf16.msra.mxu2 %v4992_v51 }
  0xc0   :  { %v1017_v30 = vld [vmem:[#allocation2 + $0x20] sm:$0xff]  ;;  %674 = vst.msk [vmem:[#allocation4 + $0x88] sm:$0xf] %vm275_vm4, %v658_v22  ;;  %v659_v35 = vpack.c.bf16 %v643_v31, %v643_v31  ;;  %v417_v1 = vld [vmem:[#allocation2 + $0x72] sm:$0xff] }
  0xc1   :  { %v1033_v32 = vpack.c.bf16 %v1017_v30, %v1017_v30  ;;  %215 = vst.msk [vmem:[#allocation2 + $0x28] sm:$0xff] %vm209_vm3, %v198_v28  ;;  %v433_v6 = vpack.c.bf16 %v417_v1, %v417_v1  ;;  %v408_v12 = vld [vmem:[#allocation2 + $0x1a] sm:$0xff]  ;;  %v304_v23 = vld [vmem:[#allocation2 + $0x71] sm:$0xff]  ;;  %v654_v30 = vpack.c.bf16 %v638_v29, %v638_v29 }
  0xc2   :  { %289 = vst.msk [vmem:[#allocation4 + $0x9c] sm:$0xf] %vm275_vm4, %v1042_v27  ;;  %v190_v48 = vpop.f32.mrf.mxu3  ;;  %v530_v13 = vld [vmem:[#allocation2 + $0x77] sm:$0xff]  ;;  %v424_v19 = vpack.c.bf16 %v408_v12, %v408_v12  ;;  %v5394_v26 = vpack.c.bf16 %v304_v23, %v304_v23  ;;  %v4989_v1 = vld [vmem:[#allocation5 + $0x20] sm:$0xff] }
  0xc3   :  { %727 = vrot.lane.b32.xlu2 %v309_v18, %s5193_s16  ;;  %280 = vst.msk [vmem:[#allocation4 + $0x30] sm:$0xf] %vm275_vm4, %v1033_v32  ;;  %v191_v50 = vadd.f32 %v5269_v17, %v190_v48  ;;  %v5385_v20 = vpack.c.bf16 %v530_v13, %v530_v13  ;;  %v295_v22 = vld [vmem:[#allocation2 + $0x19] sm:$0xff] }
  0xc4   :  { %475 = vrot.lane.b32.xlu1 %v432_v33, %s5191_s20  ;;  %v168_v36 = vpop.f32.mrf.mxu0  ;;  %666 = vst.msk [vmem:[#allocation4 + $0x28] sm:$0xf] %vm275_vm4, %v1033_v32  ;;  %v311_v25 = vpack.c.bf16 %v295_v22, %v295_v22 }
  0xc5   :  { %951 = vrot.lane.b32.xlu0 %v919_v34, %s5195_s0  ;;  %v169_v37 = vadd.f32 %v5269_v17, %v168_v36  ;;  %1049 = vst.msk [vmem:[#allocation4 + $0x20] sm:$0xf] %vm275_vm4, %v1033_v32  ;;  %v208_v55 = vmax.f32 %v191_v50, 0.0 }
  0xc6   :  { %v1027_v38 = vld [vmem:[#allocation2 + $0x80] sm:$0xff]  ;;  %1058 = vst.msk [vmem:[#allocation4 + $0x8c] sm:$0xf] %vm275_vm4, %v1042_v27 }
  0xc7   :  { %v1043_v41 = vpack.c.bf16 %v1027_v38, %v1027_v38  ;;  %v199_v42 = vmax.f32 %v169_v37, 0.0  ;;  %675 = vst.msk [vmem:[#allocation4 + $0x94] sm:$0xf] %vm275_vm4, %v659_v35  ;;  %v644_v15 = vld [vmem:[#allocation2 + $0x80] sm:$0xff] }
  0xc8   :  { %v1018_v43 = vld [vmem:[#allocation2 + $0x28] sm:$0xff]  ;;  %225 = vst.msk [vmem:[#allocation2 + $0x88] sm:$0xff] %vm209_vm3, %v208_v55  ;;  %v660_v16 = vpack.c.bf16 %v644_v15, %v644_v15  ;;  %v793_v27 = vld [vmem:[#allocation2 + $0x1e] sm:$0xff] }
  0xc9   :  { %v1034_v44 = vpack.c.bf16 %v1018_v43, %v1018_v43  ;;  %216 = vst.msk [vmem:[#allocation2 + $0x30] sm:$0xff] %vm209_vm3, %v199_v42  ;;  %v809_v28 = vpack.c.bf16 %v793_v27, %v793_v27  ;;  %v531_v31 = vld [vmem:[#allocation2 + $0x7f] sm:$0xff]  ;;  %v522_v40 = vld [vmem:[#allocation2 + $0x27] sm:$0xff] }
  0xca   :  { %290 = vst.msk [vmem:[#allocation4 + $0xa8] sm:$0xf] %vm275_vm4, %v1043_v41  ;;  %v305_v32 = vld [vmem:[#allocation2 + $0x79] sm:$0xff]  ;;  %v5405_v35 = vpack.c.bf16 %v531_v31, %v531_v31  ;;  %v296_v38 = vld [vmem:[#allocation2 + $0x21] sm:$0xff]  ;;  %v538_v43 = vpack.c.bf16 %v522_v40, %v522_v40 }
  0xcb   :  { %362 = vrot.lane.b32.xlu2 %v5350_v45, %s5193_s16  ;;  %281 = vst.msk [vmem:[#allocation4 + $0x3c] sm:$0xf] %vm275_vm4, %v1034_v44  ;;  %v418_v33 = vld [vmem:[#allocation2 + $0x7a] sm:$0xff]  ;;  %v5407_v36 = vpack.c.bf16 %v305_v32, %v305_v32  ;;  %v409_v39 = vld [vmem:[#allocation2 + $0x22] sm:$0xff] }
  0xcc   :  { %344 = vrot.lane.b32.xlu1 %v5352_v46, %s5193_s16  ;;  %v170_v47 = vpop.f32.mrf.mxu0  ;;  %667 = vst.msk [vmem:[#allocation4 + $0x34] sm:$0xf] %vm275_vm4, %v1034_v44  ;;  %v434_v37 = vpack.c.bf16 %v418_v33, %v418_v33  ;;  %v425_v42 = vpack.c.bf16 %v409_v39, %v409_v39  ;;  %v794_v50 = vld [vmem:[#allocation2 + $0x26] sm:$0xff] }
  0xcd   :  { %568 = vrot.lane.b32.xlu0 %v919_v34, %s5195_s0  ;;  %v171_v49 = vadd.f32 %v5269_v17, %v170_v47  ;;  %1050 = vst.msk [vmem:[#allocation4 + $0x2c] sm:$0xf] %vm275_vm4, %v1034_v44  ;;  %v742_v34 = vpop.permute.xlu1 %741  ;;  %v810_v52 = vpack.c.bf16 %v794_v50, %v794_v50 }
  0xce   :  { %1059 = vst.msk [vmem:[#allocation4 + $0x98] sm:$0xf] %vm275_vm4, %v1043_v41  ;;  %v312_v41 = vpack.c.bf16 %v296_v38, %v296_v38 }
  0xcf   :  { %v200_v53 = vmax.f32 %v171_v49, 0.0  ;;  %v1028_v7 = vld [vmem:[#allocation2 + $0x88] sm:$0xff]  ;;  %676 = vst.msk [vmem:[#allocation4 + $0xa0] sm:$0xf] %vm275_vm4, %v660_v16 }
  0xd0   :  { %v1019_v56 = vld [vmem:[#allocation2 + $0x30] sm:$0xff]  ;;  %v1044_v9 = vpack.c.bf16 %v1028_v7, %v1028_v7  ;;  %v645_v18 = vld [vmem:[#allocation2 + $0x88] sm:$0xff]  ;;  %670 = vst.msk [vmem:[#allocation4 + $0x58] sm:$0xf] %vm275_vm4, %v654_v30 }
  0xd1   :  { %v1035_v57 = vpack.c.bf16 %v1019_v56, %v1019_v56  ;;  %217 = vst.msk [vmem:[#allocation2 + $0x38] sm:$0xff] %vm209_vm3, %v200_v53  ;;  %v661_v21 = vpack.c.bf16 %v645_v18, %v645_v18  ;;  %v249_v44 = vld [vmem:[#allocation2 + $0x30] sm:$0xff]  ;;  %v306_v55 = vld [vmem:[#allocation2 + $0x81] sm:$0xff] }
  0xd2   :  { %291 = vst.msk [vmem:[#allocation4 + $0xb4] sm:$0xf] %vm275_vm4, %v1044_v9  ;;  %v265_v48 = vpack.c.bf16 %v249_v44, %v249_v44  ;;  %v4991_v53 = vld [vmem:[#allocation5 + $0x30] sm:$0xff]  ;;  %v419_v56 = vld [vmem:[#allocation2 + $0x82] sm:$0xff] }
  0xd3   :  { %841 = vrot.lane.b32.xlu2 %v808_v58, %s5191_s20  ;;  %1051 = vst.msk [vmem:[#allocation4 + $0x38] sm:$0xf] %vm275_vm4, %v1035_v57  ;;  %1421 = vmatpush.bf16.msra.mxu1 %v4991_v53  ;;  %v307_v57 = vld [vmem:[#allocation2 + $0x89] sm:$0xff] }
  0xd4   :  { %953 = vrot.lane.b32.xlu1 %v920_v59, %s5195_s0  ;;  %v173_v63 = vpop.f32.mrf.mxu0  ;;  %1060 = vst.msk [vmem:[#allocation4 + $0xa4] sm:$0xf] %vm275_vm4, %v1044_v9  ;;  %5111 = vmatpush.bf16.msrb.mxu3 %v4991_v53  ;;  %v4990_v58 = vld [vmem:[#allocation5 + $0x28] sm:$0xff] }
  0xd5   :  { %588 = vrot.lane.b32.xlu0 %v5367_v62, %s5195_s0  ;;  %v174_v0 = vadd.f32 %v5269_v17, %v173_v63  ;;  %677 = vst.msk [vmem:[#allocation4 + $0xac] sm:$0xf] %vm275_vm4, %v661_v21  ;;  %5110 = vmatpush.bf16.msra.mxu2 %v4991_v53  ;;  %v435_v63 = vpack.c.bf16 %v419_v56, %v419_v56  ;;  %v420_v3 = vld [vmem:[#allocation2 + $0x8a] sm:$0xff]  ;;  %v4985_v21 = vld [vmem:[#allocation5] sm:$0xff] }
  0xd6   :  { %782 = vst.msk [vmem:[#allocation4 + $0x58] sm:$0xf] %vm388_vm5, %v742_v34  ;;  %v436_v7 = vpack.c.bf16 %v420_v3, %v420_v3  ;;  %v523_v15 = vld [vmem:[#allocation2 + $0x2f] sm:$0xff] }
  0xd7   :  { %v201_v2 = vmax.f32 %v174_v0, 0.0  ;;  %282 = vst.msk [vmem:[#allocation4 + $0x48] sm:$0xf] %vm275_vm4, %v265_v48  ;;  %v5430_v0 = vpack.c.bf16 %v307_v57, %v307_v57  ;;  %1422 = vmatpush.bf16.msra.mxu1 %v4990_v58  ;;  %v4986_v16 = vld [vmem:[#allocation5 + $0x8] sm:$0xff] }
  0xd8   :  { %v1020_v4 = vld [vmem:[#allocation2 + $0x38] sm:$0xff]  ;;  %668 = vst.msk [vmem:[#allocation4 + $0x40] sm:$0xf] %vm275_vm4, %v265_v48  ;;  %5113 = vmatpush.bf16.msrb.mxu3 %v4990_v58 }
  0xd9   :  { %v1036_v5 = vpack.c.bf16 %v1020_v4, %v1020_v4  ;;  %218 = vst.msk [vmem:[#allocation2 + $0x50] sm:$0xff] %vm209_vm3, %v201_v2  ;;  %5112 = vmatpush.bf16.msra.mxu2 %v4990_v58  ;;  %v533_v4 = vld [vmem:[#allocation2 + $0x8f] sm:$0xff]  ;;  %v299_v38 = vld [vmem:[#allocation2 + $0x39] sm:$0xff] }
  0xda   :  { %v411_v40 = vld [vmem:[#allocation2 + $0x32] sm:$0xff]  ;;  %v525_v50 = vld [vmem:[#allocation2 + $0x3f] sm:$0xff] }
  0xdb   :  { %477 = vrot.lane.b32.xlu2 %v433_v6, %s5191_s20  ;;  %1052 = vst.msk [vmem:[#allocation4 + $0x44] sm:$0xf] %vm275_vm4, %v1036_v5  ;;  %1423 = vmatpush.bf16.msra.mxu1 %v4989_v1  ;;  %v532_v5 = vld [vmem:[#allocation2 + $0x87] sm:$0xff]  ;;  %v4988_v6 = vld [vmem:[#allocation5 + $0x18] sm:$0xff]  ;;  %v541_v53 = vpack.c.bf16 %v525_v50, %v525_v50  ;;  %v5007_v50 = vld [vmem:[#allocation5 + $0xb0] sm:$0xff] }
  0xdc   :  { %570 = vrot.lane.b32.xlu1 %v920_v59, %s5195_s0  ;;  %v175_v10 = vpop.f32.mrf.mxu0  ;;  %v5428_v59 = vpack.c.bf16 %v306_v55, %v306_v55  ;;  %5115 = vmatpush.bf16.msrb.mxu3 %v4989_v1  ;;  %v5441_v9 = vpack.c.bf16 %v532_v5, %v532_v5  ;;  %v524_v48 = vld [vmem:[#allocation2 + $0x37] sm:$0xff] }
  0xdd   :  { %457 = vrot.lane.b32.xlu0 %v423_v8, %s5191_s20  ;;  %v176_v11 = vadd.f32 %v5269_v17, %v175_v10  ;;  %v905_v17 = vld [vmem:[#allocation2 + $0x1f] sm:$0xff]  ;;  %5114 = vmatpush.bf16.msra.mxu2 %v4989_v1  ;;  %v5439_v8 = vpack.c.bf16 %v533_v4, %v533_v4  ;;  %v4987_v10 = vld [vmem:[#allocation5 + $0x10] sm:$0xff]  ;;  %v540_v51 = vpack.c.bf16 %v524_v48, %v524_v48 }
  0xde   :  { %v921_v24 = vpack.c.bf16 %v905_v17, %v905_v17  ;;  %v796_v57 = vld [vmem:[#allocation2 + $0x36] sm:$0xff] }
  0xdf   :  { %v202_v14 = vmax.f32 %v176_v11, 0.0  ;;  %1424 = vmatpush.bf16.msra.mxu1 %v4988_v6  ;;  %v812_v58 = vpack.c.bf16 %v796_v57, %v796_v57  ;;  %v802_v57 = vld [vmem:[#allocation2 + $0x76] sm:$0xff] }
  0xe0   :  { %5117 = vmatpush.bf16.msrb.mxu3 %v4988_v6  ;;  %v251_v29 = vld [vmem:[#allocation2 + $0x50] sm:$0xff] }
  0xe1   :  { %219 = vst.msk [vmem:[#allocation2 + $0x58] sm:$0xff] %vm209_vm3, %v202_v14  ;;  %5116 = vmatpush.bf16.msra.mxu2 %v4988_v6  ;;  %v297_v14 = vld [vmem:[#allocation2 + $0x29] sm:$0xff]  ;;  %v267_v32 = vpack.c.bf16 %v251_v29, %v251_v29 }
  0xe2   :  { %v313_v18 = vpack.c.bf16 %v297_v14, %v297_v14 }
  0xe3   :  { %459 = vrot.lane.b32.xlu2 %v424_v19, %s5191_s20  ;;  %1425 = vmatpush.bf16.msra.mxu1 %v4987_v10  ;;  %v539_v19 = vpack.c.bf16 %v523_v15, %v523_v15  ;;  %284 = vst.msk [vmem:[#allocation4 + $0x60] sm:$0xf] %vm275_vm4, %v267_v32 }
  0xe4   :  { %590 = vrot.lane.b32.xlu1 %v5385_v20, %s5195_s0  ;;  %5119 = vmatpush.bf16.msrb.mxu3 %v4987_v10 }
  0xe5   :  { %729 = vrot.lane.b32.xlu0 %v5352_v46, %s5193_s16  ;;  %v250_v46 = vld [vmem:[#allocation2 + $0x38] sm:$0xff]  ;;  %5118 = vmatpush.bf16.msra.mxu2 %v4987_v10 }
  0xe6   :  { %v266_v49 = vpack.c.bf16 %v250_v46, %v250_v46 }
  0xe7   :  { %1426 = vmatpush.bf16.msra.mxu1 %v4986_v16 }
  0xe8   :  { %283 = vst.msk [vmem:[#allocation4 + $0x54] sm:$0xf] %vm275_vm4, %v266_v49  ;;  %5121 = vmatpush.bf16.msrb.mxu3 %v4986_v16  ;;  %v252_v33 = vld [vmem:[#allocation2 + $0x58] sm:$0xff] }
  0xe9   :  { %669 = vst.msk [vmem:[#allocation4 + $0x4c] sm:$0xf] %vm275_vm4, %v266_v49  ;;  %5120 = vmatpush.bf16.msra.mxu2 %v4986_v16  ;;  %v268_v39 = vpack.c.bf16 %v252_v33, %v252_v33  ;;  %v412_v49 = vld [vmem:[#allocation2 + $0x3a] sm:$0xff]  ;;  %v413_v1 = vld [vmem:[#allocation2 + $0x52] sm:$0xff] }
  0xea   :  { %v414_v15 = vld [vmem:[#allocation2 + $0x5a] sm:$0xff] }
  0xeb   :  { %955 = vrot.lane.b32.xlu2 %v921_v24, %s5195_s0  ;;  %1427 = vmatpush.bf16.msra.mxu1 %v4985_v21  ;;  %285 = vst.msk [vmem:[#allocation4 + $0x6c] sm:$0xf] %vm275_vm4, %v268_v39  ;;  %v527_v16 = vld [vmem:[#allocation2 + $0x5f] sm:$0xff] }
  0xec   :  { %346 = vrot.lane.b32.xlu1 %v311_v25, %s5193_s16  ;;  %5123 = vmatpush.bf16.msrb.mxu3 %v4985_v21  ;;  %671 = vst.msk [vmem:[#allocation4 + $0x64] sm:$0xf] %vm275_vm4, %v268_v39 }
  0xed   :  { %364 = vrot.lane.b32.xlu0 %v5394_v26, %s5193_s16  ;;  %5122 = vmatpush.bf16.msra.mxu2 %v4985_v21  ;;  %v5496_v21 = vpack.c.bf16 %v527_v16, %v527_v16 }
  0xf3   :  { %572 = vrot.lane.b32.xlu2 %v921_v24, %s5195_s0  ;;  %v410_v24 = vld [vmem:[#allocation2 + $0x2a] sm:$0xff] }
  0xf4   :  { %731 = vrot.lane.b32.xlu1 %v311_v25, %s5193_s16  ;;  %v298_v25 = vld [vmem:[#allocation2 + $0x31] sm:$0xff]  ;;  %v426_v27 = vpack.c.bf16 %v410_v24, %v410_v24 }
  0xf5   :  { %843 = vrot.lane.b32.xlu0 %v809_v28, %s5191_s20  ;;  %v314_v28 = vpack.c.bf16 %v298_v25, %v298_v25  ;;  %v797_v25 = vld [vmem:[#allocation2 + $0x3e] sm:$0xff] }
  0xfb   :  { %592 = vrot.lane.b32.xlu2 %v5405_v35, %s5195_s0 }
  0xfc   :  { %366 = vrot.lane.b32.xlu1 %v5407_v36, %s5193_s16 }
  0xfd   :  { %479 = vrot.lane.b32.xlu0 %v434_v37, %s5191_s20  ;;  %v795_v37 = vld [vmem:[#allocation2 + $0x2e] sm:$0xff] }
 0x103   :  { %348 = vrot.lane.b32.xlu2 %v312_v41, %s5193_s16 }
 0x104   :  { %461 = vrot.lane.b32.xlu1 %v425_v42, %s5191_s20  ;;  %v315_v42 = vpack.c.bf16 %v299_v38, %v299_v38 }
 0x105   :  { %574 = vrot.lane.b32.xlu0 %v538_v43, %s5195_s0  ;;  %v5417_v47 = vpop.permute.xlu2 %566 }
 0x10b   :  { %733 = vrot.lane.b32.xlu2 %v312_v41, %s5193_s16  ;;  %v811_v41 = vpack.c.bf16 %v795_v37, %v795_v37 }
 0x10c   :  { %845 = vrot.lane.b32.xlu1 %v810_v52, %s5191_s20  ;;  %v428_v52 = vpack.c.bf16 %v412_v49, %v412_v49 }
 0x10d   :  { %957 = vrot.lane.b32.xlu0 %v538_v43, %s5195_s0  ;;  %v5426_v54 = vpop.permute.xlu2 %586  ;;  %v427_v43 = vpack.c.bf16 %v411_v40, %v411_v40 }
 0x113   :  { %368 = vrot.lane.b32.xlu2 %v5428_v59, %s5193_s16 }
 0x114   :  { %481 = vrot.lane.b32.xlu1 %v435_v63, %s5191_s20  ;;  %v300_v63 = vld [vmem:[#allocation2 + $0x51] sm:$0xff] }
 0x115   :  { %370 = vrot.lane.b32.xlu0 %v5430_v0, %s5193_s16  ;;  %v5437_v2 = vpop.permute.xlu2 %455  ;;  %v316_v10 = vpack.c.bf16 %v300_v63, %v300_v63 }
 0x11b   :  { %483 = vrot.lane.b32.xlu2 %v436_v7, %s5191_s20 }
 0x11c   :  { %596 = vrot.lane.b32.xlu1 %v5439_v8, %s5195_s0 }
 0x11d   :  { %594 = vrot.lane.b32.xlu0 %v5441_v9, %s5195_s0  ;;  %v728_v11 = vpop.permute.xlu2 %727 }
 0x11e   :  { %v454_v12 = vpop.permute.xlu1 %453  ;;  %775 = vst.msk [vmem:[#allocation4 + $0x4] sm:$0xf] %vm388_vm5, %v728_v11  ;;  %v429_v11 = vpack.c.bf16 %v413_v1, %v413_v1 }
 0x11f   :  { %v341_v13 = vpop.permute.xlu0 %340 }
 0x120   :  { %389 = vst.msk [vmem:[#allocation4] sm:$0xf] %vm388_vm5, %v341_v13 }
 0x121   :  { %502 = vst.msk [vmem:[#allocation4] sm:$0xf] %vm501_vm6, %v454_v12 }
 0x122   :  { %615 = vst.msk [vmem:[#allocation4] sm:$0xf] %vm614_vm7, %v5417_v47 }
 0x123   :  { %350 = vrot.lane.b32.xlu2 %v313_v18, %s5193_s16 }
 0x124   :  { %576 = vrot.lane.b32.xlu1 %v539_v19, %s5195_s0 }
 0x125   :  { %735 = vrot.lane.b32.xlu0 %v313_v18, %s5193_s16  ;;  %v363_v17 = vpop.permute.xlu2 %362  ;;  %v301_v18 = vld [vmem:[#allocation2 + $0x59] sm:$0xff] }
 0x126   :  { %v361_v22 = vpop.permute.xlu1 %360  ;;  %400 = vst.msk [vmem:[#allocation4 + $0x84] sm:$0xf] %vm388_vm5, %v363_v17  ;;  %v5498_v17 = vpack.c.bf16 %v301_v18, %v301_v18  ;;  %v799_v18 = vld [vmem:[#allocation2 + $0x5e] sm:$0xff] }
 0x127   :  { %v474_v23 = vpop.permute.xlu0 %473  ;;  %399 = vst.msk [vmem:[#allocation4 + $0x78] sm:$0xf] %vm388_vm5, %v361_v22 }
 0x128   :  { %512 = vst.msk [vmem:[#allocation4 + $0x78] sm:$0xf] %vm501_vm6, %v474_v23 }
 0x129   :  { %625 = vst.msk [vmem:[#allocation4 + $0x78] sm:$0xf] %vm614_vm7, %v5426_v54  ;;  %v4375_v5 = vld [vmem:[#allocation4] sm:$0xf] }
 0x12b   :  { %463 = vrot.lane.b32.xlu2 %v426_v27, %s5191_s20  ;;  %v526_v27 = vld [vmem:[#allocation2 + $0x57] sm:$0xff] }
 0x12c   :  { %959 = vrot.lane.b32.xlu1 %v539_v19, %s5195_s0  ;;  %v430_v19 = vpack.c.bf16 %v414_v15, %v414_v15  ;;  %v542_v29 = vpack.c.bf16 %v526_v27, %v526_v27  ;;  %v694_v15 = vld [vmem:[#allocation2 + $0x91] sm:$0xff] }
 0x12d   :  { %352 = vrot.lane.b32.xlu0 %v314_v28, %s5193_s16  ;;  %v5464_v30 = vpop.permute.xlu2 %841  ;;  %v805_v27 = vld [vmem:[#allocation2 + $0x8e] sm:$0xff] }
 0x12e   :  { %v840_v31 = vpop.permute.xlu1 %839 }
 0x12f   :  { %887 = vst.msk [vmem:[#allocation4 + $0x4] sm:$0xf] %vm501_vm6, %v840_v31  ;;  %v343_v34 = vpop.permute.xlu0 %342  ;;  %v910_v31 = vld [vmem:[#allocation2 + $0x47] sm:$0xff] }
 0x130   :  { %390 = vst.msk [vmem:[#allocation4 + $0xc] sm:$0xf] %vm388_vm5, %v343_v34  ;;  %v798_v34 = vld [vmem:[#allocation2 + $0x46] sm:$0xff] }
 0x131   :  { %503 = vst.msk [vmem:[#allocation4 + $0xc] sm:$0xf] %vm501_vm6, %v5437_v2  ;;  %v814_v38 = vpack.c.bf16 %v798_v34, %v798_v34 }
 0x133   :  { %847 = vrot.lane.b32.xlu2 %v811_v41, %s5191_s20 }
 0x134   :  { %354 = vrot.lane.b32.xlu1 %v315_v42, %s5193_s16 }
 0x135   :  { %465 = vrot.lane.b32.xlu0 %v427_v43, %s5191_s20  ;;  %v5476_v44 = vpop.permute.xlu2 %477 }
 0x136   :  { %v476_v46 = vpop.permute.xlu1 %475 }
 0x137   :  { %513 = vst.msk [vmem:[#allocation4 + $0x84] sm:$0xf] %vm501_vm6, %v476_v46  ;;  %v952_v47 = vpop.permute.xlu0 %951  ;;  %v5008_v46 = vld [vmem:[#allocation5 + $0xb8] sm:$0xff] }
 0x138   :  { %999 = vst.msk [vmem:[#allocation4 + $0x4] sm:$0xf] %vm614_vm7, %v952_v47  ;;  %1518 = vmatpush.bf16.msra.mxu3 %v5008_v46 }
 0x13b   :  { %578 = vrot.lane.b32.xlu2 %v540_v51, %s5195_s0 }
 0x13c   :  { %467 = vrot.lane.b32.xlu1 %v428_v52, %s5191_s20  ;;  %v801_v52 = vld [vmem:[#allocation2 + $0x6e] sm:$0xff]  ;;  %1519 = vmatpush.bf16.msra.mxu3 %v5007_v50  ;;  %v4997_v50 = vld [vmem:[#allocation5 + $0x60] sm:$0xff] }
 0x13d   :  { %580 = vrot.lane.b32.xlu0 %v541_v53, %s5195_s0  ;;  %v460_v54 = vpop.permute.xlu2 %459 }
 0x13e   :  { %v345_v55 = vpop.permute.xlu1 %344 }
 0x13f   :  { %391 = vst.msk [vmem:[#allocation4 + $0x18] sm:$0xf] %vm388_vm5, %v345_v55  ;;  %v569_v56 = vpop.permute.xlu0 %568  ;;  %v5005_v55 = vld [vmem:[#allocation5 + $0xa0] sm:$0xff] }
 0x140   :  { %616 = vst.msk [vmem:[#allocation4 + $0xc] sm:$0xf] %vm614_vm7, %v569_v56 }
 0x143   :  { %961 = vrot.lane.b32.xlu2 %v540_v51, %s5195_s0 }
 0x144   :  { %737 = vrot.lane.b32.xlu1 %v314_v28, %s5193_s16  ;;  %v813_v28 = vpack.c.bf16 %v797_v25, %v797_v25 }
 0x145   :  { %849 = vrot.lane.b32.xlu0 %v812_v58, %s5191_s20  ;;  %v5488_v2 = vpop.permute.xlu2 %955 }
 0x146   :  { %v954_v3 = vpop.permute.xlu1 %953 }
 0x147   :  { %v589_v4 = vpop.permute.xlu0 %588  ;;  %v4962_v6 = vld [vmem:[#allocation4 + $0x8] sm:$0xf0] }
 0x148   :  { %626 = vst.msk [vmem:[#allocation4 + $0x84] sm:$0xf] %vm614_vm7, %v589_v4  ;;  %v4376_v7 = vor.u32 %v4962_v6, %v4375_v5  ;;  %v5003_v4 = vld [vmem:[#allocation5 + $0x90] sm:$0xff]  ;;  %v803_v6 = vld [vmem:[#allocation2 + $0x7e] sm:$0xff] }
 0x14a   :  { %1428 = vmatmul.bf16.vlgmr.msra.gmra.mxu1 %v4376_v7  ;;  %v819_v7 = vpack.c.bf16 %v803_v6, %v803_v6 }
 0x14b   :  { %356 = vrot.lane.b32.xlu2 %v316_v10, %s5193_s16 }
 0x14c   :  { %469 = vrot.lane.b32.xlu1 %v429_v11, %s5191_s20  ;;  %v5001_v11 = vld [vmem:[#allocation5 + $0x80] sm:$0xff] }
 0x14d   :  { %739 = vrot.lane.b32.xlu0 %v315_v42, %s5193_s16  ;;  %v573_v12 = vpop.permute.xlu2 %572  ;;  %v800_v42 = vld [vmem:[#allocation2 + $0x66] sm:$0xff] }
 0x14e   :  { %v571_v13 = vpop.permute.xlu1 %570  ;;  %v816_v47 = vpack.c.bf16 %v800_v42, %v800_v42  ;;  %v4999_v42 = vld [vmem:[#allocation5 + $0x70] sm:$0xff] }
 0x14f   :  { %v458_v14 = vpop.permute.xlu0 %457 }
 0x150   :  { %504 = vst.msk [vmem:[#allocation4 + $0x18] sm:$0xf] %vm501_vm6, %v458_v14 }
 0x151   :  { %617 = vst.msk [vmem:[#allocation4 + $0x18] sm:$0xf] %vm614_vm7, %v571_v13  ;;  %v804_v13 = vld [vmem:[#allocation2 + $0x86] sm:$0xff] }
 0x152   :  { %v820_v14 = vpack.c.bf16 %v804_v13, %v804_v13  ;;  %v4969_v13 = vld [vmem:[#allocation4 + $0x40] sm:$0xf0] }
 0x153   :  { %471 = vrot.lane.b32.xlu2 %v430_v19, %s5191_s20  ;;  %v5569_v19 = vpack.c.bf16 %v694_v15, %v694_v15 }
 0x154   :  { %584 = vrot.lane.b32.xlu1 %v5496_v21, %s5195_s0 }
 0x155   :  { %358 = vrot.lane.b32.xlu0 %v5498_v17, %s5193_s16  ;;  %v593_v22 = vpop.permute.xlu2 %592 }
 0x156   :  { %v591_v23 = vpop.permute.xlu1 %590 }
 0x157   :  { %v730_v24 = vpop.permute.xlu0 %729 }
 0x158   :  { %776 = vst.msk [vmem:[#allocation4 + $0x10] sm:$0xf] %vm388_vm5, %v730_v24  ;;  %v4387_v43 = vld [vmem:[#allocation4 + $0x18] sm:$0xf] }
 0x159   :  { %888 = vst.msk [vmem:[#allocation4 + $0x10] sm:$0xf] %vm501_vm6, %v5464_v30  ;;  %v926_v30 = vpack.c.bf16 %v910_v31, %v910_v31  ;;  %v821_v31 = vpack.c.bf16 %v805_v27, %v805_v27 }
 0x15a   :  { %1000 = vst.msk [vmem:[#allocation4 + $0x10] sm:$0xf] %vm614_vm7, %v954_v3  ;;  %v818_v3 = vpack.c.bf16 %v802_v57, %v802_v57 }
 0x15b   :  { %851 = vrot.lane.b32.xlu2 %v813_v28, %s5191_s20 }
 0x15c   :  { %963 = vrot.lane.b32.xlu1 %v541_v53, %s5195_s0  ;;  %v5006_v53 = vld [vmem:[#allocation5 + $0xa8] sm:$0xff] }
 0x15d   :  { %582 = vrot.lane.b32.xlu0 %v542_v29, %s5195_s0  ;;  %v349_v32 = vpop.permute.xlu2 %348  ;;  %1520 = vmatpush.bf16.msra.mxu3 %v5006_v53  ;;  %v5000_v29 = vld [vmem:[#allocation5 + $0x78] sm:$0xff] }
 0x15e   :  { %v347_v33 = vpop.permute.xlu1 %346  ;;  %393 = vst.msk [vmem:[#allocation4 + $0x30] sm:$0xf] %vm388_vm5, %v349_v32  ;;  %1469 = vmatpush.bf16.msrb.mxu2 %v5000_v29 }
 0x15f   :  { %v365_v37 = vpop.permute.xlu0 %364  ;;  %392 = vst.msk [vmem:[#allocation4 + $0x24] sm:$0xf] %vm388_vm5, %v347_v33 }
 0x160   :  { %505 = vst.msk [vmem:[#allocation4 + $0x24] sm:$0xf] %vm501_vm6, %v460_v54 }
 0x161   :  { %618 = vst.msk [vmem:[#allocation4 + $0x24] sm:$0xf] %vm614_vm7, %v573_v12  ;;  %1521 = vmatpush.bf16.msra.mxu3 %v5005_v55  ;;  %v4966_v55 = vld [vmem:[#allocation4 + $0x28] sm:$0xf0] }
 0x162   :  { %401 = vst.msk [vmem:[#allocation4 + $0x90] sm:$0xf] %vm388_vm5, %v365_v37  ;;  %1470 = vmatpush.bf16.msrb.mxu2 %v4999_v42  ;;  %v4435_v42 = vld [vmem:[#allocation4 + $0x78] sm:$0xf] }
 0x163   :  { %514 = vst.msk [vmem:[#allocation4 + $0x90] sm:$0xf] %vm501_vm6, %v5476_v44  ;;  %965 = vrot.lane.b32.xlu2 %v926_v30, %s5195_s0  ;;  %v806_v30 = vld [vmem:[#allocation2 + $0x96] sm:$0xff] }
 0x164   :  { %745 = vrot.lane.b32.xlu1 %v5309_v61, %s5193_s16  ;;  %627 = vst.msk [vmem:[#allocation4 + $0x90] sm:$0xf] %vm614_vm7, %v591_v23 }
 0x165   :  { %853 = vrot.lane.b32.xlu0 %v814_v38, %s5191_s20  ;;  %v734_v39 = vpop.permute.xlu2 %733 }
 0x166   :  { %v732_v40 = vpop.permute.xlu1 %731  ;;  %778 = vst.msk [vmem:[#allocation4 + $0x28] sm:$0xf] %vm388_vm5, %v734_v39 }
 0x167   :  { %v844_v41 = vpop.permute.xlu0 %843  ;;  %777 = vst.msk [vmem:[#allocation4 + $0x1c] sm:$0xf] %vm388_vm5, %v732_v40 }
 0x168   :  { %889 = vst.msk [vmem:[#allocation4 + $0x1c] sm:$0xf] %vm501_vm6, %v844_v41  ;;  %v4965_v44 = vld [vmem:[#allocation4 + $0x20] sm:$0xf0]  ;;  %v822_v41 = vpack.c.bf16 %v806_v30, %v806_v30 }
 0x169   :  { %1001 = vst.msk [vmem:[#allocation4 + $0x1c] sm:$0xf] %vm614_vm7, %v5488_v2  ;;  %v4388_v61 = vor.u32 %v4965_v44, %v4387_v43  ;;  %v5004_v2 = vld [vmem:[#allocation5 + $0x98] sm:$0xff]  ;;  %v4977_v30 = vld [vmem:[#allocation4 + $0x80] sm:$0xf0] }
 0x16a   :  { %1522 = vmatpush.bf16.msra.mxu3 %v5004_v2 }
 0x16b   :  { %1433 = vmatmul.bf16.gmra.mxu1 %v4388_v61  ;;  %969 = vrot.lane.b32.xlu2 %v5307_v60, %s5195_s0  ;;  %v817_v60 = vpack.c.bf16 %v801_v52, %v801_v52  ;;  %v4447_v58 = vld [vmem:[#allocation4 + $0x90] sm:$0xf]  ;;  %v1022_v52 = vld [vmem:[#allocation2 + $0x48] sm:$0xff] }
 0x16c   :  { %749 = vrot.lane.b32.xlu1 %v5394_v26, %s5193_s16  ;;  %v5596_v53 = vpack.c.bf16 %v1022_v52, %v1022_v52  ;;  %v4961_v52 = vld [vmem:[#allocation4 + $0x4] sm:$0xf] }
 0x16d   :  { %857 = vrot.lane.b32.xlu0 %v816_v47, %s5191_s20  ;;  %v369_v48 = vpop.permute.xlu2 %368  ;;  %v4998_v47 = vld [vmem:[#allocation5 + $0x68] sm:$0xff] }
 0x16e   :  { %v367_v49 = vpop.permute.xlu1 %366  ;;  %403 = vst.msk [vmem:[#allocation4 + $0xa8] sm:$0xf] %vm388_vm5, %v369_v48  ;;  %1523 = vmatpush.bf16.msra.mxu3 %v5003_v4  ;;  %1471 = vmatpush.bf16.msrb.mxu2 %v4998_v47  ;;  %v4377_v47 = vld [vmem:[#allocation4 + $0xc] sm:$0xf0] }
 0x16f   :  { %v480_v51 = vpop.permute.xlu0 %479  ;;  %402 = vst.msk [vmem:[#allocation4 + $0x9c] sm:$0xf] %vm388_vm5, %v367_v49 }
 0x170   :  { %515 = vst.msk [vmem:[#allocation4 + $0x9c] sm:$0xf] %vm501_vm6, %v480_v51  ;;  %v1021_v51 = vld [vmem:[#allocation2 + $0x40] sm:$0xff] }
 0x171   :  { %628 = vst.msk [vmem:[#allocation4 + $0x9c] sm:$0xf] %vm614_vm7, %v593_v22  ;;  %v815_v22 = vpack.c.bf16 %v799_v18, %v799_v18 }
 0x172   :  { %1472 = vmatpush.bf16.msrb.mxu2 %v4997_v50  ;;  %1054 = vst.msk [vmem:[#allocation4 + $0x5c] sm:$0xf] %vm275_vm4, %v5596_v53 }
 0x173   :  { %859 = vrot.lane.b32.xlu2 %v817_v60, %s5191_s20  ;;  %v5594_v60 = vpack.c.bf16 %v1021_v51, %v1021_v51 }
 0x174   :  { %971 = vrot.lane.b32.xlu1 %v5367_v62, %s5195_s0 }
 0x175   :  { %747 = vrot.lane.b32.xlu0 %v5350_v45, %s5193_s16  ;;  %v484_v26 = vpop.permute.xlu2 %483  ;;  %1053 = vst.msk [vmem:[#allocation4 + $0x50] sm:$0xf] %vm275_vm4, %v5594_v60 }
 0x176   :  { %v462_v54 = vpop.permute.xlu1 %461 }
 0x177   :  { %506 = vst.msk [vmem:[#allocation4 + $0x30] sm:$0xf] %vm501_vm6, %v462_v54  ;;  %v575_v56 = vpop.permute.xlu0 %574  ;;  %v4395_v54 = vld [vmem:[#allocation4 + $0x20] sm:$0xf] }
 0x178   :  { %619 = vst.msk [vmem:[#allocation4 + $0x30] sm:$0xf] %vm614_vm7, %v575_v56  ;;  %v4980_v63 = vld [vmem:[#allocation4 + $0x98] sm:$0xf0] }
 0x179   :  { %v4448_v1 = vor.u32 %v4980_v63, %v4447_v58 }
 0x17b   :  { %1458 = vmatmul.bf16.vlgmr.msrb.gmra.mxu3 %v4448_v1  ;;  %973 = vrot.lane.b32.xlu2 %v5385_v20, %s5195_s0  ;;  %v5002_v20 = vld [vmem:[#allocation5 + $0x88] sm:$0xff]  ;;  %v4396_v1 = vor.u32 %v4966_v55, %v4395_v54 }
 0x17c   :  { %753 = vrot.lane.b32.xlu1 %v5428_v59, %s5193_s16  ;;  %1524 = vmatpush.bf16.msra.mxu3 %v5002_v20  ;;  %v4419_v6 = vld [vmem:[#allocation4 + $0x50] sm:$0xf] }
 0x17d   :  { %861 = vrot.lane.b32.xlu0 %v818_v3, %s5191_s20  ;;  %v351_v45 = vpop.permute.xlu2 %350  ;;  %v4996_v3 = vld [vmem:[#allocation5 + $0x58] sm:$0xff] }
 0x17e   :  { %v846_v62 = vpop.permute.xlu1 %845  ;;  %394 = vst.msk [vmem:[#allocation4 + $0x3c] sm:$0xf] %vm388_vm5, %v351_v45  ;;  %v2373_v45 = vld [vmem:[#allocation3 + $0x40] sm:$0xff]  ;;  %1473 = vmatpush.bf16.msrb.mxu2 %v4996_v3 }
 0x17f   :  { %v958_v5 = vpop.permute.xlu0 %957  ;;  %890 = vst.msk [vmem:[#allocation4 + $0x28] sm:$0xf] %vm501_vm6, %v846_v62  ;;  %v4399_v34 = vld [vmem:[#allocation4 + $0x30] sm:$0xf]  ;;  %v2374_v62 = vld [vmem:[#allocation3 + $0x48] sm:$0xff]  ;;  %v2389_v4 = vpack.c.bf16 %v2373_v45, %v2373_v45 }
 0x180   :  { %1002 = vst.msk [vmem:[#allocation4 + $0x28] sm:$0xf] %vm614_vm7, %v958_v5  ;;  %1525 = vmatpush.bf16.msra.mxu3 %v5001_v11  ;;  %v2390_v5 = vpack.c.bf16 %v2374_v62, %v2374_v62  ;;  %v4995_v11 = vld [vmem:[#allocation5 + $0x50] sm:$0xff]  ;;  %v4964_v45 = vld [vmem:[#allocation4 + $0x1c] sm:$0xf] }
 0x181   :  { %2405 = vst.msk [vmem:[#allocation4 + $0x50] sm:$0xf] %vm275_vm4, %v2389_v4 }
 0x182   :  { %1474 = vmatpush.bf16.msrb.mxu2 %v4995_v11 }
 0x183   :  { %863 = vrot.lane.b32.xlu2 %v819_v7, %s5191_s20  ;;  %v4972_v7 = vld [vmem:[#allocation4 + $0x58] sm:$0xf0] }
 0x184   :  { %975 = vrot.lane.b32.xlu1 %v5405_v35, %s5195_s0  ;;  %2406 = vst.msk [vmem:[#allocation4 + $0x5c] sm:$0xf] %vm275_vm4, %v2390_v5 }
 0x185   :  { %751 = vrot.lane.b32.xlu0 %v5407_v36, %s5193_s16  ;;  %v464_v59 = vpop.permute.xlu2 %463 }
 0x186   :  { %v482_v10 = vpop.permute.xlu1 %481  ;;  %507 = vst.msk [vmem:[#allocation4 + $0x3c] sm:$0xf] %vm501_vm6, %v464_v59 }
 0x187   :  { %v371_v12 = vpop.permute.xlu0 %370  ;;  %516 = vst.msk [vmem:[#allocation4 + $0xa8] sm:$0xf] %vm501_vm6, %v482_v10 }
 0x188   :  { %404 = vst.msk [vmem:[#allocation4 + $0xb4] sm:$0xf] %vm388_vm5, %v371_v12  ;;  %v4407_v12 = vld [vmem:[#allocation4 + $0x38] sm:$0xf] }
 0x189   :  { %517 = vst.msk [vmem:[#allocation4 + $0xb4] sm:$0xf] %vm501_vm6, %v484_v26  ;;  %v4408_v15 = vor.u32 %v4969_v13, %v4407_v12 }
 0x18b   :  { %977 = vrot.lane.b32.xlu2 %v5441_v9, %s5195_s0 }
 0x18c   :  { %967 = vrot.lane.b32.xlu1 %v5496_v21, %s5195_s0 }
 0x18d   :  { %865 = vrot.lane.b32.xlu0 %v820_v14, %s5191_s20  ;;  %v848_v35 = vpop.permute.xlu2 %847 }
 0x18e   :  { %v597_v36 = vpop.permute.xlu1 %596 }
 0x18f   :  { %630 = vst.msk [vmem:[#allocation4 + $0xb4] sm:$0xf] %vm614_vm7, %v597_v36  ;;  %v595_v16 = vpop.permute.xlu0 %594 }
 0x190   :  { %629 = vst.msk [vmem:[#allocation4 + $0xa8] sm:$0xf] %vm614_vm7, %v595_v16  ;;  %v4994_v16 = vld [vmem:[#allocation5 + $0x48] sm:$0xff] }
 0x191   :  { %1475 = vmatpush.bf16.msrb.mxu2 %v4994_v16 }
 0x193   :  { %855 = vrot.lane.b32.xlu2 %v815_v22, %s5191_s20 }
 0x194   :  { %757 = vrot.lane.b32.xlu1 %v5569_v19, %s5193_s16 }
 0x195   :  { %743 = vrot.lane.b32.xlu0 %v5498_v17, %s5193_s16  ;;  %v579_v9 = vpop.permute.xlu2 %578  ;;  %v918_v17 = vld [vmem:[#allocation2 + $0x97] sm:$0xff] }
 0x196   :  { %v577_v21 = vpop.permute.xlu1 %576  ;;  %v4983_v23 = vld [vmem:[#allocation4 + $0xb0] sm:$0xf0]  ;;  %v934_v40 = vpack.c.bf16 %v918_v17, %v918_v17 }
 0x197   :  { %620 = vst.msk [vmem:[#allocation4 + $0x3c] sm:$0xf] %vm614_vm7, %v577_v21  ;;  %v736_v24 = vpop.permute.xlu0 %735  ;;  %v4459_v25 = vld [vmem:[#allocation4 + $0xa8] sm:$0xf]  ;;  %v4993_v21 = vld [vmem:[#allocation5 + $0x40] sm:$0xff] }
 0x198   :  { %779 = vst.msk [vmem:[#allocation4 + $0x34] sm:$0xf] %vm388_vm5, %v736_v24  ;;  %v4460_v28 = vor.u32 %v4983_v23, %v4459_v25  ;;  %1476 = vmatpush.bf16.msrb.mxu2 %v4993_v21  ;;  %v4420_v24 = vor.u32 %v4972_v7, %v4419_v6 }
 0x199   :  { %891 = vst.msk [vmem:[#allocation4 + $0x34] sm:$0xf] %vm501_vm6, %v848_v35 }
 0x19a   :  { %1463 = vmatmul.bf16.gmra.mxu3 %v4460_v28 }
 0x19b   :  { %867 = vrot.lane.b32.xlu2 %v821_v31, %s5191_s20 }
 0x19c   :  { %979 = vrot.lane.b32.xlu1 %v5439_v8, %s5195_s0  ;;  %v4963_v8 = vld [vmem:[#allocation4 + $0x10] sm:$0xf0] }
 0x19d   :  { %755 = vrot.lane.b32.xlu0 %v5430_v0, %s5193_s16  ;;  %v962_v32 = vpop.permute.xlu2 %961  ;;  %v4383_v0 = vld [vmem:[#allocation4 + $0x8] sm:$0xf] }
 0x19e   :  { %v960_v33 = vpop.permute.xlu1 %959  ;;  %v4968_v37 = vld [vmem:[#allocation4 + $0x38] sm:$0xf0]  ;;  %v4384_v46 = vor.u32 %v4963_v8, %v4383_v0  ;;  %v4431_v0 = vld [vmem:[#allocation4 + $0x68] sm:$0xf]  ;;  %v4436_v8 = vor.u32 %v4977_v30, %v4435_v42 }
 0x19f   :  { %1003 = vst.msk [vmem:[#allocation4 + $0x34] sm:$0xf] %vm614_vm7, %v960_v33  ;;  %v353_v38 = vpop.permute.xlu0 %352  ;;  %v4400_v39 = vor.u32 %v4968_v37, %v4399_v34  ;;  %v646_v33 = vld [vmem:[#allocation2 + $0x90] sm:$0xff] }
 0x1a0   :  { %395 = vst.msk [vmem:[#allocation4 + $0x48] sm:$0xf] %vm388_vm5, %v353_v38  ;;  %v662_v37 = vpack.c.bf16 %v646_v33, %v646_v33  ;;  %v4975_v38 = vld [vmem:[#allocation4 + $0x70] sm:$0xf0]  ;;  %v2382_v33 = vld [vmem:[#allocation3 + $0x98] sm:$0xff] }
 0x1a1   :  { %1438 = vmatmul.bf16.vlgmr.msra.gmra.mxu2 %v4400_v39 }
 0x1a2   :  { %678 = vst.msk [vmem:[#allocation4 + $0xb8] sm:$0xf] %vm275_vm4, %v662_v37 }
 0x1a3   :  { %981 = vrot.lane.b32.xlu2 %v934_v40, %s5195_s0  ;;  %1061 = vst.msk [vmem:[#allocation4 + $0xb0] sm:$0xf] %vm275_vm4, %v662_v37  ;;  %v2398_v37 = vpack.c.bf16 %v2382_v33, %v2382_v33  ;;  %v5051_v33 = vld [vmem:[#allocation5 + $0x150] sm:$0xff] }
 0x1a5   :  { %869 = vrot.lane.b32.xlu0 %v822_v41, %s5191_s20  ;;  %v357_v43 = vpop.permute.xlu2 %356 }
 0x1a6   :  { %v355_v44 = vpop.permute.xlu1 %354  ;;  %397 = vst.msk [vmem:[#allocation4 + $0x60] sm:$0xf] %vm388_vm5, %v357_v43  ;;  %v4432_v43 = vor.u32 %v4975_v38, %v4431_v0  ;;  %v4967_v11 = vld [vmem:[#allocation4 + $0x34] sm:$0xf]  ;;  %v2038_v38 = vld [vmem:[#allocation3 + $0x41] sm:$0xff] }
 0x1a7   :  { %v466_v61 = vpop.permute.xlu0 %465  ;;  %396 = vst.msk [vmem:[#allocation4 + $0x54] sm:$0xf] %vm388_vm5, %v355_v44 }
 0x1a8   :  { %508 = vst.msk [vmem:[#allocation4 + $0x48] sm:$0xf] %vm501_vm6, %v466_v61 }
 0x1a9   :  { %621 = vst.msk [vmem:[#allocation4 + $0x48] sm:$0xf] %vm614_vm7, %v579_v9 }
 0x1aa   :  { %1526 = vmatmul.bf16.vlgmr.msra.gmra.mxu3 %v4384_v46 }
 0x1ad   :  { %v472_v26 = vpop.permute.xlu2 %471 }
 0x1ae   :  { %v468_v48 = vpop.permute.xlu1 %467 }
 0x1af   :  { %509 = vst.msk [vmem:[#allocation4 + $0x54] sm:$0xf] %vm501_vm6, %v468_v48  ;;  %v581_v49 = vpop.permute.xlu0 %580  ;;  %v4443_v48 = vld [vmem:[#allocation4 + $0x80] sm:$0xf] }
 0x1b0   :  { %622 = vst.msk [vmem:[#allocation4 + $0x54] sm:$0xf] %vm614_vm7, %v581_v49  ;;  %v4411_v58 = vld [vmem:[#allocation4 + $0x48] sm:$0xf]  ;;  %v4978_v49 = vld [vmem:[#allocation4 + $0x88] sm:$0xf0] }
 0x1b1   :  { %v4444_v54 = vor.u32 %v4978_v49, %v4443_v48  ;;  %v2046_v49 = vld [vmem:[#allocation3 + $0x91] sm:$0xff] }
 0x1b5   :  { %v852_v20 = vpop.permute.xlu2 %851 }
 0x1b6   :  { %v738_v56 = vpop.permute.xlu1 %737 }
 0x1b7   :  { %780 = vst.msk [vmem:[#allocation4 + $0x40] sm:$0xf] %vm388_vm5, %v738_v56  ;;  %v850_v57 = vpop.permute.xlu0 %849  ;;  %v4971_v63 = vld [vmem:[#allocation4 + $0x50] sm:$0xf0] }
 0x1b8   :  { %892 = vst.msk [vmem:[#allocation4 + $0x40] sm:$0xf] %vm501_vm6, %v850_v57  ;;  %v4412_v2 = vor.u32 %v4971_v63, %v4411_v58  ;;  %v4389_v63 = vld [vmem:[#allocation4 + $0x24] sm:$0xf0] }
 0x1b9   :  { %1004 = vst.msk [vmem:[#allocation4 + $0x40] sm:$0xf] %vm614_vm7, %v962_v32 }
 0x1ba   :  { %1531 = vmatmul.bf16.gmra.mxu3 %v4396_v1  ;;  %1443 = vmatmul.bf16.gmra.mxu2 %v4412_v2  ;;  %v4455_v1 = vld [vmem:[#allocation4 + $0x98] sm:$0xf]  ;;  %v4981_v2 = vld [vmem:[#allocation4 + $0xa0] sm:$0xf0] }
 0x1bb   :  { %v4456_v5 = vor.u32 %v4981_v2, %v4455_v1 }
 0x1bd   :  { %v966_v36 = vpop.permute.xlu2 %965 }
 0x1be   :  { %v470_v59 = vpop.permute.xlu1 %469 }
 0x1bf   :  { %510 = vst.msk [vmem:[#allocation4 + $0x60] sm:$0xf] %vm501_vm6, %v470_v59  ;;  %v740_v10 = vpop.permute.xlu0 %739 }
 0x1c0   :  { %781 = vst.msk [vmem:[#allocation4 + $0x4c] sm:$0xf] %vm388_vm5, %v740_v10  ;;  %v4401_v59 = vld [vmem:[#allocation4 + $0x3c] sm:$0xf0] }
 0x1c1   :  { %893 = vst.msk [vmem:[#allocation4 + $0x4c] sm:$0xf] %vm501_vm6, %v852_v20  ;;  %v4404_v13 = vor.u32 %v4967_v11, %v4401_v59  ;;  %v5688_v59 = vld [vmem:[%s6332_s3 + $0x1] ss:$0 sm:$0xff]  ;;  %v3615_v11 = vld [vmem:[#allocation2 + $0x47] sm:$0xff] }
 0x1c5   :  { %v970_v9 = vpop.permute.xlu2 %969 }
 0x1c6   :  { %v585_v14 = vpop.permute.xlu1 %584 }
 0x1c7   :  { %v359_v35 = vpop.permute.xlu0 %358 }
 0x1c8   :  { %398 = vst.msk [vmem:[#allocation4 + $0x6c] sm:$0xf] %vm388_vm5, %v359_v35 }
 0x1c9   :  { %511 = vst.msk [vmem:[#allocation4 + $0x6c] sm:$0xf] %vm501_vm6, %v472_v26  ;;  %v4380_v26 = vor.u32 %v4961_v52, %v4377_v47 }
 0x1ca   :  { %624 = vst.msk [vmem:[#allocation4 + $0x6c] sm:$0xf] %vm614_vm7, %v585_v14  ;;  %1536 = vmatmul.bf16.gmra.mxu3 %v4408_v15  ;;  %v1998_v14 = vld [vmem:[#allocation3 + $0x90] sm:$0xff] }
 0x1cb   :  { %v2014_v35 = vpack.c.bf16 %v1998_v14, %v1998_v14  ;;  %v5054_v14 = vld [vmem:[#allocation5 + $0x168] sm:$0xff] }
 0x1cd   :  { %v860_v31 = vpop.permute.xlu2 %859 }
 0x1ce   :  { %v964_v18 = vpop.permute.xlu1 %963 }
 0x1cf   :  { %1005 = vst.msk [vmem:[#allocation4 + $0x4c] sm:$0xf] %vm614_vm7, %v964_v18  ;;  %v583_v22 = vpop.permute.xlu0 %582 }
 0x1d0   :  { %623 = vst.msk [vmem:[#allocation4 + $0x60] sm:$0xf] %vm614_vm7, %v583_v22 }
 0x1d1   :  { %v4974_v28 = vld [vmem:[#allocation4 + $0x68] sm:$0xf0] }
 0x1d5   :  { %v974_v39 = vpop.permute.xlu2 %973 }
 0x1d6   :  { %v746_v23 = vpop.permute.xlu1 %745  ;;  %v4970_v15 = vld [vmem:[#allocation4 + $0x4c] sm:$0xf] }
 0x1d7   :  { %784 = vst.msk [vmem:[#allocation4 + $0x70] sm:$0xf] %vm388_vm5, %v746_v23  ;;  %v854_v25 = vpop.permute.xlu0 %853  ;;  %v4423_v27 = vld [vmem:[#allocation4 + $0x60] sm:$0xf] }
 0x1d8   :  { %894 = vst.msk [vmem:[#allocation4 + $0x58] sm:$0xf] %vm501_vm6, %v854_v25  ;;  %v4424_v29 = vor.u32 %v4974_v28, %v4423_v27  ;;  %v1030_v28 = vld [vmem:[#allocation2 + $0x98] sm:$0xff] }
 0x1d9   :  { %1006 = vst.msk [vmem:[#allocation4 + $0x58] sm:$0xf] %vm614_vm7, %v966_v36 }
 0x1da   :  { %1448 = vmatmul.bf16.gmra.mxu2 %v4424_v29  ;;  %1541 = vmatmul.bf16.gmra.mxu3 %v4420_v24  ;;  %v1046_v29 = vpack.c.bf16 %v1030_v28, %v1030_v28  ;;  %v5052_v28 = vld [vmem:[#allocation5 + $0x158] sm:$0xff] }
 0x1dc   :  { %1062 = vst.msk [vmem:[#allocation4 + $0xbc] sm:$0xf] %vm275_vm4, %v1046_v29 }
 0x1dd   :  { %v864_v46 = vpop.permute.xlu2 %863 }
 0x1de   :  { %v750_v17 = vpop.permute.xlu1 %749 }
 0x1df   :  { %v858_v32 = vpop.permute.xlu0 %857  ;;  %786 = vst.msk [vmem:[#allocation4 + $0x88] sm:$0xf] %vm388_vm5, %v750_v17 }
 0x1e0   :  { %896 = vst.msk [vmem:[#allocation4 + $0x70] sm:$0xf] %vm501_vm6, %v858_v32  ;;  %v5621_v34 = vld [vmem:[#allocation4 + $0x54] sm:$0xf0]  ;;  %v4467_v32 = vld [vmem:[#allocation4 + $0xb0] sm:$0xf] }
 0x1e1   :  { %1008 = vst.msk [vmem:[#allocation4 + $0x70] sm:$0xf] %vm614_vm7, %v970_v9  ;;  %v4416_v16 = vor.u32 %v4970_v15, %v5621_v34 }
 0x1e2   :  { %2022 = vst.msk [vmem:[#allocation4 + $0x58] sm:$0xf] %vm275_vm4, %v2389_v4  ;;  %v4392_v4 = vor.u32 %v4964_v45, %v4389_v63  ;;  %v3503_v45 = vld [vmem:[#allocation2 + $0x46] sm:$0xff] }
 0x1e3   :  { %2413 = vst.msk [vmem:[#allocation4 + $0xb0] sm:$0xf] %vm275_vm4, %v2014_v35 }
 0x1e5   :  { %v978_v55 = vpop.permute.xlu2 %977 }
 0x1e6   :  { %v972_v40 = vpop.permute.xlu1 %971 }
 0x1e7   :  { %v748_v41 = vpop.permute.xlu0 %747 }
 0x1e8   :  { %785 = vst.msk [vmem:[#allocation4 + $0x7c] sm:$0xf] %vm388_vm5, %v748_v41  ;;  %v4425_v22 = vld [vmem:[#allocation4 + $0x6c] sm:$0xf0] }
 0x1e9   :  { %897 = vst.msk [vmem:[#allocation4 + $0x7c] sm:$0xf] %vm501_vm6, %v860_v31 }
 0x1ea   :  { %1009 = vst.msk [vmem:[#allocation4 + $0x7c] sm:$0xf] %vm614_vm7, %v972_v40  ;;  %1453 = vmatmul.bf16.gmra.mxu2 %v4436_v8  ;;  %1546 = vmatmul.bf16.gmra.mxu3 %v4432_v43  ;;  %v2054_v40 = vpack.c.bf16 %v2038_v38, %v2038_v38  ;;  %v2262_v8 = vld [vmem:[#allocation3 + $0x47] sm:$0xff] }
 0x1ec   :  { %2093 = vrot.lane.b32.xlu0 %v2054_v40, %s5193_s16 }
 0x1ed   :  { %v856_v58 = vpop.permute.xlu2 %855 }
 0x1ee   :  { %v754_v44 = vpop.permute.xlu1 %753 }
 0x1ef   :  { %v862_v61 = vpop.permute.xlu0 %861  ;;  %788 = vst.msk [vmem:[#allocation4 + $0xa0] sm:$0xf] %vm388_vm5, %v754_v44 }
 0x1f0   :  { %898 = vst.msk [vmem:[#allocation4 + $0x88] sm:$0xf] %vm501_vm6, %v862_v61  ;;  %v2278_v61 = vpack.c.bf16 %v2262_v8, %v2262_v8 }
 0x1f1   :  { %1010 = vst.msk [vmem:[#allocation4 + $0x88] sm:$0xf] %vm614_vm7, %v974_v39  ;;  %v4976_v31 = vld [vmem:[#allocation4 + $0x7c] sm:$0xf] }
 0x1f2   :  { %v4984_v39 = vld [vmem:[#allocation4 + $0xb8] sm:$0xf0]  ;;  %2317 = vrot.lane.b32.xlu1 %v2278_v61, %s5195_s0 }
 0x1f3   :  { %v4468_v41 = vor.u32 %v4984_v39, %v4467_v32  ;;  %2414 = vst.msk [vmem:[#allocation4 + $0xbc] sm:$0xf] %vm275_vm4, %v2398_v37 }
 0x1f5   :  { %v868_v6 = vpop.permute.xlu2 %867 }
 0x1f6   :  { %v976_v50 = vpop.permute.xlu1 %975 }
 0x1f7   :  { %v752_v51 = vpop.permute.xlu0 %751 }
 0x1f8   :  { %787 = vst.msk [vmem:[#allocation4 + $0x94] sm:$0xf] %vm388_vm5, %v752_v51  ;;  %v4437_v27 = vld [vmem:[#allocation4 + $0x84] sm:$0xf0]  ;;  %v2158_v51 = vld [vmem:[#allocation3 + $0x96] sm:$0xff] }
 0x1f9   :  { %899 = vst.msk [vmem:[#allocation4 + $0x94] sm:$0xf] %vm501_vm6, %v864_v46  ;;  %v4440_v17 = vor.u32 %v4976_v31, %v4437_v27 }
 0x1fa   :  { %1011 = vst.msk [vmem:[#allocation4 + $0x94] sm:$0xf] %vm614_vm7, %v976_v50  ;;  %1477 = vmatmul.bf16.vlgmr.msrb.gmra.mxu2 %v4380_v26  ;;  %1551 = vmatmul.bf16.gmra.mxu3 %v4444_v54  ;;  %v2062_v50 = vpack.c.bf16 %v2046_v49, %v2046_v49  ;;  %v2174_v26 = vpack.c.bf16 %v2158_v51, %v2158_v51 }
 0x1fc   :  { %2109 = vrot.lane.b32.xlu1 %v2062_v50, %s5193_s16  ;;  %2221 = vrot.lane.b32.xlu0 %v2174_v26, %s5191_s20 }
 0x1fd   :  { %v982_v10 = vpop.permute.xlu2 %981 }
 0x1fe   :  { %v968_v56 = vpop.permute.xlu1 %967  ;;  %v5650_v23 = vpop.f32.mrf.mxu3 }
 0x1ff   :  { %v866_v57 = vpop.permute.xlu0 %865 }
 0x200   :  { %900 = vst.msk [vmem:[#allocation4 + $0xa0] sm:$0xf] %vm501_vm6, %v866_v57  ;;  %v3391_v57 = vld [vmem:[#allocation2 + $0x41] sm:$0xff] }
 0x201   :  { %1012 = vst.msk [vmem:[#allocation4 + $0xa0] sm:$0xf] %vm614_vm7, %v978_v55  ;;  %v4979_v44 = vld [vmem:[#allocation4 + $0x94] sm:$0xf]  ;;  %v3407_v63 = vpack.c.bf16 %v3391_v57, %v3391_v57 }
 0x204   :  { %3446 = vrot.lane.b32.xlu1 %v3407_v63, %s5193_s16 }
 0x206   :  { %v758_v3 = vpop.permute.xlu1 %757  ;;  %v5654_v25 = vpop.f32.mrf.mxu3 }
 0x207   :  { %790 = vst.msk [vmem:[#allocation4 + $0xb8] sm:$0xf] %vm388_vm5, %v758_v3  ;;  %v744_v62 = vpop.permute.xlu0 %743  ;;  %v2270_v3 = vld [vmem:[#allocation3 + $0x97] sm:$0xff] }
 0x208   :  { %783 = vst.msk [vmem:[#allocation4 + $0x64] sm:$0xf] %vm388_vm5, %v744_v62  ;;  %v4449_v0 = vld [vmem:[#allocation4 + $0x9c] sm:$0xf0]  ;;  %v2286_v62 = vpack.c.bf16 %v2270_v3, %v2270_v3 }
 0x209   :  { %895 = vst.msk [vmem:[#allocation4 + $0x64] sm:$0xf] %vm501_vm6, %v856_v58  ;;  %v4452_v46 = vor.u32 %v4979_v44, %v4449_v0  ;;  %v5050_v0 = vld [vmem:[#allocation5 + $0x148] sm:$0xff] }
 0x20a   :  { %1482 = vmatmul.bf16.gmra.mxu2 %v4392_v4  ;;  %1556 = vmatmul.bf16.gmra.mxu3 %v4456_v5  ;;  %1007 = vst.msk [vmem:[#allocation4 + $0x64] sm:$0xf] %vm614_vm7, %v968_v56  ;;  %v2150_v56 = vld [vmem:[#allocation3 + $0x46] sm:$0xff]  ;;  %v3519_v4 = vpack.c.bf16 %v3503_v45, %v3503_v45  ;;  %v1429_v5 = vpop.f32.mrf.mxu1 }
 0x20b   :  { %v2166_v58 = vpack.c.bf16 %v2150_v56, %v2150_v56 }
 0x20c   :  { %3462 = vrot.lane.b32.xlu1 %v5569_v19, %s5193_s16  ;;  %3558 = vrot.lane.b32.xlu0 %v3519_v4, %s5191_s20 }
 0x20d   :  { %2205 = vrot.lane.b32.xlu2 %v2166_v58, %s5191_s20 }
 0x20e   :  { %v980_v20 = vpop.permute.xlu1 %979 }
 0x20f   :  { %v756_v7 = vpop.permute.xlu0 %755 }
 0x210   :  { %789 = vst.msk [vmem:[#allocation4 + $0xac] sm:$0xf] %vm388_vm5, %v756_v7 }
 0x211   :  { %901 = vst.msk [vmem:[#allocation4 + $0xac] sm:$0xf] %vm501_vm6, %v868_v6  ;;  %v4973_v18 = vld [vmem:[#allocation4 + $0x64] sm:$0xf] }
 0x212   :  { %1013 = vst.msk [vmem:[#allocation4 + $0xac] sm:$0xf] %vm614_vm7, %v980_v20  ;;  %v4428_v9 = vor.u32 %v4973_v18, %v4425_v22  ;;  %v5056_v20 = vld [vmem:[#allocation5 + $0x178] sm:$0xff]  ;;  %v5053_v18 = vld [vmem:[#allocation5 + $0x160] sm:$0xff] }
 0x213   :  { %2871 = vmatpush.bf16.msra.mxu2 %v5056_v20 }
 0x215   :  { %2333 = vrot.lane.b32.xlu2 %v2286_v62, %s5195_s0 }
 0x217   :  { %v870_v12 = vpop.permute.xlu0 %869 }
 0x218   :  { %902 = vst.msk [vmem:[#allocation4 + $0xb8] sm:$0xf] %vm501_vm6, %v870_v12  ;;  %v3631_v12 = vpack.c.bf16 %v3615_v11, %v3615_v11 }
 0x219   :  { %1014 = vst.msk [vmem:[#allocation4 + $0xb8] sm:$0xf] %vm614_vm7, %v982_v10  ;;  %v4982_v54 = vld [vmem:[#allocation4 + $0xac] sm:$0xf]  ;;  %v5055_v10 = vld [vmem:[#allocation5 + $0x170] sm:$0xff] }
 0x21a   :  { %1487 = vmatmul.bf16.gmra.mxu2 %v4404_v13  ;;  %1561 = vmatmul.bf16.gmra.mxu3 %v4468_v41  ;;  %v1430_v13 = vadd.f32 %v5688_v59, %v1429_v5 }
 0x21b   :  { %2872 = vmatpush.bf16.msra.mxu2 %v5055_v10 }
 0x21d   :  { %v5660_v30 = vpop.f32.mrf.mxu3  ;;  %3670 = vrot.lane.b32.xlu2 %v3631_v12, %s5195_s0 }
 0x21f   :  { %2873 = vmatpush.bf16.msra.mxu2 %v5054_v14 }
 0x220   :  { %v4461_v36 = vld [vmem:[#allocation4 + $0xb4] sm:$0xf0] }
 0x221   :  { %2030 = vst.msk [vmem:[#allocation4 + $0xb8] sm:$0xf] %vm275_vm4, %v2014_v35  ;;  %v4464_v55 = vor.u32 %v4982_v54, %v4461_v36  ;;  %v1431_v36 = vpop.f32.mrf.mxu1 }
 0x223   :  { %2874 = vmatpush.bf16.msra.mxu2 %v5053_v18 }
 0x224   :  { %v5648_v21 = vpop.f32.mrf.mxu2 }
 0x225   :  { %v5666_v43 = vpop.f32.mrf.mxu3  ;;  %v1440_v62 = vadd.f32 %v5688_v59, %v5648_v21 }
 0x227   :  { %2875 = vmatpush.bf16.msra.mxu2 %v5052_v28 }
 0x229   :  { %v1434_v31 = vpop.f32.mrf.mxu1 }
 0x22a   :  { %1492 = vmatmul.bf16.gmra.mxu2 %v4416_v16  ;;  %v1435_v39 = vadd.f32 %v5688_v59, %v1434_v31 }
 0x22b   :  { %2876 = vmatpush.bf16.msra.mxu2 %v5051_v33 }
 0x22c   :  { %v5652_v24 = vpop.f32.mrf.mxu2 }
 0x22d   :  { %v1527_v48 = vpop.f32.mrf.mxu3  ;;  %v1442_v18 = vadd.f32 %v5688_v59, %v5652_v24 }
 0x22f   :  { %2877 = vmatpush.bf16.msra.mxu2 %v5050_v0 }
 0x231   :  { %v1436_v61 = vpop.f32.mrf.mxu1 }
 0x232   :  { %v1437_v26 = vadd.f32 %v5688_v59, %v1436_v61 }
 0x235   :  { %v1529_v1 = vpop.f32.mrf.mxu3 }
 0x23a   :  { %1497 = vmatmul.bf16.gmra.mxu2 %v4428_v9  ;;  %v1432_v9 = vadd.f32 %v5688_v59, %v1431_v36 }
 0x23d   :  { %v5657_v34 = vpop.f32.mrf.mxu2  ;;  %v1532_v6 = vpop.f32.mrf.mxu3 }
 0x245   :  { %v5664_v42 = vpop.f32.mrf.mxu2  ;;  %v1534_v15 = vpop.f32.mrf.mxu3 }
 0x24a   :  { %1502 = vmatmul.bf16.gmra.mxu2 %v4440_v17 }
 0x24d   :  { %v1537_v32 = vpop.f32.mrf.mxu3 }
 0x255   :  { %v1539_v49 = vpop.f32.mrf.mxu3 }
 0x25a   :  { %1507 = vmatmul.bf16.gmra.mxu2 %v4452_v46  ;;  %v5049_v46 = vld [vmem:[#allocation5 + $0x140] sm:$0xff] }
 0x25b   :  { %2878 = vmatpush.bf16.msra.mxu2 %v5049_v46 }
 0x25d   :  { %v5669_v47 = vpop.f32.mrf.mxu2 }
 0x265   :  { %v5672_v52 = vpop.f32.mrf.mxu2 }
 0x26a   :  { %1512 = vmatmul.bf16.gmra.mxu2 %v4464_v55 }
 0x26d   :  { %v5677_v2 = vpop.f32.mrf.mxu2 }
 0x275   :  { %v5682_v7 = vpop.f32.mrf.mxu2 }
 0x27d   :  { %v1478_v19 = vpop.f32.mrf.mxu2 }
 0x27e   :  { %v1479_v35 = vadd.f32 %v1478_v19, %v1430_v13  ;;  %v1542_v13 = vpop.f32.mrf.mxu3 }
 0x280   :  { %v1528_v16 = vadd.f32 %v1527_v48, %v1479_v35 }
 0x282   :  { %v1567_v22 = vmax.f32 %v1528_v16, 0.0 }
 0x284   :  { %1583 = vst.msk [vmem:[#allocation3] sm:$0xff] %vm209_vm3, %v1567_v22 }
 0x285   :  { %v1480_v27 = vpop.f32.mrf.mxu2 }
 0x286   :  { %v1481_v29 = vadd.f32 %v1480_v27, %v1432_v9  ;;  %v1544_v31 = vpop.f32.mrf.mxu3 }
 0x288   :  { %v1530_v17 = vadd.f32 %v1529_v1, %v1481_v29 }
 0x28a   :  { %v1568_v37 = vmax.f32 %v1530_v17, 0.0 }
 0x28b   :  { %v1599_v38 = vld [vmem:[#allocation3] sm:$0xff] }
 0x28c   :  { %1584 = vst.msk [vmem:[#allocation3 + $0x8] sm:$0xff] %vm209_vm3, %v1568_v37  ;;  %v1615_v40 = vpack.c.bf16 %v1599_v38, %v1599_v38  ;;  %v1445_v38 = vadd.f32 %v5688_v59, %v5657_v34 }
 0x28d   :  { %v1483_v41 = vpop.f32.mrf.mxu2 }
 0x28e   :  { %v1484_v8 = vadd.f32 %v1483_v41, %v1435_v39  ;;  %1631 = vst.msk [vmem:[#allocation4] sm:$0xf] %vm275_vm4, %v1615_v40 }
 0x290   :  { %v1533_v44 = vadd.f32 %v1532_v6, %v1484_v8 }
 0x292   :  { %v1569_v48 = vmax.f32 %v1533_v44, 0.0 }
 0x293   :  { %v1759_v50 = vld [vmem:[#allocation3 + $0x2] sm:$0xff] }
 0x294   :  { %v1647_v51 = vld [vmem:[#allocation3 + $0x1] sm:$0xff]  ;;  %1585 = vst.msk [vmem:[#allocation3 + $0x10] sm:$0xff] %vm209_vm3, %v1569_v48  ;;  %v1775_v54 = vpack.c.bf16 %v1759_v50, %v1759_v50  ;;  %v1547_v50 = vpop.f32.mrf.mxu3 }
 0x295   :  { %v1663_v55 = vpack.c.bf16 %v1647_v51, %v1647_v51  ;;  %v1983_v56 = vld [vmem:[#allocation3 + $0x8] sm:$0xff]  ;;  %v1485_v57 = vpop.f32.mrf.mxu2 }
 0x296   :  { %v1999_v58 = vpack.c.bf16 %v1983_v56, %v1983_v56  ;;  %v1486_v63 = vadd.f32 %v1485_v57, %v1437_v26  ;;  %1807 = vrot.lane.b32.xlu1 %v1775_v54, %s5191_s20  ;;  %v1871_v3 = vld [vmem:[#allocation3 + $0x7] sm:$0xff]  ;;  %v1447_v56 = vadd.f32 %v5688_v59, %v5664_v42 }
 0x297   :  { %1695 = vrot.lane.b32.xlu0 %v1663_v55, %s5193_s16  ;;  %v1887_v11 = vpack.c.bf16 %v1871_v3, %v1871_v3 }
 0x298   :  { %2015 = vst.msk [vmem:[#allocation4 + $0x4] sm:$0xf] %vm275_vm4, %v1999_v58  ;;  %v1535_v1 = vadd.f32 %v1534_v15, %v1486_v63 }
 0x299   :  { %1632 = vst.msk [vmem:[#allocation4 + $0xc] sm:$0xf] %vm275_vm4, %v1999_v58 }
 0x29a   :  { %v1570_v45 = vmax.f32 %v1535_v1, 0.0 }
 0x29b   :  { %v2367_v4 = vld [vmem:[#allocation3 + $0x10] sm:$0xff] }
 0x29c   :  { %v1760_v5 = vld [vmem:[#allocation3 + $0xa] sm:$0xff]  ;;  %v2383_v20 = vpack.c.bf16 %v2367_v4, %v2367_v4  ;;  %1586 = vst.msk [vmem:[#allocation3 + $0x18] sm:$0xff] %vm209_vm3, %v1570_v45 }
 0x29d   :  { %v2031_v6 = vld [vmem:[#allocation3 + $0x9] sm:$0xff]  ;;  %v1776_v10 = vpack.c.bf16 %v1760_v5, %v1760_v5  ;;  %v1488_v19 = vpop.f32.mrf.mxu2 }
 0x29e   :  { %v2047_v12 = vpack.c.bf16 %v2031_v6, %v2031_v6  ;;  %2399 = vst.msk [vmem:[#allocation4 + $0x8] sm:$0xf] %vm275_vm4, %v2383_v20  ;;  %v1489_v14 = vadd.f32 %v1488_v19, %v1440_v62  ;;  %1919 = vrot.lane.b32.xlu1 %v1887_v11, %s5195_s0  ;;  %v1872_v35 = vld [vmem:[#allocation3 + $0xf] sm:$0xff]  ;;  %v1450_v11 = vadd.f32 %v5688_v59, %v5669_v47 }
 0x29f   :  { %1809 = vrot.lane.b32.xlu2 %v1776_v10, %s5191_s20  ;;  %1633 = vst.msk [vmem:[#allocation4 + $0x18] sm:$0xf] %vm275_vm4, %v2383_v20  ;;  %v1888_v9 = vpack.c.bf16 %v1872_v35, %v1872_v35  ;;  %v2143_v24 = vld [vmem:[#allocation3 + $0xe] sm:$0xff] }
 0x2a0   :  { %2079 = vrot.lane.b32.xlu0 %v2047_v12, %s5193_s16  ;;  %v1538_v21 = vadd.f32 %v1537_v32, %v1489_v14  ;;  %2016 = vst.msk [vmem:[#allocation4 + $0x10] sm:$0xf] %vm275_vm4, %v2383_v20  ;;  %v2159_v40 = vpack.c.bf16 %v2143_v24, %v2143_v24  ;;  %v1549_v20 = vpop.f32.mrf.mxu3 }
 0x2a2   :  { %v1571_v36 = vmax.f32 %v1538_v21, 0.0 }
 0x2a3   :  { %v2368_v15 = vld [vmem:[#allocation3 + $0x18] sm:$0xff] }
 0x2a4   :  { %v1761_v16 = vld [vmem:[#allocation3 + $0x12] sm:$0xff]  ;;  %v2384_v22 = vpack.c.bf16 %v2368_v15, %v2368_v15  ;;  %1587 = vst.msk [vmem:[#allocation3 + $0x20] sm:$0xff] %vm209_vm3, %v1571_v36 }
 0x2a5   :  { %v1777_v27 = vpack.c.bf16 %v1761_v16, %v1761_v16  ;;  %v1490_v28 = vpop.f32.mrf.mxu2  ;;  %v2144_v33 = vld [vmem:[#allocation3 + $0x16] sm:$0xff]  ;;  %v4576_v44 = vld [vmem:[#allocation4 + $0x8] sm:$0xf] }
 0x2a6   :  { %2400 = vst.msk [vmem:[#allocation4 + $0x14] sm:$0xf] %vm275_vm4, %v2384_v22  ;;  %v1491_v29 = vadd.f32 %v1490_v28, %v1442_v18  ;;  %1697 = vrot.lane.b32.xlu1 %v2047_v12, %s5193_s16  ;;  %v2160_v8 = vpack.c.bf16 %v2144_v33, %v2144_v33  ;;  %v1649_v51 = vld [vmem:[#allocation3 + $0x11] sm:$0xff]  ;;  %v1452_v28 = vadd.f32 %v5688_v59, %v5672_v52 }
 0x2a7   :  { %1921 = vrot.lane.b32.xlu2 %v1888_v9, %s5195_s0  ;;  %1634 = vst.msk [vmem:[#allocation4 + $0x24] sm:$0xf] %vm275_vm4, %v2384_v22  ;;  %v1665_v58 = vpack.c.bf16 %v1649_v51, %v1649_v51  ;;  %v2256_v4 = vld [vmem:[#allocation3 + $0x17] sm:$0xff] }
 0x2a8   :  { %1811 = vrot.lane.b32.xlu0 %v1777_v27, %s5191_s20  ;;  %v1540_v17 = vadd.f32 %v1539_v49, %v1491_v29  ;;  %2017 = vst.msk [vmem:[#allocation4 + $0x1c] sm:$0xf] %vm275_vm4, %v2384_v22  ;;  %v1552_v24 = vpop.f32.mrf.mxu3 }
 0x2aa   :  { %v1572_v32 = vmax.f32 %v1540_v17, 0.0  ;;  %v5751_v17 = vld [vmem:[#allocation4 + $0x50] sm:$0xf] }
 0x2ab   :  { %v2369_v37 = vld [vmem:[#allocation3 + $0x20] sm:$0xff]  ;;  %3758 = vst.msk [vmem:[#allocation4 + $0x50] sm:$0xf] %vm275_vm4, %v5594_v60 }
 0x2ac   :  { %v2385_v39 = vpack.c.bf16 %v2369_v37, %v2369_v37  ;;  %1588 = vst.msk [vmem:[#allocation3 + $0x28] sm:$0xff] %vm209_vm3, %v1572_v32  ;;  %v1986_v41 = vld [vmem:[#allocation3 + $0x20] sm:$0xff]  ;;  %v5758_v37 = vld [vmem:[#allocation4 + $0x58] sm:$0xf0] }
 0x2ad   :  { %v1493_v0 = vpop.f32.mrf.mxu2  ;;  %v5011_v61 = vld [vmem:[#allocation4 + $0x10] sm:$0xf0]  ;;  %v2002_v46 = vpack.c.bf16 %v1986_v41, %v1986_v41  ;;  %v1650_v54 = vld [vmem:[#allocation3 + $0x19] sm:$0xff]  ;;  %3759 = vst.msk [vmem:[#allocation4 + $0x5c] sm:$0xf] %vm275_vm4, %v5596_v53 }
 0x2ae   :  { %2401 = vst.msk [vmem:[#allocation4 + $0x20] sm:$0xf] %vm275_vm4, %v2385_v39  ;;  %v1494_v48 = vadd.f32 %v1493_v0, %v1445_v38  ;;  %2303 = vrot.lane.b32.xlu1 %v1888_v9, %s5195_s0  ;;  %v4577_v49 = vor.u32 %v5011_v61, %v4576_v44  ;;  %v1666_v3 = vpack.c.bf16 %v1650_v54, %v1650_v54  ;;  %v1762_v6 = vld [vmem:[#allocation3 + $0x1a] sm:$0xff]  ;;  %v2094_v61 = vpop.permute.xlu0 %2093 }
 0x2af   :  { %2191 = vrot.lane.b32.xlu2 %v2159_v40, %s5191_s20  ;;  %1635 = vst.msk [vmem:[#allocation4 + $0x30] sm:$0xf] %vm275_vm4, %v2385_v39  ;;  %v1778_v21 = vpack.c.bf16 %v1762_v6, %v1762_v6  ;;  %v1874_v22 = vld [vmem:[#allocation3 + $0x1f] sm:$0xff]  ;;  %v1455_v0 = vadd.f32 %v5688_v59, %v5677_v2  ;;  %v2318_v2 = vpop.permute.xlu1 %2317 }
 0x2b0   :  { %2193 = vrot.lane.b32.xlu0 %v2160_v8, %s5191_s20  ;;  %v1543_v34 = vadd.f32 %v1542_v13, %v1494_v48  ;;  %2879 = vmatmul.bf16.vlgmr.msra.gmra.mxu2 %v4577_v49  ;;  %2018 = vst.msk [vmem:[#allocation4 + $0x28] sm:$0xf] %vm275_vm4, %v2002_v46  ;;  %v2272_v13 = vpack.c.bf16 %v2256_v4, %v2256_v4  ;;  %v2145_v38 = vld [vmem:[#allocation3 + $0x1e] sm:$0xff]  ;;  %v1554_v54 = vpop.f32.mrf.mxu3 }
 0x2b1   :  { %v2161_v8 = vpack.c.bf16 %v2145_v38, %v2145_v38  ;;  %2134 = vst.msk [vmem:[#allocation4 + $0x58] sm:$0xf] %vm388_vm5, %v2094_v61  ;;  %v5039_v61 = vld [vmem:[#allocation5 + $0xf0] sm:$0xff] }
 0x2b2   :  { %v1573_v26 = vmax.f32 %v1543_v34, 0.0 }
 0x2b3   :  { %v2370_v55 = vld [vmem:[#allocation3 + $0x28] sm:$0xff] }
 0x2b4   :  { %v2386_v57 = vpack.c.bf16 %v2370_v55, %v2370_v55  ;;  %1589 = vst.msk [vmem:[#allocation3 + $0x30] sm:$0xff] %vm209_vm3, %v1573_v26  ;;  %v1987_v63 = vld [vmem:[#allocation3 + $0x28] sm:$0xff] }
 0x2b5   :  { %v1495_v1 = vpop.f32.mrf.mxu2  ;;  %v2003_v45 = vpack.c.bf16 %v1987_v63, %v1987_v63  ;;  %v4588_v35 = vld [vmem:[#allocation4 + $0x20] sm:$0xf]  ;;  %v2146_v40 = vld [vmem:[#allocation3 + $0x26] sm:$0xff]  ;;  %v1457_v63 = vadd.f32 %v5688_v59, %v5682_v7 }
 0x2b6   :  { %2402 = vst.msk [vmem:[#allocation4 + $0x2c] sm:$0xf] %vm275_vm4, %v2386_v57  ;;  %v1496_v62 = vadd.f32 %v1495_v1, %v1447_v56  ;;  %2081 = vrot.lane.b32.xlu1 %v1665_v58, %s5193_s16  ;;  %v1651_v39 = vld [vmem:[#allocation3 + $0x21] sm:$0xff]  ;;  %v2162_v48 = vpack.c.bf16 %v2146_v40, %v2146_v40 }
 0x2b7   :  { %1699 = vrot.lane.b32.xlu2 %v1665_v58, %s5193_s16  ;;  %1636 = vst.msk [vmem:[#allocation4 + $0x3c] sm:$0xf] %vm275_vm4, %v2386_v57  ;;  %v1667_v44 = vpack.c.bf16 %v1651_v39, %v1651_v39  ;;  %v2258_v56 = vld [vmem:[#allocation3 + $0x27] sm:$0xff] }
 0x2b8   :  { %1701 = vrot.lane.b32.xlu0 %v1666_v3, %s5193_s16  ;;  %v1545_v42 = vadd.f32 %v1544_v31, %v1496_v62  ;;  %2019 = vst.msk [vmem:[#allocation4 + $0x34] sm:$0xf] %vm275_vm4, %v2003_v45  ;;  %v1890_v31 = vpack.c.bf16 %v1874_v22, %v1874_v22  ;;  %v1763_v58 = vld [vmem:[#allocation3 + $0x22] sm:$0xff]  ;;  %v2274_v1 = vpack.c.bf16 %v2258_v56, %v2258_v56  ;;  %v1557_v7 = vpop.f32.mrf.mxu3 }
 0x2b9   :  { %v1779_v62 = vpack.c.bf16 %v1763_v58, %v1763_v58  ;;  %v1465_v56 = vadd.f32 %v5688_v59, %v5660_v30 }
 0x2ba   :  { %v1574_v5 = vmax.f32 %v1545_v42, 0.0 }
 0x2bb   :  { %v2371_v10 = vld [vmem:[#allocation3 + $0x30] sm:$0xff] }
 0x2bc   :  { %v2387_v12 = vpack.c.bf16 %v2371_v10, %v2371_v10  ;;  %1590 = vst.msk [vmem:[#allocation3 + $0x38] sm:$0xff] %vm209_vm3, %v1574_v5  ;;  %v1605_v19 = vld [vmem:[#allocation3 + $0x30] sm:$0xff]  ;;  %v2110_v5 = vpop.permute.xlu1 %2109 }
 0x2bd   :  { %v1498_v14 = vpop.f32.mrf.mxu2  ;;  %v5014_v36 = vld [vmem:[#allocation4 + $0x28] sm:$0xf0]  ;;  %v1621_v15 = vpack.c.bf16 %v1605_v19, %v1605_v19  ;;  %2142 = vst.msk [vmem:[#allocation4 + $0xb8] sm:$0xf] %vm388_vm5, %v2110_v5 }
 0x2be   :  { %2403 = vst.msk [vmem:[#allocation4 + $0x38] sm:$0xf] %vm275_vm4, %v2387_v12  ;;  %v1499_v16 = vadd.f32 %v1498_v14, %v1450_v11  ;;  %1923 = vrot.lane.b32.xlu1 %v2272_v13, %s5195_s0  ;;  %v4589_v18 = vor.u32 %v5014_v36, %v4588_v35  ;;  %v1876_v11 = vld [vmem:[#allocation3 + $0x2f] sm:$0xff]  ;;  %v2222_v35 = vpop.permute.xlu0 %2221  ;;  %v3343_v36 = vld [vmem:[#allocation2 + $0x40] sm:$0xff] }
 0x2bf   :  { %2305 = vrot.lane.b32.xlu2 %v2272_v13, %s5195_s0  ;;  %2020 = vst.msk [vmem:[#allocation4 + $0x40] sm:$0xf] %vm275_vm4, %v2387_v12  ;;  %v1460_v13 = vadd.f32 %v5688_v59, %v5650_v23 }
 0x2c0   :  { %1813 = vrot.lane.b32.xlu0 %v1778_v21, %s5191_s20  ;;  %v1548_v47 = vadd.f32 %v1547_v50, %v1499_v16  ;;  %2884 = vmatmul.bf16.gmra.mxu2 %v4589_v18  ;;  %1637 = vst.msk [vmem:[#allocation4 + $0x48] sm:$0xf] %vm275_vm4, %v1621_v15  ;;  %v2206_v50 = vpop.permute.xlu2 %2205  ;;  %v4613_v21 = vor.u32 %v5758_v37, %v5751_v17  ;;  %v1652_v17 = vld [vmem:[#allocation3 + $0x29] sm:$0xff] }
 0x2c1   :  { %2246 = vst.msk [vmem:[#allocation4 + $0x58] sm:$0xf] %vm501_vm6, %v2206_v50  ;;  %v5789_v16 = vpack.c.bf16 %v1876_v11, %v1876_v11  ;;  %v3359_v18 = vpack.c.bf16 %v3343_v36, %v3343_v36  ;;  %v1668_v39 = vpack.c.bf16 %v1652_v17, %v1652_v17  ;;  %v1467_v11 = vadd.f32 %v5688_v59, %v5666_v43  ;;  %v5036_v43 = vld [vmem:[#allocation5 + $0xd8] sm:$0xff] }
 0x2c2   :  { %v1575_v9 = vmax.f32 %v1548_v47, 0.0  ;;  %2358 = vst.msk [vmem:[#allocation4 + $0x58] sm:$0xf] %vm614_vm7, %v2318_v2 }
 0x2c3   :  { %v2372_v27 = vld [vmem:[#allocation3 + $0x38] sm:$0xff]  ;;  %2254 = vst.msk [vmem:[#allocation4 + $0xb8] sm:$0xf] %vm501_vm6, %v2222_v35 }
 0x2c4   :  { %v2388_v29 = vpack.c.bf16 %v2372_v27, %v2372_v27  ;;  %1591 = vst.msk [vmem:[#allocation3 + $0x50] sm:$0xff] %vm209_vm3, %v1575_v9  ;;  %v5040_v9 = vld [vmem:[#allocation5 + $0xf8] sm:$0xff]  ;;  %v3447_v27 = vpop.permute.xlu1 %3446 }
 0x2c5   :  { %v1500_v32 = vpop.f32.mrf.mxu2  ;;  %v4600_v49 = vld [vmem:[#allocation4 + $0x38] sm:$0xf]  ;;  %2773 = vmatpush.bf16.msrb.mxu0 %v5040_v9 }
 0x2c6   :  { %2404 = vst.msk [vmem:[#allocation4 + $0x44] sm:$0xf] %vm275_vm4, %v2388_v29  ;;  %v1501_v33 = vadd.f32 %v1500_v32, %v1452_v28  ;;  %2307 = vrot.lane.b32.xlu1 %v1890_v31, %s5195_s0  ;;  %v2147_v32 = vld [vmem:[#allocation3 + $0x2e] sm:$0xff]  ;;  %v1654_v50 = vld [vmem:[#allocation3 + $0x39] sm:$0xff] }
 0x2c7   :  { %1925 = vrot.lane.b32.xlu2 %v1890_v31, %s5195_s0  ;;  %2021 = vst.msk [vmem:[#allocation4 + $0x4c] sm:$0xf] %vm275_vm4, %v2388_v29  ;;  %v5824_v58 = vpack.c.bf16 %v1654_v50, %v1654_v50 }
 0x2c8   :  { %2083 = vrot.lane.b32.xlu0 %v1666_v3, %s5193_s16  ;;  %v1550_v52 = vadd.f32 %v1549_v20, %v1501_v33  ;;  %1638 = vst.msk [vmem:[#allocation4 + $0x54] sm:$0xf] %vm275_vm4, %v2388_v29  ;;  %v1764_v20 = vld [vmem:[#allocation3 + $0x2a] sm:$0xff]  ;;  %v2334_v23 = vpop.permute.xlu2 %2333  ;;  %v1559_v33 = vpop.f32.mrf.mxu3 }
 0x2c9   :  { %v1780_v14 = vpack.c.bf16 %v1764_v20, %v1764_v20  ;;  %2366 = vst.msk [vmem:[#allocation4 + $0xb8] sm:$0xf] %vm614_vm7, %v2334_v23  ;;  %v5798_v29 = vld [vmem:[#allocation4 + $0x54] sm:$0xf0]  ;;  %2774 = vmatpush.bf16.msrb.mxu0 %v5039_v61 }
 0x2ca   :  { %v1576_v60 = vmax.f32 %v1550_v52, 0.0  ;;  %3375 = vst.msk [vmem:[#allocation4 + $0x58] sm:$0xf] %vm275_vm4, %v3359_v18  ;;  %v1462_v52 = vadd.f32 %v5688_v59, %v5654_v25  ;;  %v3559_v25 = vpop.permute.xlu0 %3558  ;;  %v2260_v20 = vld [vmem:[#allocation3 + $0x37] sm:$0xff] }
 0x2cb   :  { %v1607_v41 = vld [vmem:[#allocation3 + $0x50] sm:$0xff]  ;;  %3487 = vst.msk [vmem:[#allocation4 + $0x58] sm:$0xf] %vm388_vm5, %v3447_v27  ;;  %v2276_v35 = vpack.c.bf16 %v2260_v20, %v2260_v20 }
 0x2cc   :  { %1592 = vst.msk [vmem:[#allocation3 + $0x58] sm:$0xff] %vm209_vm3, %v1576_v60  ;;  %v1623_v46 = vpack.c.bf16 %v1607_v41, %v1607_v41  ;;  %v2163_v41 = vpack.c.bf16 %v2147_v32, %v2147_v32  ;;  %v3463_v2 = vpop.permute.xlu1 %3462  ;;  %v1765_v23 = vld [vmem:[#allocation3 + $0x32] sm:$0xff] }
 0x2cd   :  { %v1503_v53 = vpop.f32.mrf.mxu2  ;;  %v5017_v34 = vld [vmem:[#allocation4 + $0x40] sm:$0xf0]  ;;  %3599 = vst.msk [vmem:[#allocation4 + $0x58] sm:$0xf] %vm501_vm6, %v3559_v25  ;;  %v1781_v17 = vpack.c.bf16 %v1765_v23, %v1765_v23  ;;  %v5047_v32 = vld [vmem:[#allocation5 + $0x130] sm:$0xff] }
 0x2ce   :  { %v1504_v51 = vadd.f32 %v1503_v53, %v1455_v0  ;;  %1703 = vrot.lane.b32.xlu1 %v1667_v44, %s5193_s16  ;;  %v4601_v26 = vor.u32 %v5017_v34, %v4600_v49  ;;  %1639 = vst.msk [vmem:[#allocation4 + $0x60] sm:$0xf] %vm275_vm4, %v1623_v46  ;;  %v5038_v49 = vld [vmem:[#allocation5 + $0xe8] sm:$0xff] }
 0x2cf   :  { %2195 = vrot.lane.b32.xlu2 %v2161_v8, %s5191_s20  ;;  %v3734_v8 = vld [vmem:[#allocation2 + $0x90] sm:$0xff]  ;;  %2775 = vmatpush.bf16.msrb.mxu0 %v5038_v49 }
 0x2d0   :  { %2197 = vrot.lane.b32.xlu0 %v2162_v48, %s5191_s20  ;;  %v1553_v55 = vadd.f32 %v1552_v24, %v1504_v51  ;;  %2889 = vmatmul.bf16.gmra.mxu2 %v4601_v26  ;;  %v5812_v46 = vpack.c.bf16 %v3734_v8, %v3734_v8  ;;  %v3671_v48 = vpop.permute.xlu2 %3670  ;;  %v5815_v34 = vld [vmem:[#allocation4 + $0xb4] sm:$0xf0] }
 0x2d1   :  { %3711 = vst.msk [vmem:[#allocation4 + $0x58] sm:$0xf] %vm614_vm7, %v3671_v48  ;;  %v1653_v26 = vld [vmem:[#allocation3 + $0x31] sm:$0xff] }
 0x2d2   :  { %v1577_v57 = vmax.f32 %v1553_v55, 0.0  ;;  %v1562_v55 = vpop.f32.mrf.mxu3  ;;  %3383 = vst.msk [vmem:[#allocation4 + $0xb8] sm:$0xf] %vm275_vm4, %v5812_v46 }
 0x2d3   :  { %v1608_v3 = vld [vmem:[#allocation3 + $0x58] sm:$0xff]  ;;  %3495 = vst.msk [vmem:[#allocation4 + $0xb8] sm:$0xf] %vm388_vm5, %v3463_v2 }
 0x2d4   :  { %1593 = vst.msk [vmem:[#allocation3 + $0x60] sm:$0xff] %vm209_vm3, %v1577_v57  ;;  %v1624_v42 = vpack.c.bf16 %v1608_v3, %v1608_v3  ;;  %v1669_v3 = vpack.c.bf16 %v1653_v26, %v1653_v26  ;;  %v5044_v26 = vld [vmem:[#allocation5 + $0x118] sm:$0xff] }
 0x2d5   :  { %v1505_v45 = vpop.f32.mrf.mxu2 }
 0x2d6   :  { %v1506_v4 = vadd.f32 %v1505_v45, %v1457_v63  ;;  %2085 = vrot.lane.b32.xlu1 %v1667_v44, %s5193_s16  ;;  %1640 = vst.msk [vmem:[#allocation4 + $0x6c] sm:$0xf] %vm275_vm4, %v1624_v42 }
 0x2d7   :  { %2309 = vrot.lane.b32.xlu2 %v2274_v1, %s5195_s0  ;;  %2023 = vst.msk [vmem:[#allocation4 + $0x64] sm:$0xf] %vm275_vm4, %v1624_v42 }
 0x2d8   :  { %1815 = vrot.lane.b32.xlu0 %v1779_v62, %s5191_s20  ;;  %v1555_v6 = vadd.f32 %v1554_v54, %v1506_v4 }
 0x2da   :  { %v1578_v10 = vmax.f32 %v1555_v6, 0.0  ;;  %v2148_v6 = vld [vmem:[#allocation3 + $0x36] sm:$0xff]  ;;  %v1564_v36 = vpop.f32.mrf.mxu3 }
 0x2db   :  { %v2375_v12 = vld [vmem:[#allocation3 + $0x60] sm:$0xff] }
 0x2dc   :  { %v2391_v19 = vpack.c.bf16 %v2375_v12, %v2375_v12  ;;  %1594 = vst.msk [vmem:[#allocation3 + $0x68] sm:$0xff] %vm209_vm3, %v1578_v10  ;;  %v1609_v47 = vld [vmem:[#allocation3 + $0x60] sm:$0xff] }
 0x2dd   :  { %v1508_v15 = vpop.f32.mrf.mxu2  ;;  %v1625_v28 = vpack.c.bf16 %v1609_v47, %v1609_v47  ;;  %v1768_v20 = vld [vmem:[#allocation3 + $0x5a] sm:$0xff] }
 0x2de   :  { %2407 = vst.msk [vmem:[#allocation4 + $0x68] sm:$0xf] %vm275_vm4, %v2391_v19  ;;  %v1509_v22 = vadd.f32 %v1508_v15, %v1460_v13  ;;  %1817 = vrot.lane.b32.xlu1 %v1780_v14, %s5191_s20  ;;  %v2164_v13 = vpack.c.bf16 %v2148_v6, %v2148_v6  ;;  %v5037_v19 = vld [vmem:[#allocation5 + $0xe0] sm:$0xff]  ;;  %v5048_v14 = vld [vmem:[#allocation5 + $0x138] sm:$0xff] }
 0x2df   :  { %1927 = vrot.lane.b32.xlu2 %v2274_v1, %s5195_s0  ;;  %1641 = vst.msk [vmem:[#allocation4 + $0x78] sm:$0xf] %vm275_vm4, %v1625_v28  ;;  %2776 = vmatpush.bf16.msrb.mxu0 %v5037_v19  ;;  %v1767_v6 = vld [vmem:[#allocation3 + $0x52] sm:$0xff] }
 0x2e0   :  { %1929 = vrot.lane.b32.xlu0 %v5789_v16, %s5195_s0  ;;  %v1558_v31 = vadd.f32 %v1557_v7, %v1509_v22  ;;  %2894 = vmatmul.bf16.gmra.mxu2 %v4613_v21  ;;  %2024 = vst.msk [vmem:[#allocation4 + $0x70] sm:$0xf] %vm275_vm4, %v1625_v28  ;;  %v1766_v22 = vld [vmem:[#allocation3 + $0x3a] sm:$0xff] }
 0x2e1   :  { %2822 = vmatpush.bf16.msrb.mxu1 %v5048_v14 }
 0x2e2   :  { %v1579_v24 = vmax.f32 %v1558_v31, 0.0  ;;  %v1782_v31 = vpack.c.bf16 %v1766_v22, %v1766_v22 }
 0x2e3   :  { %v2376_v37 = vld [vmem:[#allocation3 + $0x68] sm:$0xff]  ;;  %2777 = vmatpush.bf16.msrb.mxu0 %v5036_v43 }
 0x2e4   :  { %v2392_v38 = vpack.c.bf16 %v2376_v37, %v2376_v37  ;;  %1595 = vst.msk [vmem:[#allocation3 + $0x70] sm:$0xff] %vm209_vm3, %v1579_v24  ;;  %v1610_v60 = vld [vmem:[#allocation3 + $0x68] sm:$0xff]  ;;  %v5035_v24 = vld [vmem:[#allocation5 + $0xd0] sm:$0xff] }
 0x2e5   :  { %v1510_v40 = vpop.f32.mrf.mxu2  ;;  %v1626_v0 = vpack.c.bf16 %v1610_v60, %v1610_v60  ;;  %v4624_v45 = vld [vmem:[#allocation4 + $0x68] sm:$0xf]  ;;  %2823 = vmatpush.bf16.msrb.mxu1 %v5047_v32 }
 0x2e6   :  { %2408 = vst.msk [vmem:[#allocation4 + $0x74] sm:$0xf] %vm275_vm4, %v2392_v38  ;;  %v1511_v44 = vadd.f32 %v1510_v40, %v1462_v52  ;;  %2087 = vrot.lane.b32.xlu1 %v1668_v39, %s5193_s16  ;;  %v2152_v23 = vld [vmem:[#allocation3 + $0x66] sm:$0xff] }
 0x2e7   :  { %1705 = vrot.lane.b32.xlu2 %v1668_v39, %s5193_s16  ;;  %1642 = vst.msk [vmem:[#allocation4 + $0x84] sm:$0xf] %vm275_vm4, %v1626_v0  ;;  %2778 = vmatpush.bf16.msrb.mxu0 %v5035_v24  ;;  %v5034_v39 = vld [vmem:[#allocation5 + $0xc8] sm:$0xff] }
 0x2e8   :  { %2199 = vrot.lane.b32.xlu0 %v2163_v41, %s5191_s20  ;;  %v1560_v53 = vadd.f32 %v1559_v33, %v1511_v44  ;;  %2025 = vst.msk [vmem:[#allocation4 + $0x7c] sm:$0xf] %vm275_vm4, %v1626_v0  ;;  %v5046_v41 = vld [vmem:[#allocation5 + $0x128] sm:$0xff]  ;;  %v1878_v0 = vld [vmem:[#allocation3 + $0x3f] sm:$0xff] }
 0x2e9   :  { %v5033_v44 = vld [vmem:[#allocation5 + $0xc0] sm:$0xff]  ;;  %v1894_v25 = vpack.c.bf16 %v1878_v0, %v1878_v0  ;;  %2824 = vmatpush.bf16.msrb.mxu1 %v5046_v41 }
 0x2ea   :  { %v1580_v51 = vmax.f32 %v1560_v53, 0.0  ;;  %v5045_v53 = vld [vmem:[#allocation5 + $0x120] sm:$0xff] }
 0x2eb   :  { %v2377_v54 = vld [vmem:[#allocation3 + $0x70] sm:$0xff]  ;;  %2779 = vmatpush.bf16.msrb.mxu0 %v5034_v39 }
 0x2ec   :  { %v2393_v57 = vpack.c.bf16 %v2377_v54, %v2377_v54  ;;  %1596 = vst.msk [vmem:[#allocation3 + $0x78] sm:$0xff] %vm209_vm3, %v1580_v51  ;;  %v1994_v63 = vld [vmem:[#allocation3 + $0x70] sm:$0xff] }
 0x2ed   :  { %v1513_v1 = vpop.f32.mrf.mxu2  ;;  %v5023_v62 = vld [vmem:[#allocation4 + $0x70] sm:$0xf0]  ;;  %v2010_v42 = vpack.c.bf16 %v1994_v63, %v1994_v63  ;;  %2825 = vmatpush.bf16.msrb.mxu1 %v5045_v53  ;;  %v1770_v41 = vld [vmem:[#allocation3 + $0x6a] sm:$0xff] }
 0x2ee   :  { %2409 = vst.msk [vmem:[#allocation4 + $0x80] sm:$0xf] %vm275_vm4, %v2393_v57  ;;  %v1514_v4 = vadd.f32 %v1513_v1, %v1465_v56  ;;  %1709 = vrot.lane.b32.xlu1 %v5824_v58, %s5193_s16  ;;  %v4625_v30 = vor.u32 %v5023_v62, %v4624_v45  ;;  %v1655_v54 = vld [vmem:[#allocation3 + $0x51] sm:$0xff]  ;;  %v1656_v56 = vld [vmem:[#allocation3 + $0x59] sm:$0xff] }
 0x2ef   :  { %2311 = vrot.lane.b32.xlu2 %v5789_v16, %s5195_s0  ;;  %2026 = vst.msk [vmem:[#allocation4 + $0x88] sm:$0xf] %vm275_vm4, %v2010_v42  ;;  %2780 = vmatpush.bf16.msrb.mxu0 %v5033_v44  ;;  %v1671_v57 = vpack.c.bf16 %v1655_v54, %v1655_v54  ;;  %v5043_v63 = vld [vmem:[#allocation5 + $0x110] sm:$0xff]  ;;  %v1672_v1 = vpack.c.bf16 %v1656_v56, %v1656_v56 }
 0x2f0   :  { %1707 = vrot.lane.b32.xlu0 %v1669_v3, %s5193_s16  ;;  %v1563_v5 = vadd.f32 %v1562_v55, %v1514_v4  ;;  %2899 = vmatmul.bf16.gmra.mxu2 %v4625_v30  ;;  %1643 = vst.msk [vmem:[#allocation4 + $0x90] sm:$0xf] %vm275_vm4, %v2010_v42  ;;  %v2149_v55 = vld [vmem:[#allocation3 + $0x3e] sm:$0xff]  ;;  %v5042_v30 = vld [vmem:[#allocation5 + $0x108] sm:$0xff] }
 0x2f1   :  { %2826 = vmatpush.bf16.msrb.mxu1 %v5044_v26  ;;  %v1882_v0 = vld [vmem:[#allocation3 + $0x6f] sm:$0xff] }
 0x2f2   :  { %v1581_v7 = vmax.f32 %v1563_v5, 0.0  ;;  %v1898_v53 = vpack.c.bf16 %v1882_v0, %v1882_v0  ;;  %v1658_v26 = vld [vmem:[#allocation3 + $0x69] sm:$0xff] }
 0x2f3   :  { %v2378_v10 = vld [vmem:[#allocation3 + $0x78] sm:$0xff]  ;;  %v2153_v54 = vld [vmem:[#allocation3 + $0x6e] sm:$0xff]  ;;  %v1674_v56 = vpack.c.bf16 %v1658_v26, %v1658_v26 }
 0x2f4   :  { %v2394_v12 = vpack.c.bf16 %v2378_v10, %v2378_v10  ;;  %1597 = vst.msk [vmem:[#allocation3 + $0x80] sm:$0xff] %vm209_vm3, %v1581_v7  ;;  %v1995_v16 = vld [vmem:[#allocation3 + $0x78] sm:$0xff]  ;;  %v1783_v10 = vpack.c.bf16 %v1767_v6, %v1767_v6 }
 0x2f5   :  { %v1515_v21 = vpop.f32.mrf.mxu2  ;;  %v2011_v59 = vpack.c.bf16 %v1995_v16, %v1995_v16  ;;  %v4636_v33 = vld [vmem:[#allocation4 + $0x80] sm:$0xf]  ;;  %2827 = vmatpush.bf16.msrb.mxu1 %v5043_v63  ;;  %v1879_v7 = vld [vmem:[#allocation3 + $0x57] sm:$0xff] }
 0x2f6   :  { %2410 = vst.msk [vmem:[#allocation4 + $0x8c] sm:$0xf] %vm275_vm4, %v2394_v12  ;;  %v1516_v15 = vadd.f32 %v1515_v21, %v1467_v11  ;;  %2201 = vrot.lane.b32.xlu1 %v2164_v13, %s5191_s20  ;;  %v1895_v11 = vpack.c.bf16 %v1879_v7, %v1879_v7  ;;  %v5041_v12 = vld [vmem:[#allocation5 + $0x100] sm:$0xff]  ;;  %v1784_v13 = vpack.c.bf16 %v1768_v20, %v1768_v20  ;;  %v1771_v6 = vld [vmem:[#allocation3 + $0x72] sm:$0xff] }
 0x2f7   :  { %2089 = vrot.lane.b32.xlu2 %v1669_v3, %s5193_s16  ;;  %2027 = vst.msk [vmem:[#allocation4 + $0x94] sm:$0xf] %vm275_vm4, %v2011_v59  ;;  %v2266_v7 = vld [vmem:[#allocation3 + $0x77] sm:$0xff]  ;;  %v1787_v20 = vpack.c.bf16 %v1771_v6, %v1771_v6 }
 0x2f8   :  { %2313 = vrot.lane.b32.xlu0 %v2276_v35, %s5195_s0  ;;  %v1565_v18 = vadd.f32 %v1564_v36, %v1516_v15  ;;  %1644 = vst.msk [vmem:[#allocation4 + $0x9c] sm:$0xf] %vm275_vm4, %v2011_v59  ;;  %v2151_v59 = vld [vmem:[#allocation3 + $0x5e] sm:$0xff] }
 0x2f9   :  { %v5842_v47 = vpop.permute.xlu2 %1809  ;;  %2828 = vmatpush.bf16.msrb.mxu1 %v5042_v30 }
 0x2fa   :  { %v1582_v9 = vmax.f32 %v1565_v18, 0.0  ;;  %v1657_v18 = vld [vmem:[#allocation3 + $0x61] sm:$0xff] }
 0x2fb   :  { %v2379_v27 = vld [vmem:[#allocation3 + $0x80] sm:$0xff] }
 0x2fc   :  { %v2395_v28 = vpack.c.bf16 %v2379_v27, %v2379_v27  ;;  %1598 = vst.msk [vmem:[#allocation3 + $0x88] sm:$0xff] %vm209_vm3, %v1582_v9  ;;  %v1613_v38 = vld [vmem:[#allocation3 + $0x80] sm:$0xff]  ;;  %v2167_v27 = vpack.c.bf16 %v2151_v59, %v2151_v59 }
 0x2fd   :  { %v5026_v37 = vld [vmem:[#allocation4 + $0x88] sm:$0xf0]  ;;  %v1629_v60 = vpack.c.bf16 %v1613_v38, %v1613_v38  ;;  %2829 = vmatpush.bf16.msrb.mxu1 %v5041_v12 }
 0x2fe   :  { %2411 = vst.msk [vmem:[#allocation4 + $0x98] sm:$0xf] %vm275_vm4, %v2395_v28  ;;  %1819 = vrot.lane.b32.xlu1 %v1781_v17, %s5191_s20  ;;  %v4637_v52 = vor.u32 %v5026_v37, %v4636_v33  ;;  %v1673_v28 = vpack.c.bf16 %v1657_v18, %v1657_v18  ;;  %v2264_v33 = vld [vmem:[#allocation3 + $0x67] sm:$0xff] }
 0x2ff   :  { %1821 = vrot.lane.b32.xlu2 %v1782_v31, %s5191_s20  ;;  %1645 = vst.msk [vmem:[#allocation4 + $0xa8] sm:$0xf] %vm275_vm4, %v1629_v60  ;;  %v2168_v31 = vpack.c.bf16 %v2152_v23, %v2152_v23  ;;  %v1769_v37 = vld [vmem:[#allocation3 + $0x62] sm:$0xff] }
 0x300   :  { %1931 = vrot.lane.b32.xlu0 %v2276_v35, %s5195_s0  ;;  %2904 = vmatmul.bf16.gmra.mxu2 %v4637_v52  ;;  %2028 = vst.msk [vmem:[#allocation4 + $0xa0] sm:$0xf] %vm275_vm4, %v1629_v60  ;;  %v1880_v35 = vld [vmem:[#allocation3 + $0x5f] sm:$0xff]  ;;  %v2280_v52 = vpack.c.bf16 %v2264_v33, %v2264_v33  ;;  %v1785_v38 = vpack.c.bf16 %v1769_v37, %v1769_v37 }
 0x301   :  { %v5851_v40 = vpop.permute.xlu2 %1921  ;;  %v1896_v36 = vpack.c.bf16 %v1880_v35, %v1880_v35 }
 0x303   :  { %v2380_v8 = vld [vmem:[#allocation3 + $0x88] sm:$0xff] }
 0x304   :  { %v2396_v61 = vpack.c.bf16 %v2380_v8, %v2380_v8  ;;  %v1614_v48 = vld [vmem:[#allocation3 + $0x88] sm:$0xff] }
 0x305   :  { %v1630_v49 = vpack.c.bf16 %v1614_v48, %v1614_v48  ;;  %v4648_v3 = vld [vmem:[#allocation4 + $0x98] sm:$0xf]  ;;  %v1662_v33 = vld [vmem:[#allocation3 + $0x89] sm:$0xff] }
 0x306   :  { %2412 = vst.msk [vmem:[#allocation4 + $0xa4] sm:$0xf] %vm275_vm4, %v2396_v61  ;;  %1933 = vrot.lane.b32.xlu1 %v1894_v25, %s5195_s0  ;;  %v2268_v0 = vld [vmem:[#allocation3 + $0x87] sm:$0xff] }
 0x307   :  { %2091 = vrot.lane.b32.xlu2 %v5824_v58, %s5193_s16  ;;  %1646 = vst.msk [vmem:[#allocation4 + $0xb4] sm:$0xf] %vm275_vm4, %v1630_v49  ;;  %v2165_v58 = vpack.c.bf16 %v2149_v55, %v2149_v55 }
 0x308   :  { %2315 = vrot.lane.b32.xlu0 %v1894_v25, %s5195_s0  ;;  %v1808_v51 = vpop.permute.xlu1 %1807  ;;  %2029 = vst.msk [vmem:[#allocation4 + $0xac] sm:$0xf] %vm275_vm4, %v1630_v49  ;;  %v1786_v25 = vpack.c.bf16 %v1770_v41, %v1770_v41  ;;  %v2156_v41 = vld [vmem:[#allocation3 + $0x86] sm:$0xff] }
 0x309   :  { %v2192_v50 = vpop.permute.xlu2 %2191  ;;  %v1696_v2 = vpop.permute.xlu0 %1695 }
 0x30a   :  { %1743 = vst.msk [vmem:[#allocation4] sm:$0xf] %vm388_vm5, %v1696_v2 }
 0x30b   :  { %1855 = vst.msk [vmem:[#allocation4] sm:$0xf] %vm501_vm6, %v1808_v51 }
 0x30d   :  { %v5029_v45 = vld [vmem:[#allocation4 + $0xa0] sm:$0xf0] }
 0x30e   :  { %2203 = vrot.lane.b32.xlu1 %v2165_v58, %s5191_s20  ;;  %v4649_v62 = vor.u32 %v5029_v45, %v4648_v3  ;;  %v2154_v3 = vld [vmem:[#allocation3 + $0x76] sm:$0xff] }
 0x30f   :  { %1711 = vrot.lane.b32.xlu2 %v1671_v57, %s5193_s16  ;;  %v2169_v57 = vpack.c.bf16 %v2153_v54, %v2153_v54  ;;  %v1659_v45 = vld [vmem:[#allocation3 + $0x71] sm:$0xff] }
 0x310   :  { %1713 = vrot.lane.b32.xlu0 %v1672_v1, %s5193_s16  ;;  %2909 = vmatmul.bf16.gmra.mxu2 %v4649_v62  ;;  %v1920_v4 = vpop.permute.xlu1 %1919  ;;  %v2170_v62 = vpack.c.bf16 %v2154_v3, %v2154_v3 }
 0x311   :  { %v1700_v42 = vpop.permute.xlu2 %1699  ;;  %1967 = vst.msk [vmem:[#allocation4] sm:$0xf] %vm614_vm7, %v1920_v4 }
 0x312   :  { %1745 = vst.msk [vmem:[#allocation4 + $0x18] sm:$0xf] %vm388_vm5, %v1700_v42  ;;  %v2080_v5 = vpop.permute.xlu0 %2079  ;;  %v1675_v42 = vpack.c.bf16 %v1659_v45, %v1659_v45 }
 0x313   :  { %2127 = vst.msk [vmem:[#allocation4 + $0x4] sm:$0xf] %vm388_vm5, %v2080_v5 }
 0x314   :  { %2239 = vst.msk [vmem:[#allocation4 + $0x4] sm:$0xf] %vm501_vm6, %v2192_v50 }
 0x316   :  { %1935 = vrot.lane.b32.xlu1 %v1895_v11, %s5195_s0 }
 0x317   :  { %1823 = vrot.lane.b32.xlu2 %v1783_v10, %s5191_s20  ;;  %v2282_v10 = vpack.c.bf16 %v2266_v7, %v2266_v7 }
 0x318   :  { %1825 = vrot.lane.b32.xlu0 %v1784_v13, %s5191_s20  ;;  %v1698_v14 = vpop.permute.xlu1 %1697 }
 0x319   :  { %v2306_v19 = vpop.permute.xlu2 %2305  ;;  %1744 = vst.msk [vmem:[#allocation4 + $0xc] sm:$0xf] %vm388_vm5, %v1698_v14  ;;  %v1660_v14 = vld [vmem:[#allocation3 + $0x79] sm:$0xff] }
 0x31a   :  { %v1812_v21 = vpop.permute.xlu0 %1811  ;;  %1856 = vst.msk [vmem:[#allocation4 + $0xc] sm:$0xf] %vm501_vm6, %v5842_v47  ;;  %v4568_v47 = vld [vmem:[#allocation4] sm:$0xf] }
 0x31b   :  { %1968 = vst.msk [vmem:[#allocation4 + $0xc] sm:$0xf] %vm614_vm7, %v5851_v40 }
 0x31c   :  { %1857 = vst.msk [vmem:[#allocation4 + $0x18] sm:$0xf] %vm501_vm6, %v1812_v21 }
 0x31e   :  { %2319 = vrot.lane.b32.xlu1 %v1896_v36, %s5195_s0 }
 0x31f   :  { %1937 = vrot.lane.b32.xlu2 %v1896_v36, %s5195_s0 }
 0x320   :  { %2095 = vrot.lane.b32.xlu0 %v1672_v1, %s5193_s16  ;;  %v2304_v16 = vpop.permute.xlu1 %2303 }
 0x321   :  { %v1926_v15 = vpop.permute.xlu2 %1925  ;;  %2351 = vst.msk [vmem:[#allocation4 + $0x4] sm:$0xf] %vm614_vm7, %v2304_v16  ;;  %v1676_v16 = vpack.c.bf16 %v1660_v14, %v1660_v14 }
 0x322   :  { %v2194_v43 = vpop.permute.xlu0 %2193  ;;  %v5010_v22 = vld [vmem:[#allocation4 + $0x8] sm:$0xf0] }
 0x323   :  { %v4569_v9 = vor.u32 %v5010_v22, %v4568_v47  ;;  %v1884_v47 = vld [vmem:[#allocation3 + $0x7f] sm:$0xff] }
 0x325   :  { %2781 = vmatmul.bf16.vlgmr.msrb.gmra.mxu0 %v4569_v9 }
 0x326   :  { %1715 = vrot.lane.b32.xlu1 %v1673_v28, %s5193_s16 }
 0x327   :  { %2207 = vrot.lane.b32.xlu2 %v2167_v27, %s5191_s20  ;;  %v1900_v27 = vpack.c.bf16 %v1884_v47, %v1884_v47 }
 0x328   :  { %2209 = vrot.lane.b32.xlu0 %v2168_v31, %s5191_s20  ;;  %v2082_v24 = vpop.permute.xlu1 %2081  ;;  %v5009_v8 = vld [vmem:[#allocation4 + $0x4] sm:$0xf] }
 0x329   :  { %v2196_v17 = vpop.permute.xlu2 %2195  ;;  %2128 = vst.msk [vmem:[#allocation4 + $0x10] sm:$0xf] %vm388_vm5, %v2082_v24  ;;  %v1661_v24 = vld [vmem:[#allocation3 + $0x81] sm:$0xff] }
 0x32a   :  { %v1702_v32 = vpop.permute.xlu0 %1701  ;;  %2240 = vst.msk [vmem:[#allocation4 + $0x10] sm:$0xf] %vm501_vm6, %v2194_v43  ;;  %v1677_v37 = vpack.c.bf16 %v1661_v24, %v1661_v24 }
 0x32b   :  { %2352 = vst.msk [vmem:[#allocation4 + $0x10] sm:$0xf] %vm614_vm7, %v2306_v19  ;;  %v1772_v19 = vld [vmem:[#allocation3 + $0x7a] sm:$0xff] }
 0x32c   :  { %1746 = vst.msk [vmem:[#allocation4 + $0x24] sm:$0xf] %vm388_vm5, %v1702_v32  ;;  %v2155_v32 = vld [vmem:[#allocation3 + $0x7e] sm:$0xff] }
 0x32e   :  { %2097 = vrot.lane.b32.xlu1 %v1673_v28, %s5193_s16 }
 0x32f   :  { %2321 = vrot.lane.b32.xlu2 %v2280_v52, %s5195_s0 }
 0x330   :  { %1827 = vrot.lane.b32.xlu0 %v1785_v38, %s5191_s20  ;;  %v1924_v60 = vpop.permute.xlu1 %1923  ;;  %v1678_v38 = vpack.c.bf16 %v1662_v33, %v1662_v33 }
 0x331   :  { %v2310_v39 = vpop.permute.xlu2 %2309  ;;  %1969 = vst.msk [vmem:[#allocation4 + $0x18] sm:$0xf] %vm614_vm7, %v1924_v60 }
 0x332   :  { %v1814_v40 = vpop.permute.xlu0 %1813  ;;  %v4570_v44 = vld [vmem:[#allocation4 + $0xc] sm:$0xf0] }
 0x333   :  { %1858 = vst.msk [vmem:[#allocation4 + $0x24] sm:$0xf] %vm501_vm6, %v1814_v40  ;;  %v4573_v61 = vor.u32 %v5009_v8, %v4570_v44  ;;  %v2172_v8 = vpack.c.bf16 %v2156_v41, %v2156_v41  ;;  %v2284_v44 = vpack.c.bf16 %v2268_v0, %v2268_v0 }
 0x334   :  { %1970 = vst.msk [vmem:[#allocation4 + $0x24] sm:$0xf] %vm614_vm7, %v1926_v15  ;;  %v1788_v15 = vpack.c.bf16 %v1772_v19, %v1772_v19 }
 0x335   :  { %2830 = vmatmul.bf16.vlgmr.msrb.gmra.mxu1 %v4573_v61 }
 0x336   :  { %1829 = vrot.lane.b32.xlu1 %v1786_v25, %s5191_s20 }
 0x337   :  { %1939 = vrot.lane.b32.xlu2 %v2280_v52, %s5195_s0  ;;  %v2171_v52 = vpack.c.bf16 %v2155_v32, %v2155_v32 }
 0x338   :  { %1941 = vrot.lane.b32.xlu0 %v1898_v53, %s5195_s0  ;;  %v2308_v49 = vpop.permute.xlu1 %2307  ;;  %v4580_v50 = vld [vmem:[#allocation4 + $0x18] sm:$0xf] }
 0x339   :  { %v1928_v48 = vpop.permute.xlu2 %1927 }
 0x33a   :  { %v2084_v51 = vpop.permute.xlu0 %2083 }
 0x33b   :  { %2129 = vst.msk [vmem:[#allocation4 + $0x1c] sm:$0xf] %vm388_vm5, %v2084_v51  ;;  %v5013_v2 = vld [vmem:[#allocation4 + $0x20] sm:$0xf0] }
 0x33c   :  { %2241 = vst.msk [vmem:[#allocation4 + $0x1c] sm:$0xf] %vm501_vm6, %v2196_v17  ;;  %v4581_v55 = vor.u32 %v5013_v2, %v4580_v50 }
 0x33d   :  { %2353 = vst.msk [vmem:[#allocation4 + $0x1c] sm:$0xf] %vm614_vm7, %v2308_v49  ;;  %v1774_v49 = vld [vmem:[#allocation3 + $0x8a] sm:$0xff] }
 0x33e   :  { %2786 = vmatmul.bf16.gmra.mxu0 %v4581_v55  ;;  %2099 = vrot.lane.b32.xlu1 %v1674_v56, %s5193_s16  ;;  %v1790_v54 = vpack.c.bf16 %v1774_v49, %v1774_v49 }
 0x33f   :  { %1717 = vrot.lane.b32.xlu2 %v1674_v56, %s5193_s16 }
 0x340   :  { %2211 = vrot.lane.b32.xlu0 %v2169_v57, %s5191_s20  ;;  %v1704_v63 = vpop.permute.xlu1 %1703 }
 0x341   :  { %v1706_v58 = vpop.permute.xlu2 %1705  ;;  %1747 = vst.msk [vmem:[#allocation4 + $0x30] sm:$0xf] %vm388_vm5, %v1704_v63 }
 0x342   :  { %1748 = vst.msk [vmem:[#allocation4 + $0x3c] sm:$0xf] %vm388_vm5, %v1706_v58  ;;  %v2198_v1 = vpop.permute.xlu0 %2197  ;;  %v1886_v58 = vld [vmem:[#allocation3 + $0x8f] sm:$0xff] }
 0x343   :  { %v1902_v63 = vpack.c.bf16 %v1886_v58, %v1886_v58 }
 0x344   :  { %v5012_v21 = vld [vmem:[#allocation4 + $0x1c] sm:$0xf] }
 0x346   :  { %2213 = vrot.lane.b32.xlu1 %v2170_v62, %s5191_s20 }
 0x347   :  { %2323 = vrot.lane.b32.xlu2 %v1898_v53, %s5195_s0 }
 0x348   :  { %1719 = vrot.lane.b32.xlu0 %v1675_v42, %s5193_s16  ;;  %v2086_v30 = vpop.permute.xlu1 %2085 }
 0x349   :  { %v2312_v4 = vpop.permute.xlu2 %2311  ;;  %2130 = vst.msk [vmem:[#allocation4 + $0x28] sm:$0xf] %vm388_vm5, %v2086_v30  ;;  %v2157_v30 = vld [vmem:[#allocation3 + $0x8e] sm:$0xff] }
 0x34a   :  { %v1816_v5 = vpop.permute.xlu0 %1815  ;;  %2242 = vst.msk [vmem:[#allocation4 + $0x28] sm:$0xf] %vm501_vm6, %v2198_v1 }
 0x34b   :  { %2354 = vst.msk [vmem:[#allocation4 + $0x28] sm:$0xf] %vm614_vm7, %v2310_v39 }
 0x34c   :  { %1859 = vst.msk [vmem:[#allocation4 + $0x30] sm:$0xf] %vm501_vm6, %v1816_v5  ;;  %v2173_v5 = vpack.c.bf16 %v2157_v30, %v2157_v30 }
 0x34d   :  { %1971 = vst.msk [vmem:[#allocation4 + $0x30] sm:$0xf] %vm614_vm7, %v1928_v48  ;;  %v1773_v48 = vld [vmem:[#allocation3 + $0x82] sm:$0xff] }
 0x34e   :  { %1831 = vrot.lane.b32.xlu1 %v1787_v20, %s5191_s20  ;;  %v1789_v2 = vpack.c.bf16 %v1773_v48, %v1773_v48 }
 0x34f   :  { %2101 = vrot.lane.b32.xlu2 %v1675_v42, %s5193_s16 }
 0x350   :  { %2325 = vrot.lane.b32.xlu0 %v2282_v10, %s5195_s0  ;;  %v1818_v12 = vpop.permute.xlu1 %1817 }
 0x351   :  { %v2090_v11 = vpop.permute.xlu2 %2089  ;;  %1860 = vst.msk [vmem:[#allocation4 + $0x3c] sm:$0xf] %vm501_vm6, %v1818_v12 }
 0x352   :  { %2132 = vst.msk [vmem:[#allocation4 + $0x40] sm:$0xf] %vm388_vm5, %v2090_v11  ;;  %v1930_v13 = vpop.permute.xlu0 %1929  ;;  %v4582_v35 = vld [vmem:[#allocation4 + $0x24] sm:$0xf0] }
 0x353   :  { %1972 = vst.msk [vmem:[#allocation4 + $0x3c] sm:$0xf] %vm614_vm7, %v1930_v13  ;;  %v4585_v36 = vor.u32 %v5012_v21, %v4582_v35 }
 0x354   :  { %v4592_v22 = vld [vmem:[#allocation4 + $0x30] sm:$0xf] }
 0x355   :  { %2835 = vmatmul.bf16.gmra.mxu1 %v4585_v36 }
 0x356   :  { %1721 = vrot.lane.b32.xlu1 %v1676_v16, %s5193_s16 }
 0x357   :  { %1833 = vrot.lane.b32.xlu2 %v1788_v15, %s5191_s20 }
 0x358   :  { %1943 = vrot.lane.b32.xlu0 %v2282_v10, %s5195_s0  ;;  %v2088_v59 = vpop.permute.xlu1 %2087 }
 0x359   :  { %v1822_v43 = vpop.permute.xlu2 %1821  ;;  %2131 = vst.msk [vmem:[#allocation4 + $0x34] sm:$0xf] %vm388_vm5, %v2088_v59 }
 0x35a   :  { %v2200_v18 = vpop.permute.xlu0 %2199  ;;  %v5016_v23 = vld [vmem:[#allocation4 + $0x38] sm:$0xf0] }
 0x35b   :  { %2243 = vst.msk [vmem:[#allocation4 + $0x34] sm:$0xf] %vm501_vm6, %v2200_v18  ;;  %v4593_v9 = vor.u32 %v5016_v23, %v4592_v22 }
 0x35c   :  { %2355 = vst.msk [vmem:[#allocation4 + $0x34] sm:$0xf] %vm614_vm7, %v2312_v4 }
 0x35d   :  { %2791 = vmatmul.bf16.gmra.mxu0 %v4593_v9 }
 0x35e   :  { %1945 = vrot.lane.b32.xlu1 %v1900_v27, %s5195_s0 }
 0x35f   :  { %2103 = vrot.lane.b32.xlu2 %v1676_v16, %s5193_s16 }
 0x360   :  { %2327 = vrot.lane.b32.xlu0 %v1900_v27, %s5195_s0  ;;  %v1710_v31 = vpop.permute.xlu1 %1709 }
 0x361   :  { %v2092_v28 = vpop.permute.xlu2 %2091  ;;  %1750 = vst.msk [vmem:[#allocation4 + $0x54] sm:$0xf] %vm388_vm5, %v1710_v31  ;;  %v5978_v31 = vld [vmem:[%s6332_s3 + $0x2] ss:$0 sm:$0xff] }
 0x362   :  { %2133 = vst.msk [vmem:[#allocation4 + $0x4c] sm:$0xf] %vm388_vm5, %v2092_v28  ;;  %v1708_v17 = vpop.permute.xlu0 %1707 }
 0x363   :  { %1862 = vst.msk [vmem:[#allocation4 + $0x54] sm:$0xf] %vm501_vm6, %v1822_v43  ;;  %v5015_v50 = vld [vmem:[#allocation4 + $0x34] sm:$0xf] }
 0x364   :  { %1749 = vst.msk [vmem:[#allocation4 + $0x48] sm:$0xf] %vm388_vm5, %v1708_v17 }
 0x366   :  { %2215 = vrot.lane.b32.xlu1 %v2171_v52, %s5191_s20 }
 0x367   :  { %1723 = vrot.lane.b32.xlu2 %v1677_v37, %s5193_s16 }
 0x368   :  { %1725 = vrot.lane.b32.xlu0 %v1678_v38, %s5193_s16  ;;  %v2202_v60 = vpop.permute.xlu1 %2201 }
 0x369   :  { %v1712_v39 = vpop.permute.xlu2 %1711  ;;  %2244 = vst.msk [vmem:[#allocation4 + $0x40] sm:$0xf] %vm501_vm6, %v2202_v60 }
 0x36a   :  { %1751 = vst.msk [vmem:[#allocation4 + $0x60] sm:$0xf] %vm388_vm5, %v1712_v39  ;;  %v2314_v40 = vpop.permute.xlu0 %2313 }
 0x36b   :  { %2356 = vst.msk [vmem:[#allocation4 + $0x40] sm:$0xf] %vm614_vm7, %v2314_v40 }
 0x36e   :  { %2329 = vrot.lane.b32.xlu1 %v2284_v44, %s5195_s0 }
 0x36f   :  { %2217 = vrot.lane.b32.xlu2 %v2172_v8, %s5191_s20 }
 0x370   :  { %2105 = vrot.lane.b32.xlu0 %v1677_v37, %s5193_s16  ;;  %v1820_v25 = vpop.permute.xlu1 %1819  ;;  %v2880_v37 = vpop.f32.mrf.mxu2 }
 0x371   :  { %v1824_v61 = vpop.permute.xlu2 %1823  ;;  %1861 = vst.msk [vmem:[#allocation4 + $0x48] sm:$0xf] %vm501_vm6, %v1820_v25 }
 0x372   :  { %1863 = vst.msk [vmem:[#allocation4 + $0x60] sm:$0xf] %vm501_vm6, %v1824_v61  ;;  %v1932_v53 = vpop.permute.xlu0 %1931  ;;  %v4594_v51 = vld [vmem:[#allocation4 + $0x3c] sm:$0xf0] }
 0x373   :  { %1973 = vst.msk [vmem:[#allocation4 + $0x48] sm:$0xf] %vm614_vm7, %v1932_v53  ;;  %v4597_v26 = vor.u32 %v5015_v50, %v4594_v51 }
 0x375   :  { %2840 = vmatmul.bf16.gmra.mxu1 %v4597_v26 }
 0x376   :  { %1947 = vrot.lane.b32.xlu1 %v2284_v44, %s5195_s0 }
 0x377   :  { %1835 = vrot.lane.b32.xlu2 %v1789_v2, %s5191_s20 }
 0x378   :  { %1837 = vrot.lane.b32.xlu0 %v1790_v54, %s5191_s20  ;;  %v1934_v56 = vpop.permute.xlu1 %1933  ;;  %v2882_v50 = vpop.f32.mrf.mxu2 }
 0x379   :  { %v1938_v55 = vpop.permute.xlu2 %1937  ;;  %1974 = vst.msk [vmem:[#allocation4 + $0x54] sm:$0xf] %vm614_vm7, %v1934_v56 }
 0x37a   :  { %v2316_v57 = vpop.permute.xlu0 %2315  ;;  %v4604_v45 = vld [vmem:[#allocation4 + $0x48] sm:$0xf] }
 0x37e   :  { %2331 = vrot.lane.b32.xlu1 %v1902_v63, %s5195_s0 }
 0x37f   :  { %1949 = vrot.lane.b32.xlu2 %v1902_v63, %s5195_s0 }
 0x380   :  { %2107 = vrot.lane.b32.xlu0 %v1678_v38, %s5193_s16  ;;  %v2204_v3 = vpop.permute.xlu1 %2203  ;;  %v5019_v62 = vld [vmem:[#allocation4 + $0x50] sm:$0xf0] }
 0x381   :  { %v2208_v1 = vpop.permute.xlu2 %2207  ;;  %2245 = vst.msk [vmem:[#allocation4 + $0x4c] sm:$0xf] %vm501_vm6, %v2204_v3  ;;  %v4605_v4 = vor.u32 %v5019_v62, %v4604_v45 }
 0x382   :  { %v1714_v42 = vpop.permute.xlu0 %1713  ;;  %2357 = vst.msk [vmem:[#allocation4 + $0x4c] sm:$0xf] %vm614_vm7, %v2316_v57 }
 0x383   :  { %1752 = vst.msk [vmem:[#allocation4 + $0x6c] sm:$0xf] %vm388_vm5, %v1714_v42  ;;  %2796 = vmatmul.bf16.gmra.mxu0 %v4605_v4 }
 0x387   :  { %2219 = vrot.lane.b32.xlu2 %v2173_v5, %s5191_s20 }
 0x388   :  { %v1936_v7 = vpop.permute.xlu1 %1935 }
 0x389   :  { %v2322_v6 = vpop.permute.xlu2 %2321  ;;  %1975 = vst.msk [vmem:[#allocation4 + $0x60] sm:$0xf] %vm614_vm7, %v1936_v7  ;;  %v5018_v10 = vld [vmem:[#allocation4 + $0x4c] sm:$0xf] }
 0x38a   :  { %v1826_v20 = vpop.permute.xlu0 %1825  ;;  %v4609_v11 = vor.u32 %v5018_v10, %v5798_v29 }
 0x38b   :  { %1864 = vst.msk [vmem:[#allocation4 + $0x6c] sm:$0xf] %vm501_vm6, %v1826_v20 }
 0x38c   :  { %1976 = vst.msk [vmem:[#allocation4 + $0x6c] sm:$0xf] %vm614_vm7, %v1938_v55  ;;  %2845 = vmatmul.bf16.gmra.mxu1 %v4609_v11 }
 0x390   :  { %v2320_v13 = vpop.permute.xlu1 %2319  ;;  %v4616_v19 = vld [vmem:[#allocation4 + $0x60] sm:$0xf] }
 0x391   :  { %v1940_v12 = vpop.permute.xlu2 %1939 }
 0x392   :  { %v2096_v14 = vpop.permute.xlu0 %2095 }
 0x393   :  { %2135 = vst.msk [vmem:[#allocation4 + $0x64] sm:$0xf] %vm388_vm5, %v2096_v14  ;;  %v5022_v21 = vld [vmem:[#allocation4 + $0x68] sm:$0xf0] }
 0x394   :  { %2247 = vst.msk [vmem:[#allocation4 + $0x64] sm:$0xf] %vm501_vm6, %v2208_v1  ;;  %v4617_v35 = vor.u32 %v5022_v21, %v4616_v19 }
 0x395   :  { %2359 = vst.msk [vmem:[#allocation4 + $0x64] sm:$0xf] %vm614_vm7, %v2320_v13 }
 0x396   :  { %2801 = vmatmul.bf16.gmra.mxu0 %v4617_v35  ;;  %v2885_v35 = vpop.f32.mrf.mxu2 }
 0x398   :  { %v1716_v15 = vpop.permute.xlu1 %1715 }
 0x399   :  { %v1718_v36 = vpop.permute.xlu2 %1717  ;;  %1753 = vst.msk [vmem:[#allocation4 + $0x78] sm:$0xf] %vm388_vm5, %v1716_v15 }
 0x39a   :  { %1754 = vst.msk [vmem:[#allocation4 + $0x84] sm:$0xf] %vm388_vm5, %v1718_v36  ;;  %v2210_v29 = vpop.permute.xlu0 %2209 }
 0x39c   :  { %v5021_v23 = vld [vmem:[#allocation4 + $0x64] sm:$0xf] }
 0x3a0   :  { %v2098_v43 = vpop.permute.xlu1 %2097 }
 0x3a1   :  { %v2324_v16 = vpop.permute.xlu2 %2323  ;;  %2136 = vst.msk [vmem:[#allocation4 + $0x70] sm:$0xf] %vm388_vm5, %v2098_v43  ;;  %v5103_v43 = vld [vmem:[#allocation5 + $0x230] sm:$0xff] }
 0x3a2   :  { %v1828_v59 = vpop.permute.xlu0 %1827  ;;  %2248 = vst.msk [vmem:[#allocation4 + $0x70] sm:$0xf] %vm501_vm6, %v2210_v29  ;;  %v2782_v28 = vpop.f32.mrf.mxu0 }
 0x3a3   :  { %2360 = vst.msk [vmem:[#allocation4 + $0x70] sm:$0xf] %vm614_vm7, %v2322_v6  ;;  %v2783_v32 = vadd.f32 %v5978_v31, %v2782_v28 }
 0x3a4   :  { %1865 = vst.msk [vmem:[#allocation4 + $0x78] sm:$0xf] %vm501_vm6, %v1828_v59 }
 0x3a5   :  { %1977 = vst.msk [vmem:[#allocation4 + $0x78] sm:$0xf] %vm614_vm7, %v1940_v12  ;;  %v5104_v12 = vld [vmem:[#allocation5 + $0x238] sm:$0xff] }
 0x3a6   :  { %4224 = vmatpush.bf16.msra.mxu1 %v5104_v12 }
 0x3a8   :  { %v1830_v47 = vpop.permute.xlu1 %1829 }
 0x3a9   :  { %v2102_v18 = vpop.permute.xlu2 %2101  ;;  %1866 = vst.msk [vmem:[#allocation4 + $0x84] sm:$0xf] %vm501_vm6, %v1830_v47 }
 0x3aa   :  { %2138 = vst.msk [vmem:[#allocation4 + $0x88] sm:$0xf] %vm388_vm5, %v2102_v18  ;;  %v1942_v22 = vpop.permute.xlu0 %1941  ;;  %v4618_v9 = vld [vmem:[#allocation4 + $0x6c] sm:$0xf0]  ;;  %v2784_v0 = vpop.f32.mrf.mxu0  ;;  %4225 = vmatpush.bf16.msra.mxu1 %v5103_v43 }
 0x3ab   :  { %1978 = vst.msk [vmem:[#allocation4 + $0x84] sm:$0xf] %vm614_vm7, %v1942_v22  ;;  %v4621_v27 = vor.u32 %v5021_v23, %v4618_v9  ;;  %v2785_v25 = vadd.f32 %v5978_v31, %v2784_v0 }
 0x3ac   :  { %v4628_v38 = vld [vmem:[#allocation4 + $0x78] sm:$0xf] }
 0x3ad   :  { %2850 = vmatmul.bf16.gmra.mxu1 %v4621_v27  ;;  %v5102_v27 = vld [vmem:[#allocation5 + $0x228] sm:$0xff] }
 0x3ae   :  { %4226 = vmatpush.bf16.msra.mxu1 %v5102_v27 }
 0x3b0   :  { %v2100_v24 = vpop.permute.xlu1 %2099 }
 0x3b1   :  { %v1834_v17 = vpop.permute.xlu2 %1833  ;;  %2137 = vst.msk [vmem:[#allocation4 + $0x7c] sm:$0xf] %vm388_vm5, %v2100_v24 }
 0x3b2   :  { %v2212_v33 = vpop.permute.xlu0 %2211  ;;  %v2831_v52 = vpop.f32.mrf.mxu1  ;;  %v5025_v39 = vld [vmem:[#allocation4 + $0x80] sm:$0xf0] }
 0x3b3   :  { %2249 = vst.msk [vmem:[#allocation4 + $0x7c] sm:$0xf] %vm501_vm6, %v2212_v33  ;;  %v2832_v60 = vadd.f32 %v2831_v52, %v2783_v32  ;;  %v4629_v40 = vor.u32 %v5025_v39, %v4628_v38  ;;  %v2887_v32 = vpop.f32.mrf.mxu2  ;;  %v4660_v33 = vld [vmem:[#allocation4 + $0xb0] sm:$0xf]  ;;  %v5101_v39 = vld [vmem:[#allocation5 + $0x220] sm:$0xff] }
 0x3b4   :  { %2361 = vst.msk [vmem:[#allocation4 + $0x7c] sm:$0xf] %vm614_vm7, %v2324_v16  ;;  %4227 = vmatpush.bf16.msra.mxu1 %v5101_v39 }
 0x3b5   :  { %v2881_v41 = vadd.f32 %v2880_v37, %v2832_v60  ;;  %2806 = vmatmul.bf16.gmra.mxu0 %v4629_v40  ;;  %v5032_v37 = vld [vmem:[#allocation4 + $0xb8] sm:$0xf0]  ;;  %3766 = vst.msk [vmem:[#allocation4 + $0xb0] sm:$0xf] %vm275_vm4, %v5812_v46 }
 0x3b6   :  { %v4661_v38 = vor.u32 %v5032_v37, %v4660_v33 }
 0x3b7   :  { %v2920_v8 = vmax.f32 %v2881_v41, 0.0 }
 0x3b8   :  { %v2214_v61 = vpop.permute.xlu1 %2213  ;;  %2914 = vmatmul.bf16.gmra.mxu2 %v4661_v38 }
 0x3b9   :  { %v2104_v44 = vpop.permute.xlu2 %2103  ;;  %2936 = vst.msk [vmem:[#allocation2] sm:$0xff] %vm209_vm3, %v2920_v8 }
 0x3ba   :  { %v1720_v53 = vpop.permute.xlu0 %1719  ;;  %2139 = vst.msk [vmem:[#allocation4 + $0x94] sm:$0xf] %vm388_vm5, %v2104_v44  ;;  %v2833_v48 = vpop.f32.mrf.mxu1 }
 0x3bb   :  { %2250 = vst.msk [vmem:[#allocation4 + $0x88] sm:$0xf] %vm501_vm6, %v2214_v61  ;;  %v2834_v49 = vadd.f32 %v2833_v48, %v2785_v25  ;;  %v5024_v7 = vld [vmem:[#allocation4 + $0x7c] sm:$0xf]  ;;  %v2787_v10 = vpop.f32.mrf.mxu0 }
 0x3bc   :  { %1755 = vst.msk [vmem:[#allocation4 + $0x90] sm:$0xf] %vm388_vm5, %v1720_v53  ;;  %v2788_v14 = vadd.f32 %v5978_v31, %v2787_v10  ;;  %v3735_v48 = vld [vmem:[#allocation2 + $0x98] sm:$0xff] }
 0x3bd   :  { %v2883_v51 = vadd.f32 %v2882_v50, %v2834_v49  ;;  %v5100_v49 = vld [vmem:[#allocation5 + $0x218] sm:$0xff]  ;;  %v3751_v50 = vpack.c.bf16 %v3735_v48, %v3735_v48 }
 0x3be   :  { %4228 = vmatpush.bf16.msra.mxu1 %v5100_v49 }
 0x3bf   :  { %v2921_v26 = vmax.f32 %v2883_v51, 0.0  ;;  %3767 = vst.msk [vmem:[#allocation4 + $0xbc] sm:$0xf] %vm275_vm4, %v3751_v50 }
 0x3c0   :  { %v1832_v54 = vpop.permute.xlu1 %1831  ;;  %v2952_v55 = vld [vmem:[#allocation2] sm:$0xff] }
 0x3c1   :  { %v1724_v2 = vpop.permute.xlu2 %1723  ;;  %2937 = vst.msk [vmem:[#allocation2 + $0x8] sm:$0xff] %vm209_vm3, %v2921_v26  ;;  %v2968_v57 = vpack.c.bf16 %v2952_v55, %v2952_v55  ;;  %v5099_v26 = vld [vmem:[#allocation5 + $0x210] sm:$0xff] }
 0x3c2   :  { %v2326_v56 = vpop.permute.xlu0 %2325  ;;  %1757 = vst.msk [vmem:[#allocation4 + $0xa8] sm:$0xf] %vm388_vm5, %v1724_v2  ;;  %4229 = vmatpush.bf16.msra.mxu1 %v5099_v26 }
 0x3c3   :  { %1867 = vst.msk [vmem:[#allocation4 + $0x90] sm:$0xf] %vm501_vm6, %v1832_v54  ;;  %v2789_v16 = vpop.f32.mrf.mxu0 }
 0x3c4   :  { %2362 = vst.msk [vmem:[#allocation4 + $0x88] sm:$0xf] %vm614_vm7, %v2326_v56  ;;  %v2790_v47 = vadd.f32 %v5978_v31, %v2789_v16  ;;  %v5098_v56 = vld [vmem:[#allocation5 + $0x208] sm:$0xff] }
 0x3c5   :  { %2984 = vst.msk [vmem:[#allocation4] sm:$0xf] %vm275_vm4, %v2968_v57 }
 0x3c6   :  { %4230 = vmatpush.bf16.msra.mxu1 %v5098_v56 }
 0x3c8   :  { %v1722_v63 = vpop.permute.xlu1 %1721  ;;  %v3224_v1 = vld [vmem:[#allocation2 + $0x7] sm:$0xff] }
 0x3c9   :  { %v5994_v58 = vpop.permute.xlu2 %2217  ;;  %v3112_v3 = vld [vmem:[#allocation2 + $0x2] sm:$0xff]  ;;  %1756 = vst.msk [vmem:[#allocation4 + $0x9c] sm:$0xf] %vm388_vm5, %v1722_v63  ;;  %v3240_v42 = vpack.c.bf16 %v3224_v1, %v3224_v1 }
 0x3ca   :  { %v3000_v45 = vld [vmem:[#allocation2 + $0x1] sm:$0xff]  ;;  %v1944_v62 = vpop.permute.xlu0 %1943  ;;  %v3128_v4 = vpack.c.bf16 %v3112_v3, %v3112_v3  ;;  %1868 = vst.msk [vmem:[#allocation4 + $0x9c] sm:$0xf] %vm501_vm6, %v1834_v17 }
 0x3cb   :  { %v3016_v30 = vpack.c.bf16 %v3000_v45, %v3000_v45  ;;  %v2953_v5 = vld [vmem:[#allocation2 + $0x8] sm:$0xff]  ;;  %1979 = vst.msk [vmem:[#allocation4 + $0x90] sm:$0xf] %vm614_vm7, %v1944_v62  ;;  %3272 = vrot.lane.b32.xlu1 %v3240_v42, %s5195_s0 }
 0x3cc   :  { %v2969_v6 = vpack.c.bf16 %v2953_v5, %v2953_v5  ;;  %v4630_v20 = vld [vmem:[#allocation4 + $0x84] sm:$0xf0]  ;;  %3160 = vrot.lane.b32.xlu2 %v3128_v4, %s5191_s20  ;;  %v5097_v5 = vld [vmem:[#allocation5 + $0x200] sm:$0xff] }
 0x3cd   :  { %v4633_v11 = vor.u32 %v5024_v7, %v4630_v20  ;;  %3048 = vrot.lane.b32.xlu0 %v3016_v30, %s5193_s16  ;;  %4231 = vmatpush.bf16.msra.mxu1 %v5097_v5  ;;  %v2890_v20 = vpop.f32.mrf.mxu2 }
 0x3ce   :  { %2985 = vst.msk [vmem:[#allocation4 + $0xc] sm:$0xf] %vm275_vm4, %v2969_v6 }
 0x3cf   :  { %3368 = vst.msk [vmem:[#allocation4 + $0x4] sm:$0xf] %vm275_vm4, %v2969_v6  ;;  %2855 = vmatmul.bf16.gmra.mxu1 %v4633_v11 }
 0x3d0   :  { %v1946_v19 = vpop.permute.xlu1 %1945 }
 0x3d1   :  { %v1836_v13 = vpop.permute.xlu2 %1835  ;;  %1980 = vst.msk [vmem:[#allocation4 + $0x9c] sm:$0xf] %vm614_vm7, %v1946_v19 }
 0x3d2   :  { %1869 = vst.msk [vmem:[#allocation4 + $0xa8] sm:$0xf] %vm501_vm6, %v1836_v13  ;;  %v2328_v21 = vpop.permute.xlu0 %2327  ;;  %v2836_v36 = vpop.f32.mrf.mxu1  ;;  %v4640_v23 = vld [vmem:[#allocation4 + $0x90] sm:$0xf] }
 0x3d3   :  { %v2837_v15 = vadd.f32 %v2836_v36, %v2788_v14 }
 0x3d5   :  { %v2886_v29 = vadd.f32 %v2885_v35, %v2837_v15 }
 0x3d7   :  { %v2922_v59 = vmax.f32 %v2886_v29, 0.0 }
 0x3d8   :  { %v2216_v18 = vpop.permute.xlu1 %2215  ;;  %v5028_v9 = vld [vmem:[#allocation4 + $0x98] sm:$0xf0] }
 0x3d9   :  { %2938 = vst.msk [vmem:[#allocation2 + $0x10] sm:$0xff] %vm209_vm3, %v2922_v59  ;;  %v4641_v17 = vor.u32 %v5028_v9, %v4640_v23  ;;  %v1950_v54 = vpop.permute.xlu2 %1949 }
 0x3da   :  { %v1726_v22 = vpop.permute.xlu0 %1725  ;;  %2251 = vst.msk [vmem:[#allocation4 + $0x94] sm:$0xf] %vm501_vm6, %v2216_v18  ;;  %v2838_v28 = vpop.f32.mrf.mxu1 }
 0x3db   :  { %2363 = vst.msk [vmem:[#allocation4 + $0x94] sm:$0xf] %vm614_vm7, %v2328_v21  ;;  %v2839_v24 = vadd.f32 %v2838_v28, %v2790_v47  ;;  %2811 = vmatmul.bf16.gmra.mxu0 %v4641_v17  ;;  %v2792_v62 = vpop.f32.mrf.mxu0  ;;  %v2892_v28 = vpop.f32.mrf.mxu2 }
 0x3dc   :  { %1758 = vst.msk [vmem:[#allocation4 + $0xb4] sm:$0xf] %vm388_vm5, %v1726_v22  ;;  %v2793_v10 = vadd.f32 %v5978_v31, %v2792_v62 }
 0x3dd   :  { %v2888_v52 = vadd.f32 %v2887_v32, %v2839_v24 }
 0x3df   :  { %v2923_v60 = vmax.f32 %v2888_v52, 0.0 }
 0x3e0   :  { %v2330_v40 = vpop.permute.xlu1 %2329  ;;  %v3001_v41 = vld [vmem:[#allocation2 + $0x9] sm:$0xff] }
 0x3e1   :  { %v3225_v0 = vld [vmem:[#allocation2 + $0xf] sm:$0xff]  ;;  %2939 = vst.msk [vmem:[#allocation2 + $0x18] sm:$0xff] %vm209_vm3, %v2923_v60  ;;  %v3017_v61 = vpack.c.bf16 %v3001_v41, %v3001_v41  ;;  %v2220_v19 = vpop.permute.xlu2 %2219 }
 0x3e2   :  { %v3113_v8 = vld [vmem:[#allocation2 + $0xa] sm:$0xff]  ;;  %v2106_v44 = vpop.permute.xlu0 %2105  ;;  %v3241_v25 = vpack.c.bf16 %v3225_v0, %v3225_v0  ;;  %v5027_v3 = vld [vmem:[#allocation4 + $0x94] sm:$0xf] }
 0x3e3   :  { %v3129_v53 = vpack.c.bf16 %v3113_v8, %v3113_v8  ;;  %2140 = vst.msk [vmem:[#allocation4 + $0xa0] sm:$0xf] %vm388_vm5, %v2106_v44  ;;  %v3720_v46 = vld [vmem:[#allocation2 + $0x10] sm:$0xff]  ;;  %3050 = vrot.lane.b32.xlu1 %v3017_v61, %s5193_s16  ;;  %v2794_v43 = vpop.f32.mrf.mxu0  ;;  %v2895_v44 = vpop.f32.mrf.mxu2 }
 0x3e4   :  { %2252 = vst.msk [vmem:[#allocation4 + $0xa0] sm:$0xf] %vm501_vm6, %v5994_v58  ;;  %3274 = vrot.lane.b32.xlu2 %v3241_v25, %s5195_s0  ;;  %v3736_v51 = vpack.c.bf16 %v3720_v46, %v3720_v46  ;;  %v3496_v2 = vld [vmem:[#allocation2 + $0xe] sm:$0xff]  ;;  %v2795_v47 = vadd.f32 %v5978_v31, %v2794_v43 }
 0x3e5   :  { %2364 = vst.msk [vmem:[#allocation4 + $0xa0] sm:$0xf] %vm614_vm7, %v2330_v40  ;;  %3162 = vrot.lane.b32.xlu0 %v3129_v53, %s5191_s20  ;;  %v3512_v58 = vpack.c.bf16 %v3496_v2, %v3496_v2 }
 0x3e6   :  { %3752 = vst.msk [vmem:[#allocation4 + $0x8] sm:$0xf] %vm275_vm4, %v3736_v51 }
 0x3e7   :  { %3369 = vst.msk [vmem:[#allocation4 + $0x10] sm:$0xf] %vm275_vm4, %v3736_v51 }
 0x3e8   :  { %v1948_v55 = vpop.permute.xlu1 %1947  ;;  %2986 = vst.msk [vmem:[#allocation4 + $0x18] sm:$0xf] %vm275_vm4, %v3736_v51  ;;  %v3721_v63 = vld [vmem:[#allocation2 + $0x18] sm:$0xff] }
 0x3e9   :  { %1981 = vst.msk [vmem:[#allocation4 + $0xa8] sm:$0xf] %vm614_vm7, %v1948_v55  ;;  %v3737_v1 = vpack.c.bf16 %v3721_v63, %v3721_v63  ;;  %v3385_v4 = vld [vmem:[#allocation2 + $0x11] sm:$0xff] }
 0x3ea   :  { %v1838_v57 = vpop.permute.xlu0 %1837  ;;  %v3609_v30 = vld [vmem:[#allocation2 + $0x17] sm:$0xff]  ;;  %v3401_v12 = vpack.c.bf16 %v3385_v4, %v3385_v4 }
 0x3eb   :  { %1870 = vst.msk [vmem:[#allocation4 + $0xb4] sm:$0xf] %vm501_vm6, %v1838_v57  ;;  %3656 = vrot.lane.b32.xlu1 %v3241_v25, %s5195_s0  ;;  %v3497_v6 = vld [vmem:[#allocation2 + $0x16] sm:$0xff]  ;;  %v3625_v13 = vpack.c.bf16 %v3609_v30, %v3609_v30 }
 0x3ec   :  { %1982 = vst.msk [vmem:[#allocation4 + $0xb4] sm:$0xf] %vm614_vm7, %v1950_v54  ;;  %3544 = vrot.lane.b32.xlu2 %v3512_v58, %s5191_s20  ;;  %v4642_v45 = vld [vmem:[#allocation4 + $0x9c] sm:$0xf0]  ;;  %v3513_v21 = vpack.c.bf16 %v3497_v6, %v3497_v6  ;;  %v3114_v59 = vld [vmem:[#allocation2 + $0x12] sm:$0xff] }
 0x3ed   :  { %3432 = vrot.lane.b32.xlu0 %v3017_v61, %s5193_s16  ;;  %v4645_v42 = vor.u32 %v5027_v3, %v4642_v45  ;;  %3753 = vst.msk [vmem:[#allocation4 + $0x14] sm:$0xf] %vm275_vm4, %v3737_v1  ;;  %v3130_v22 = vpack.c.bf16 %v3114_v59, %v3114_v59  ;;  %v4769_v46 = vld [vmem:[#allocation4 + $0x8] sm:$0xf]  ;;  %v5087_v59 = vld [vmem:[#allocation5 + $0x1b0] sm:$0xff] }
 0x3ee   :  { %2987 = vst.msk [vmem:[#allocation4 + $0x24] sm:$0xf] %vm275_vm4, %v3737_v1 }
 0x3ef   :  { %2860 = vmatmul.bf16.gmra.mxu1 %v4645_v42  ;;  %3370 = vst.msk [vmem:[#allocation4 + $0x1c] sm:$0xf] %vm275_vm4, %v3737_v1  ;;  %v2897_v42 = vpop.f32.mrf.mxu2 }
 0x3f0   :  { %v4652_v7 = vld [vmem:[#allocation4 + $0xa8] sm:$0xf]  ;;  %v2332_v36 = vpop.permute.xlu1 %2331 }
 0x3f2   :  { %v2108_v11 = vpop.permute.xlu0 %2107  ;;  %v2841_v14 = vpop.f32.mrf.mxu1 }
 0x3f3   :  { %2141 = vst.msk [vmem:[#allocation4 + $0xac] sm:$0xf] %vm388_vm5, %v2108_v11  ;;  %v5031_v35 = vld [vmem:[#allocation4 + $0xb0] sm:$0xf0]  ;;  %v2842_v15 = vadd.f32 %v2841_v14, %v2793_v10  ;;  %3434 = vrot.lane.b32.xlu1 %v3401_v12, %s5193_s16 }
 0x3f4   :  { %2253 = vst.msk [vmem:[#allocation4 + $0xac] sm:$0xf] %vm501_vm6, %v2220_v19  ;;  %3658 = vrot.lane.b32.xlu2 %v3625_v13, %s5195_s0  ;;  %v4653_v29 = vor.u32 %v5031_v35, %v4652_v7  ;;  %v5059_v53 = vld [vmem:[#allocation4 + $0x10] sm:$0xf0] }
 0x3f5   :  { %2365 = vst.msk [vmem:[#allocation4 + $0xac] sm:$0xf] %vm614_vm7, %v2332_v36  ;;  %3546 = vrot.lane.b32.xlu0 %v3513_v21, %s5191_s20  ;;  %v2891_v16 = vadd.f32 %v2890_v20, %v2842_v15  ;;  %v4770_v26 = vor.u32 %v5059_v53, %v4769_v46 }
 0x3f6   :  { %2816 = vmatmul.bf16.gmra.mxu0 %v4653_v29  ;;  %v5088_v29 = vld [vmem:[#allocation5 + $0x1b8] sm:$0xff] }
 0x3f7   :  { %v2924_v18 = vmax.f32 %v2891_v16, 0.0  ;;  %4126 = vmatpush.bf16.msrb.mxu3 %v5088_v29 }
 0x3f9   :  { %2940 = vst.msk [vmem:[#allocation2 + $0x20] sm:$0xff] %vm209_vm3, %v2924_v18 }
 0x3fa   :  { %v2843_v23 = vpop.f32.mrf.mxu1 }
 0x3fb   :  { %v2844_v9 = vadd.f32 %v2843_v23, %v2795_v47  ;;  %3276 = vrot.lane.b32.xlu1 %v3625_v13, %s5195_s0  ;;  %4127 = vmatpush.bf16.msrb.mxu3 %v5087_v59 }
 0x3fc   :  { %3164 = vrot.lane.b32.xlu2 %v3130_v22, %s5191_s20  ;;  %v5030_v27 = vld [vmem:[#allocation4 + $0xac] sm:$0xf] }
 0x3fd   :  { %3052 = vrot.lane.b32.xlu0 %v3401_v12, %s5193_s16  ;;  %v4657_v17 = vor.u32 %v5030_v27, %v5815_v34  ;;  %v2893_v24 = vadd.f32 %v2892_v28, %v2844_v9  ;;  %v2900_v27 = vpop.f32.mrf.mxu2 }
 0x3ff   :  { %2865 = vmatmul.bf16.gmra.mxu1 %v4657_v17  ;;  %v2925_v32 = vmax.f32 %v2893_v24, 0.0 }
 0x400   :  { %v3003_v33 = vld [vmem:[#allocation2 + $0x19] sm:$0xff]  ;;  %v2797_v0 = vpop.f32.mrf.mxu0 }
 0x401   :  { %v3227_v37 = vld [vmem:[#allocation2 + $0x1f] sm:$0xff]  ;;  %2941 = vst.msk [vmem:[#allocation2 + $0x28] sm:$0xff] %vm209_vm3, %v2925_v32  ;;  %v3019_v38 = vpack.c.bf16 %v3003_v33, %v3003_v33  ;;  %v2798_v8 = vadd.f32 %v5978_v31, %v2797_v0 }
 0x402   :  { %v3115_v52 = vld [vmem:[#allocation2 + $0x1a] sm:$0xff]  ;;  %v3243_v39 = vpack.c.bf16 %v3227_v37, %v3227_v37 }
 0x403   :  { %v3131_v60 = vpack.c.bf16 %v3115_v52, %v3115_v52  ;;  %v3722_v40 = vld [vmem:[#allocation2 + $0x20] sm:$0xff]  ;;  %3054 = vrot.lane.b32.xlu1 %v3019_v38, %s5193_s16 }
 0x404   :  { %v3738_v41 = vpack.c.bf16 %v3722_v40, %v3722_v40  ;;  %3278 = vrot.lane.b32.xlu2 %v3243_v39, %s5195_s0  ;;  %v3498_v34 = vld [vmem:[#allocation2 + $0x1e] sm:$0xff] }
 0x405   :  { %3166 = vrot.lane.b32.xlu0 %v3131_v60, %s5191_s20  ;;  %v3514_v25 = vpack.c.bf16 %v3498_v34, %v3498_v34  ;;  %v5086_v60 = vld [vmem:[#allocation5 + $0x1a8] sm:$0xff] }
 0x406   :  { %3754 = vst.msk [vmem:[#allocation4 + $0x20] sm:$0xf] %vm275_vm4, %v3738_v41  ;;  %4128 = vmatpush.bf16.msrb.mxu3 %v5086_v60 }
 0x407   :  { %3371 = vst.msk [vmem:[#allocation4 + $0x28] sm:$0xf] %vm275_vm4, %v3738_v41 }
 0x408   :  { %2988 = vst.msk [vmem:[#allocation4 + $0x30] sm:$0xf] %vm275_vm4, %v3738_v41  ;;  %v3723_v48 = vld [vmem:[#allocation2 + $0x28] sm:$0xff]  ;;  %v2799_v2 = vpop.f32.mrf.mxu0 }
 0x409   :  { %v2846_v61 = vpop.f32.mrf.mxu1  ;;  %v3739_v50 = vpack.c.bf16 %v3723_v48, %v3723_v48  ;;  %v3387_v55 = vld [vmem:[#allocation2 + $0x21] sm:$0xff]  ;;  %v2800_v58 = vadd.f32 %v5978_v31, %v2799_v2 }
 0x40a   :  { %v2847_v49 = vadd.f32 %v2846_v61, %v2798_v8  ;;  %v3611_v56 = vld [vmem:[#allocation2 + $0x27] sm:$0xff]  ;;  %v3403_v1 = vpack.c.bf16 %v3387_v55, %v3387_v55 }
 0x40b   :  { %3660 = vrot.lane.b32.xlu1 %v3243_v39, %s5195_s0  ;;  %3755 = vst.msk [vmem:[#allocation4 + $0x2c] sm:$0xf] %vm275_vm4, %v3739_v50  ;;  %v3499_v57 = vld [vmem:[#allocation2 + $0x26] sm:$0xff]  ;;  %v3627_v3 = vpack.c.bf16 %v3611_v56, %v3611_v56 }
 0x40c   :  { %3548 = vrot.lane.b32.xlu2 %v3514_v25, %s5191_s20  ;;  %v2896_v51 = vadd.f32 %v2895_v44, %v2847_v49  ;;  %2989 = vst.msk [vmem:[#allocation4 + $0x3c] sm:$0xf] %vm275_vm4, %v3739_v50  ;;  %v3515_v62 = vpack.c.bf16 %v3499_v57, %v3499_v57  ;;  %v3116_v5 = vld [vmem:[#allocation2 + $0x22] sm:$0xff]  ;;  %v2902_v25 = vpop.f32.mrf.mxu2  ;;  %v5083_v57 = vld [vmem:[#allocation5 + $0x190] sm:$0xff] }
 0x40d   :  { %3436 = vrot.lane.b32.xlu0 %v3019_v38, %s5193_s16  ;;  %3372 = vst.msk [vmem:[#allocation4 + $0x34] sm:$0xf] %vm275_vm4, %v3739_v50  ;;  %v3132_v7 = vpack.c.bf16 %v3116_v5, %v3116_v5  ;;  %v4781_v11 = vld [vmem:[#allocation4 + $0x20] sm:$0xf] }
 0x40e   :  { %v2926_v54 = vmax.f32 %v2896_v51, 0.0  ;;  %v5085_v44 = vld [vmem:[#allocation5 + $0x1a0] sm:$0xff]  ;;  %v5084_v51 = vld [vmem:[#allocation5 + $0x198] sm:$0xff] }
 0x40f   :  { %4232 = vmatmul.bf16.vlgmr.msra.gmra.mxu1 %v4770_v26  ;;  %4129 = vmatpush.bf16.msrb.mxu3 %v5085_v44  ;;  %v5096_v26 = vld [vmem:[#allocation5 + $0x1f8] sm:$0xff] }
 0x410   :  { %2942 = vst.msk [vmem:[#allocation2 + $0x30] sm:$0xff] %vm209_vm3, %v2926_v54  ;;  %4175 = vmatpush.bf16.msra.mxu0 %v5096_v26 }
 0x411   :  { %v2848_v63 = vpop.f32.mrf.mxu1 }
 0x412   :  { %v2849_v45 = vadd.f32 %v2848_v63, %v2800_v58  ;;  %v5062_v20 = vld [vmem:[#allocation4 + $0x28] sm:$0xf0]  ;;  %v5095_v58 = vld [vmem:[#allocation5 + $0x1f0] sm:$0xff] }
 0x413   :  { %3438 = vrot.lane.b32.xlu1 %v3403_v1, %s5193_s16  ;;  %v4782_v12 = vor.u32 %v5062_v20, %v4781_v11  ;;  %v2802_v43 = vpop.f32.mrf.mxu0  ;;  %4130 = vmatpush.bf16.msrb.mxu3 %v5084_v51  ;;  %v4805_v63 = vld [vmem:[#allocation4 + $0x50] sm:$0xf]  ;;  %v5081_v20 = vld [vmem:[#allocation5 + $0x180] sm:$0xff] }
 0x414   :  { %3662 = vrot.lane.b32.xlu2 %v3627_v3, %s5195_s0  ;;  %v2898_v4 = vadd.f32 %v2897_v42, %v2849_v45  ;;  %v2803_v47 = vadd.f32 %v5978_v31, %v2802_v43  ;;  %4176 = vmatpush.bf16.msra.mxu0 %v5095_v58  ;;  %v5094_v42 = vld [vmem:[#allocation5 + $0x1e8] sm:$0xff]  ;;  %v2905_v29 = vpop.f32.mrf.mxu2 }
 0x415   :  { %3550 = vrot.lane.b32.xlu0 %v3515_v62, %s5191_s20  ;;  %v5082_v62 = vld [vmem:[#allocation5 + $0x188] sm:$0xff] }
 0x416   :  { %v2927_v30 = vmax.f32 %v2898_v4, 0.0 }
 0x417   :  { %v3724_v6 = vld [vmem:[#allocation2 + $0x30] sm:$0xff]  ;;  %4131 = vmatpush.bf16.msrb.mxu3 %v5083_v57 }
 0x418   :  { %2943 = vst.msk [vmem:[#allocation2 + $0x38] sm:$0xff] %vm209_vm3, %v2927_v30  ;;  %v3740_v10 = vpack.c.bf16 %v3724_v6, %v3724_v6  ;;  %v3005_v13 = vld [vmem:[#allocation2 + $0x29] sm:$0xff]  ;;  %4177 = vmatpush.bf16.msra.mxu0 %v5094_v42 }
 0x419   :  { %v3229_v19 = vld [vmem:[#allocation2 + $0x2f] sm:$0xff]  ;;  %v3021_v36 = vpack.c.bf16 %v3005_v13, %v3005_v13 }
 0x41a   :  { %3756 = vst.msk [vmem:[#allocation4 + $0x38] sm:$0xf] %vm275_vm4, %v3740_v10  ;;  %v3117_v14 = vld [vmem:[#allocation2 + $0x2a] sm:$0xff]  ;;  %v3245_v15 = vpack.c.bf16 %v3229_v19, %v3229_v19 }
 0x41b   :  { %3280 = vrot.lane.b32.xlu1 %v3627_v3, %s5195_s0  ;;  %3373 = vst.msk [vmem:[#allocation4 + $0x40] sm:$0xf] %vm275_vm4, %v3740_v10  ;;  %v3133_v16 = vpack.c.bf16 %v3117_v14, %v3117_v14  ;;  %v3500_v18 = vld [vmem:[#allocation2 + $0x2e] sm:$0xff]  ;;  %v2804_v33 = vpop.f32.mrf.mxu0  ;;  %4132 = vmatpush.bf16.msrb.mxu3 %v5082_v62 }
 0x41c   :  { %3168 = vrot.lane.b32.xlu2 %v3132_v7, %s5191_s20  ;;  %2990 = vst.msk [vmem:[#allocation4 + $0x48] sm:$0xf] %vm275_vm4, %v3740_v10  ;;  %v3516_v22 = vpack.c.bf16 %v3500_v18, %v3500_v18  ;;  %v2805_v40 = vadd.f32 %v5978_v31, %v2804_v33  ;;  %v5093_v10 = vld [vmem:[#allocation5 + $0x1e0] sm:$0xff] }
 0x41d   :  { %3056 = vrot.lane.b32.xlu0 %v3403_v1, %s5193_s16  ;;  %v5068_v1 = vld [vmem:[#allocation4 + $0x58] sm:$0xf0]  ;;  %4178 = vmatpush.bf16.msra.mxu0 %v5093_v10 }
 0x41e   :  { %v4806_v3 = vor.u32 %v5068_v1, %v4805_v63 }
 0x41f   :  { %4237 = vmatmul.bf16.gmra.mxu1 %v4782_v12  ;;  %v3725_v21 = vld [vmem:[#allocation2 + $0x38] sm:$0xff]  ;;  %4133 = vmatpush.bf16.msrb.mxu3 %v5081_v20 }
 0x420   :  { %v3741_v35 = vpack.c.bf16 %v3725_v21, %v3725_v21  ;;  %v3389_v37 = vld [vmem:[#allocation2 + $0x31] sm:$0xff]  ;;  %v3007_v49 = vld [vmem:[#allocation2 + $0x39] sm:$0xff] }
 0x421   :  { %v4793_v23 = vld [vmem:[#allocation4 + $0x38] sm:$0xf]  ;;  %v3405_v41 = vpack.c.bf16 %v3389_v37, %v3389_v37  ;;  %v3023_v54 = vpack.c.bf16 %v3007_v49, %v3007_v49  ;;  %v3231_v30 = vld [vmem:[#allocation2 + $0x3f] sm:$0xff] }
 0x422   :  { %3757 = vst.msk [vmem:[#allocation4 + $0x44] sm:$0xf] %vm275_vm4, %v3741_v35  ;;  %v3613_v52 = vld [vmem:[#allocation2 + $0x37] sm:$0xff]  ;;  %v3247_v7 = vpack.c.bf16 %v3231_v30, %v3231_v30 }
 0x423   :  { %3058 = vrot.lane.b32.xlu1 %v3021_v36, %s5193_s16  ;;  %2991 = vst.msk [vmem:[#allocation4 + $0x54] sm:$0xf] %vm275_vm4, %v3741_v35  ;;  %v3501_v39 = vld [vmem:[#allocation2 + $0x36] sm:$0xff]  ;;  %v3629_v0 = vpack.c.bf16 %v3613_v52, %v3613_v52  ;;  %v5089_v52 = vld [vmem:[#allocation5 + $0x1c0] sm:$0xff] }
 0x424   :  { %3282 = vrot.lane.b32.xlu2 %v3245_v15, %s5195_s0  ;;  %3374 = vst.msk [vmem:[#allocation4 + $0x4c] sm:$0xf] %vm275_vm4, %v3741_v35  ;;  %v3517_v8 = vpack.c.bf16 %v3501_v39, %v3501_v39  ;;  %v3118_v50 = vld [vmem:[#allocation2 + $0x32] sm:$0xff]  ;;  %v3119_v5 = vld [vmem:[#allocation2 + $0x3a] sm:$0xff]  ;;  %v2907_v39 = vpop.f32.mrf.mxu2 }
 0x425   :  { %3170 = vrot.lane.b32.xlu0 %v3133_v16, %s5191_s20  ;;  %v3134_v55 = vpack.c.bf16 %v3118_v50, %v3118_v50  ;;  %v3135_v12 = vpack.c.bf16 %v3119_v5, %v3119_v5  ;;  %v5092_v21 = vld [vmem:[#allocation5 + $0x1d8] sm:$0xff] }
 0x426   :  { %v3161_v53 = vpop.permute.xlu2 %3160  ;;  %v3502_v35 = vld [vmem:[#allocation2 + $0x3e] sm:$0xff]  ;;  %4179 = vmatpush.bf16.msra.mxu0 %v5092_v21 }
 0x429   :  { %v5065_v9 = vld [vmem:[#allocation4 + $0x40] sm:$0xf0] }
 0x42a   :  { %v2851_v28 = vpop.f32.mrf.mxu1  ;;  %v4794_v17 = vor.u32 %v5065_v9, %v4793_v23 }
 0x42b   :  { %v2852_v24 = vadd.f32 %v2851_v28, %v2803_v47  ;;  %3664 = vrot.lane.b32.xlu1 %v3245_v15, %s5195_s0  ;;  %v5091_v15 = vld [vmem:[#allocation5 + $0x1d0] sm:$0xff]  ;;  %v5090_v28 = vld [vmem:[#allocation5 + $0x1c8] sm:$0xff] }
 0x42c   :  { %3552 = vrot.lane.b32.xlu2 %v3516_v22, %s5191_s20  ;;  %4180 = vmatpush.bf16.msra.mxu0 %v5091_v15 }
 0x42d   :  { %3440 = vrot.lane.b32.xlu0 %v3021_v36, %s5193_s16  ;;  %v2901_v32 = vadd.f32 %v2900_v27, %v2852_v24  ;;  %v3518_v36 = vpack.c.bf16 %v3502_v35, %v3502_v35 }
 0x42f   :  { %4242 = vmatmul.bf16.gmra.mxu1 %v4794_v17  ;;  %v2928_v38 = vmax.f32 %v2901_v32, 0.0 }
 0x430   :  { %4181 = vmatpush.bf16.msra.mxu0 %v5090_v28 }
 0x431   :  { %2944 = vst.msk [vmem:[#allocation2 + $0x50] sm:$0xff] %vm209_vm3, %v2928_v38 }
 0x432   :  { %v2853_v34 = vpop.f32.mrf.mxu1  ;;  %v2807_v19 = vpop.f32.mrf.mxu0 }
 0x433   :  { %v2854_v61 = vadd.f32 %v2853_v34, %v2805_v40  ;;  %3442 = vrot.lane.b32.xlu1 %v3405_v41, %s5193_s16  ;;  %v2808_v16 = vadd.f32 %v5978_v31, %v2807_v19 }
 0x434   :  { %3666 = vrot.lane.b32.xlu2 %v3629_v0, %s5195_s0  ;;  %4182 = vmatpush.bf16.msra.mxu0 %v5089_v52 }
 0x435   :  { %3554 = vrot.lane.b32.xlu0 %v3517_v8, %s5191_s20  ;;  %v2903_v48 = vadd.f32 %v2902_v25, %v2854_v61 }
 0x437   :  { %v2929_v46 = vmax.f32 %v2903_v48, 0.0 }
 0x438   :  { %v2960_v2 = vld [vmem:[#allocation2 + $0x50] sm:$0xff] }
 0x439   :  { %2945 = vst.msk [vmem:[#allocation2 + $0x58] sm:$0xff] %vm209_vm3, %v2929_v46  ;;  %v2976_v56 = vpack.c.bf16 %v2960_v2, %v2960_v2 }
 0x43a   :  { %v2809_v9 = vpop.f32.mrf.mxu0 }
 0x43b   :  { %3062 = vrot.lane.b32.xlu1 %v3023_v54, %s5193_s16  ;;  %2992 = vst.msk [vmem:[#allocation4 + $0x60] sm:$0xf] %vm275_vm4, %v2976_v56  ;;  %v2810_v33 = vadd.f32 %v5978_v31, %v2809_v9 }
 0x43c   :  { %3172 = vrot.lane.b32.xlu2 %v3134_v55, %s5191_s20 }
 0x43d   :  { %3060 = vrot.lane.b32.xlu0 %v3405_v41, %s5193_s16  ;;  %v3273_v6 = vpop.permute.xlu1 %3272 }
 0x43e   :  { %v6094_v45 = vpop.permute.xlu2 %3274 }
 0x43f   :  { %v3049_v4 = vpop.permute.xlu0 %3048  ;;  %4247 = vmatmul.bf16.gmra.mxu1 %v4806_v3 }
 0x440   :  { %3096 = vst.msk [vmem:[#allocation4] sm:$0xf] %vm388_vm5, %v3049_v4  ;;  %v2961_v11 = vld [vmem:[#allocation2 + $0x58] sm:$0xff]  ;;  %v2910_v4 = vpop.f32.mrf.mxu2 }
 0x441   :  { %3208 = vst.msk [vmem:[#allocation4] sm:$0xf] %vm501_vm6, %v3161_v53  ;;  %v2977_v13 = vpack.c.bf16 %v2961_v11, %v2961_v11  ;;  %v3232_v22 = vld [vmem:[#allocation2 + $0x57] sm:$0xff] }
 0x442   :  { %3320 = vst.msk [vmem:[#allocation4] sm:$0xf] %vm614_vm7, %v3273_v6  ;;  %v3120_v23 = vld [vmem:[#allocation2 + $0x52] sm:$0xff]  ;;  %v3248_v24 = vpack.c.bf16 %v3232_v22, %v3232_v22 }
 0x443   :  { %3284 = vrot.lane.b32.xlu1 %v3629_v0, %s5195_s0  ;;  %2993 = vst.msk [vmem:[#allocation4 + $0x6c] sm:$0xf] %vm275_vm4, %v2977_v13  ;;  %v3008_v27 = vld [vmem:[#allocation2 + $0x51] sm:$0xff]  ;;  %v3136_v32 = vpack.c.bf16 %v3120_v23, %v3120_v23 }
 0x444   :  { %3286 = vrot.lane.b32.xlu2 %v3247_v7, %s5195_s0  ;;  %3376 = vst.msk [vmem:[#allocation4 + $0x64] sm:$0xf] %vm275_vm4, %v2977_v13  ;;  %v3024_v37 = vpack.c.bf16 %v3008_v27, %v3008_v27 }
 0x445   :  { %3174 = vrot.lane.b32.xlu0 %v3135_v12, %s5191_s20 }
 0x446   :  { %v6103_v14 = vpop.permute.xlu2 %3544 }
 0x448   :  { %v2912_v23 = vpop.f32.mrf.mxu2 }
 0x44b   :  { %3668 = vrot.lane.b32.xlu1 %v3247_v7, %s5195_s0 }
 0x44c   :  { %v2856_v43 = vpop.f32.mrf.mxu1  ;;  %3556 = vrot.lane.b32.xlu2 %v3518_v36, %s5191_s20 }
 0x44d   :  { %v2857_v59 = vadd.f32 %v2856_v43, %v2808_v16  ;;  %3444 = vrot.lane.b32.xlu0 %v3023_v54, %s5193_s16  ;;  %v4761_v54 = vld [vmem:[#allocation4] sm:$0xf] }
 0x44e   :  { %v6110_v18 = vpop.permute.xlu2 %3658 }
 0x44f   :  { %v2906_v47 = vadd.f32 %v2905_v29, %v2857_v59 }
 0x451   :  { %v2930_v17 = vmax.f32 %v2906_v47, 0.0 }
 0x453   :  { %2946 = vst.msk [vmem:[#allocation2 + $0x60] sm:$0xff] %vm209_vm3, %v2930_v17  ;;  %3288 = vrot.lane.b32.xlu1 %v3248_v24, %s5195_s0 }
 0x454   :  { %v2858_v38 = vpop.f32.mrf.mxu1  ;;  %3176 = vrot.lane.b32.xlu2 %v3136_v32, %s5191_s20 }
 0x455   :  { %v2859_v60 = vadd.f32 %v2858_v38, %v2810_v33  ;;  %3064 = vrot.lane.b32.xlu0 %v3024_v37, %s5193_s16  ;;  %v3051_v40 = vpop.permute.xlu1 %3050 }
 0x456   :  { %v6117_v41 = vpop.permute.xlu2 %3164  ;;  %3097 = vst.msk [vmem:[#allocation4 + $0xc] sm:$0xf] %vm388_vm5, %v3051_v40  ;;  %v2915_v40 = vpop.f32.mrf.mxu2 }
 0x457   :  { %v2908_v0 = vadd.f32 %v2907_v39, %v2859_v60  ;;  %v3163_v34 = vpop.permute.xlu0 %3162 }
 0x458   :  { %3209 = vst.msk [vmem:[#allocation4 + $0xc] sm:$0xf] %vm501_vm6, %v3163_v34  ;;  %v2812_v63 = vpop.f32.mrf.mxu0 }
 0x459   :  { %v2931_v8 = vmax.f32 %v2908_v0, 0.0  ;;  %3321 = vst.msk [vmem:[#allocation4 + $0xc] sm:$0xf] %vm614_vm7, %v6094_v45  ;;  %v2813_v7 = vadd.f32 %v5978_v31, %v2812_v63 }
 0x45a   :  { %v3009_v44 = vld [vmem:[#allocation2 + $0x59] sm:$0xff] }
 0x45b   :  { %v3233_v61 = vld [vmem:[#allocation2 + $0x5f] sm:$0xff]  ;;  %2947 = vst.msk [vmem:[#allocation2 + $0x68] sm:$0xff] %vm209_vm3, %v2931_v8  ;;  %v3025_v53 = vpack.c.bf16 %v3009_v44, %v3009_v44 }
 0x45c   :  { %v3121_v25 = vld [vmem:[#allocation2 + $0x5a] sm:$0xff]  ;;  %v3249_v48 = vpack.c.bf16 %v3233_v61, %v3233_v61 }
 0x45d   :  { %v3728_v49 = vld [vmem:[#allocation2 + $0x60] sm:$0xff]  ;;  %v3137_v50 = vpack.c.bf16 %v3121_v25, %v3121_v25  ;;  %3066 = vrot.lane.b32.xlu1 %v3025_v53, %s5193_s16  ;;  %v3657_v51 = vpop.permute.xlu1 %3656 }
 0x45e   :  { %v3744_v46 = vpack.c.bf16 %v3728_v49, %v3728_v49  ;;  %3290 = vrot.lane.b32.xlu2 %v3249_v48, %s5195_s0  ;;  %v6127_v26 = vpop.permute.xlu2 %3278  ;;  %v3504_v56 = vld [vmem:[#allocation2 + $0x5e] sm:$0xff] }
 0x45f   :  { %3178 = vrot.lane.b32.xlu0 %v3137_v50, %s5191_s20  ;;  %v3433_v2 = vpop.permute.xlu0 %3432  ;;  %v3520_v1 = vpack.c.bf16 %v3504_v56, %v3504_v56 }
 0x460   :  { %3760 = vst.msk [vmem:[#allocation4 + $0x68] sm:$0xf] %vm275_vm4, %v3744_v46  ;;  %v5058_v55 = vld [vmem:[#allocation4 + $0x8] sm:$0xf0] }
 0x461   :  { %3377 = vst.msk [vmem:[#allocation4 + $0x70] sm:$0xf] %vm275_vm4, %v3744_v46  ;;  %v4762_v57 = vor.u32 %v5058_v55, %v4761_v54 }
 0x462   :  { %3480 = vst.msk [vmem:[#allocation4 + $0x4] sm:$0xf] %vm388_vm5, %v3433_v2  ;;  %v3729_v58 = vld [vmem:[#allocation2 + $0x68] sm:$0xff] }
 0x463   :  { %3592 = vst.msk [vmem:[#allocation4 + $0x4] sm:$0xf] %vm501_vm6, %v6103_v14  ;;  %4134 = vmatmul.bf16.vlgmr.msrb.gmra.mxu3 %v4762_v57  ;;  %v3745_v3 = vpack.c.bf16 %v3729_v58, %v3729_v58  ;;  %v3393_v30 = vld [vmem:[#allocation2 + $0x61] sm:$0xff]  ;;  %v2814_v14 = vpop.f32.mrf.mxu0 }
 0x464   :  { %3704 = vst.msk [vmem:[#allocation4 + $0x4] sm:$0xf] %vm614_vm7, %v3657_v51  ;;  %v3617_v5 = vld [vmem:[#allocation2 + $0x67] sm:$0xff]  ;;  %v3409_v20 = vpack.c.bf16 %v3393_v30, %v3393_v30  ;;  %v2815_v9 = vadd.f32 %v5978_v31, %v2814_v14 }
 0x465   :  { %2994 = vst.msk [vmem:[#allocation4 + $0x78] sm:$0xf] %vm275_vm4, %v3744_v46  ;;  %3672 = vrot.lane.b32.xlu1 %v3249_v48, %s5195_s0  ;;  %v3435_v45 = vpop.permute.xlu1 %3434  ;;  %v3505_v6 = vld [vmem:[#allocation2 + $0x66] sm:$0xff]  ;;  %v3633_v10 = vpack.c.bf16 %v3617_v5, %v3617_v5 }
 0x466   :  { %3560 = vrot.lane.b32.xlu2 %v3520_v1, %s5191_s20  ;;  %3761 = vst.msk [vmem:[#allocation4 + $0x74] sm:$0xf] %vm275_vm4, %v3745_v3  ;;  %v6140_v62 = vpop.permute.xlu2 %3548  ;;  %v3521_v19 = vpack.c.bf16 %v3505_v6, %v3505_v6  ;;  %v3122_v43 = vld [vmem:[#allocation2 + $0x62] sm:$0xff] }
 0x467   :  { %3448 = vrot.lane.b32.xlu0 %v3025_v53, %s5193_s16  ;;  %2995 = vst.msk [vmem:[#allocation4 + $0x84] sm:$0xf] %vm275_vm4, %v3745_v3  ;;  %v3547_v42 = vpop.permute.xlu0 %3546  ;;  %v4817_v12 = vld [vmem:[#allocation4 + $0x68] sm:$0xf]  ;;  %v3138_v27 = vpack.c.bf16 %v3122_v43, %v3122_v43 }
 0x468   :  { %3481 = vst.msk [vmem:[#allocation4 + $0x10] sm:$0xf] %vm388_vm5, %v3435_v45  ;;  %v2917_v45 = vpop.f32.mrf.mxu2 }
 0x469   :  { %3593 = vst.msk [vmem:[#allocation4 + $0x10] sm:$0xf] %vm501_vm6, %v3547_v42 }
 0x46a   :  { %3705 = vst.msk [vmem:[#allocation4 + $0x10] sm:$0xf] %vm614_vm7, %v6110_v18 }
 0x46b   :  { %3378 = vst.msk [vmem:[#allocation4 + $0x7c] sm:$0xf] %vm275_vm4, %v3745_v3  ;;  %v5057_v59 = vld [vmem:[#allocation4 + $0x4] sm:$0xf] }
 0x46c   :  { %v2861_v11 = vpop.f32.mrf.mxu1 }
 0x46d   :  { %v5071_v13 = vld [vmem:[#allocation4 + $0x70] sm:$0xf0]  ;;  %v2862_v21 = vadd.f32 %v2861_v11, %v2813_v7  ;;  %3450 = vrot.lane.b32.xlu1 %v3409_v20, %s5193_s16  ;;  %v3277_v36 = vpop.permute.xlu1 %3276 }
 0x46e   :  { %v4818_v35 = vor.u32 %v5071_v13, %v4817_v12  ;;  %3674 = vrot.lane.b32.xlu2 %v3633_v10, %s5195_s0  ;;  %v6152_v15 = vpop.permute.xlu2 %3662 }
 0x46f   :  { %3562 = vrot.lane.b32.xlu0 %v3521_v19, %s5191_s20  ;;  %v2911_v29 = vadd.f32 %v2910_v4, %v2862_v21  ;;  %v3053_v16 = vpop.permute.xlu0 %3052 }
 0x470   :  { %4252 = vmatmul.bf16.gmra.mxu1 %v4818_v35  ;;  %3098 = vst.msk [vmem:[#allocation4 + $0x18] sm:$0xf] %vm388_vm5, %v3053_v16 }
 0x471   :  { %v4763_v18 = vld [vmem:[#allocation4 + $0xc] sm:$0xf0]  ;;  %v2932_v47 = vmax.f32 %v2911_v29, 0.0  ;;  %3210 = vst.msk [vmem:[#allocation4 + $0x18] sm:$0xf] %vm501_vm6, %v6117_v41 }
 0x472   :  { %v4766_v22 = vor.u32 %v5057_v59, %v4763_v18  ;;  %3322 = vst.msk [vmem:[#allocation4 + $0x18] sm:$0xf] %vm614_vm7, %v3277_v36  ;;  %v5137_v41 = vld [vmem:[%s6332_s3 + $0x2] ss:$0 sm:$0xff] }
 0x473   :  { %2948 = vst.msk [vmem:[#allocation2 + $0x70] sm:$0xff] %vm209_vm3, %v2932_v47  ;;  %v2817_v17 = vpop.f32.mrf.mxu0 }
 0x474   :  { %4183 = vmatmul.bf16.vlgmr.msra.gmra.mxu0 %v4766_v22  ;;  %v2863_v28 = vpop.f32.mrf.mxu1  ;;  %v2818_v0 = vadd.f32 %v5137_v41, %v2817_v17 }
 0x475   :  { %v2864_v24 = vadd.f32 %v2863_v28, %v2815_v9  ;;  %3292 = vrot.lane.b32.xlu1 %v3633_v10, %s5195_s0  ;;  %v3055_v32 = vpop.permute.xlu1 %3054 }
 0x476   :  { %3180 = vrot.lane.b32.xlu2 %v3138_v27, %s5191_s20  ;;  %v6163_v33 = vpop.permute.xlu2 %3168  ;;  %3099 = vst.msk [vmem:[#allocation4 + $0x24] sm:$0xf] %vm388_vm5, %v3055_v32 }
 0x477   :  { %3068 = vrot.lane.b32.xlu0 %v3409_v20, %s5193_s16  ;;  %v2913_v37 = vadd.f32 %v2912_v23, %v2864_v24  ;;  %v3167_v31 = vpop.permute.xlu0 %3166 }
 0x478   :  { %3211 = vst.msk [vmem:[#allocation4 + $0x24] sm:$0xf] %vm501_vm6, %v3167_v31 }
 0x479   :  { %v2933_v52 = vmax.f32 %v2913_v37, 0.0  ;;  %3323 = vst.msk [vmem:[#allocation4 + $0x24] sm:$0xf] %vm614_vm7, %v6127_v26  ;;  %v4773_v26 = vld [vmem:[#allocation4 + $0x18] sm:$0xf] }
 0x47a   :  { %v3011_v38 = vld [vmem:[#allocation2 + $0x69] sm:$0xff] }
 0x47b   :  { %v3235_v39 = vld [vmem:[#allocation2 + $0x6f] sm:$0xff]  ;;  %2949 = vst.msk [vmem:[#allocation2 + $0x78] sm:$0xff] %vm209_vm3, %v2933_v52  ;;  %v3027_v34 = vpack.c.bf16 %v3011_v38, %v3011_v38  ;;  %v2819_v2 = vpop.f32.mrf.mxu0 }
 0x47c   :  { %v3123_v60 = vld [vmem:[#allocation2 + $0x6a] sm:$0xff]  ;;  %v3251_v8 = vpack.c.bf16 %v3235_v39, %v3235_v39  ;;  %v2866_v25 = vpop.f32.mrf.mxu1  ;;  %v2820_v58 = vadd.f32 %v5137_v41, %v2819_v2 }
 0x47d   :  { %v3139_v44 = vpack.c.bf16 %v3123_v60, %v3123_v60  ;;  %v3730_v61 = vld [vmem:[#allocation2 + $0x70] sm:$0xff]  ;;  %v2867_v48 = vadd.f32 %v2866_v25, %v2818_v0  ;;  %3070 = vrot.lane.b32.xlu1 %v3027_v34, %s5193_s16  ;;  %v3661_v49 = vpop.permute.xlu1 %3660 }
 0x47e   :  { %v3746_v53 = vpack.c.bf16 %v3730_v61, %v3730_v61  ;;  %3294 = vrot.lane.b32.xlu2 %v3251_v8, %s5195_s0  ;;  %v6176_v50 = vpop.permute.xlu2 %3282  ;;  %v3506_v55 = vld [vmem:[#allocation2 + $0x6e] sm:$0xff] }
 0x47f   :  { %3182 = vrot.lane.b32.xlu0 %v3139_v44, %s5191_s20  ;;  %v2916_v46 = vadd.f32 %v2915_v40, %v2867_v48  ;;  %v3437_v51 = vpop.permute.xlu0 %3436  ;;  %v3522_v63 = vpack.c.bf16 %v3506_v55, %v3506_v55 }
 0x480   :  { %3762 = vst.msk [vmem:[#allocation4 + $0x80] sm:$0xf] %vm275_vm4, %v3746_v53  ;;  %v5061_v54 = vld [vmem:[#allocation4 + $0x20] sm:$0xf0] }
 0x481   :  { %3379 = vst.msk [vmem:[#allocation4 + $0x88] sm:$0xf] %vm275_vm4, %v3746_v53  ;;  %v2934_v56 = vmax.f32 %v2916_v46, 0.0  ;;  %v4774_v57 = vor.u32 %v5061_v54, %v4773_v26 }
 0x482   :  { %3482 = vst.msk [vmem:[#allocation4 + $0x1c] sm:$0xf] %vm388_vm5, %v3437_v51  ;;  %v3731_v1 = vld [vmem:[#allocation2 + $0x78] sm:$0xff] }
 0x483   :  { %3594 = vst.msk [vmem:[#allocation4 + $0x1c] sm:$0xf] %vm501_vm6, %v6140_v62  ;;  %4139 = vmatmul.bf16.gmra.mxu3 %v4774_v57  ;;  %v3747_v42 = vpack.c.bf16 %v3731_v1, %v3731_v1  ;;  %v3395_v7 = vld [vmem:[#allocation2 + $0x71] sm:$0xff] }
 0x484   :  { %3706 = vst.msk [vmem:[#allocation4 + $0x1c] sm:$0xf] %vm614_vm7, %v3661_v49  ;;  %v2868_v3 = vpop.f32.mrf.mxu1  ;;  %v3619_v20 = vld [vmem:[#allocation2 + $0x77] sm:$0xff]  ;;  %v3411_v12 = vpack.c.bf16 %v3395_v7, %v3395_v7 }
 0x485   :  { %2950 = vst.msk [vmem:[#allocation2 + $0x80] sm:$0xff] %vm209_vm3, %v2934_v56  ;;  %v2869_v4 = vadd.f32 %v2868_v3, %v2820_v58  ;;  %3676 = vrot.lane.b32.xlu1 %v3251_v8, %s5195_s0  ;;  %v3439_v62 = vpop.permute.xlu1 %3438  ;;  %v3507_v11 = vld [vmem:[#allocation2 + $0x76] sm:$0xff]  ;;  %v3635_v13 = vpack.c.bf16 %v3619_v20, %v3619_v20 }
 0x486   :  { %2996 = vst.msk [vmem:[#allocation4 + $0x90] sm:$0xf] %vm275_vm4, %v3746_v53  ;;  %3564 = vrot.lane.b32.xlu2 %v3522_v63, %s5191_s20  ;;  %v6189_v30 = vpop.permute.xlu2 %3552  ;;  %v3523_v14 = vpack.c.bf16 %v3507_v11, %v3507_v11  ;;  %v3124_v59 = vld [vmem:[#allocation2 + $0x72] sm:$0xff] }
 0x487   :  { %3452 = vrot.lane.b32.xlu0 %v3027_v34, %s5193_s16  ;;  %3763 = vst.msk [vmem:[#allocation4 + $0x8c] sm:$0xf] %vm275_vm4, %v3747_v42  ;;  %v2918_v5 = vadd.f32 %v2917_v45, %v2869_v4  ;;  %v3551_v6 = vpop.permute.xlu0 %3550  ;;  %v4829_v35 = vld [vmem:[#allocation4 + $0x80] sm:$0xf]  ;;  %v3140_v9 = vpack.c.bf16 %v3124_v59, %v3124_v59  ;;  %v3511_v59 = vld [vmem:[#allocation2 + $0x96] sm:$0xff] }
 0x488   :  { %3483 = vst.msk [vmem:[#allocation4 + $0x28] sm:$0xf] %vm388_vm5, %v3439_v62 }
 0x489   :  { %3595 = vst.msk [vmem:[#allocation4 + $0x28] sm:$0xf] %vm501_vm6, %v3551_v6  ;;  %v2935_v10 = vmax.f32 %v2918_v5, 0.0 }
 0x48a   :  { %3707 = vst.msk [vmem:[#allocation4 + $0x28] sm:$0xf] %vm614_vm7, %v6152_v15 }
 0x48b   :  { %2997 = vst.msk [vmem:[#allocation4 + $0x9c] sm:$0xf] %vm275_vm4, %v3747_v42  ;;  %v5060_v18 = vld [vmem:[#allocation4 + $0x1c] sm:$0xf] }
 0x48c   :  { %2951 = vst.msk [vmem:[#allocation2 + $0x88] sm:$0xff] %vm209_vm3, %v2935_v10  ;;  %v3732_v19 = vld [vmem:[#allocation2 + $0x80] sm:$0xff] }
 0x48d   :  { %v3748_v21 = vpack.c.bf16 %v3732_v19, %v3732_v19  ;;  %3380 = vst.msk [vmem:[#allocation4 + $0x94] sm:$0xf] %vm275_vm4, %v3747_v42  ;;  %3454 = vrot.lane.b32.xlu1 %v3411_v12, %s5193_s16  ;;  %v3281_v29 = vpop.permute.xlu1 %3280  ;;  %v3013_v32 = vld [vmem:[#allocation2 + $0x79] sm:$0xff] }
 0x48e   :  { %3678 = vrot.lane.b32.xlu2 %v3635_v13, %s5195_s0  ;;  %v5074_v36 = vld [vmem:[#allocation4 + $0x88] sm:$0xf0]  ;;  %v6202_v16 = vpop.permute.xlu2 %3666  ;;  %v3125_v37 = vld [vmem:[#allocation2 + $0x7a] sm:$0xff]  ;;  %v3029_v31 = vpack.c.bf16 %v3013_v32, %v3013_v32 }
 0x48f   :  { %3566 = vrot.lane.b32.xlu0 %v3523_v14, %s5191_s20  ;;  %v4830_v15 = vor.u32 %v5074_v36, %v4829_v35  ;;  %3764 = vst.msk [vmem:[#allocation4 + $0x98] sm:$0xf] %vm275_vm4, %v3748_v21  ;;  %v3057_v43 = vpop.permute.xlu0 %3056  ;;  %v3141_v38 = vpack.c.bf16 %v3125_v37, %v3125_v37  ;;  %v3508_v8 = vld [vmem:[#allocation2 + $0x7e] sm:$0xff] }
 0x490   :  { %3381 = vst.msk [vmem:[#allocation4 + $0xa0] sm:$0xf] %vm275_vm4, %v3748_v21  ;;  %v3524_v53 = vpack.c.bf16 %v3508_v8, %v3508_v8 }
 0x491   :  { %4257 = vmatmul.bf16.gmra.mxu1 %v4830_v15  ;;  %3100 = vst.msk [vmem:[#allocation4 + $0x30] sm:$0xf] %vm388_vm5, %v3057_v43  ;;  %v4775_v47 = vld [vmem:[#allocation4 + $0x24] sm:$0xf0] }
 0x492   :  { %3212 = vst.msk [vmem:[#allocation4 + $0x30] sm:$0xf] %vm501_vm6, %v6163_v33  ;;  %v4778_v22 = vor.u32 %v5060_v18, %v4775_v47  ;;  %v3237_v33 = vld [vmem:[#allocation2 + $0x7f] sm:$0xff] }
 0x493   :  { %3324 = vst.msk [vmem:[#allocation4 + $0x30] sm:$0xf] %vm614_vm7, %v3281_v29  ;;  %v3733_v23 = vld [vmem:[#allocation2 + $0x88] sm:$0xff]  ;;  %v3253_v52 = vpack.c.bf16 %v3237_v33, %v3237_v33 }
 0x494   :  { %4188 = vmatmul.bf16.gmra.mxu0 %v4778_v22  ;;  %v3749_v27 = vpack.c.bf16 %v3733_v23, %v3733_v23  ;;  %2998 = vst.msk [vmem:[#allocation4 + $0xa8] sm:$0xf] %vm275_vm4, %v3748_v21  ;;  %v3397_v46 = vld [vmem:[#allocation2 + $0x81] sm:$0xff]  ;;  %v3015_v63 = vld [vmem:[#allocation2 + $0x89] sm:$0xff]  ;;  %v4799_v22 = vld [vmem:[#allocation4 + $0x54] sm:$0xf0] }
 0x495   :  { %3296 = vrot.lane.b32.xlu1 %v3635_v13, %s5195_s0  ;;  %v3059_v28 = vpop.permute.xlu1 %3058  ;;  %v3621_v51 = vld [vmem:[#allocation2 + $0x87] sm:$0xff]  ;;  %v3413_v2 = vpack.c.bf16 %v3397_v46, %v3397_v46  ;;  %v3031_v4 = vpack.c.bf16 %v3015_v63, %v3015_v63  ;;  %v3239_v7 = vld [vmem:[#allocation2 + $0x8f] sm:$0xff] }
 0x496   :  { %3184 = vrot.lane.b32.xlu2 %v3140_v9, %s5191_s20  ;;  %3765 = vst.msk [vmem:[#allocation4 + $0xa4] sm:$0xf] %vm275_vm4, %v3749_v27  ;;  %v3173_v17 = vpop.permute.xlu2 %3172  ;;  %v4841_v39 = vld [vmem:[#allocation4 + $0x98] sm:$0xf]  ;;  %v3509_v26 = vld [vmem:[#allocation2 + $0x86] sm:$0xff]  ;;  %v3637_v54 = vpack.c.bf16 %v3621_v51, %v3621_v51  ;;  %v3255_v10 = vpack.c.bf16 %v3239_v7, %v3239_v7  ;;  %v3510_v35 = vld [vmem:[#allocation2 + $0x8e] sm:$0xff] }
 0x497   :  { %3072 = vrot.lane.b32.xlu0 %v3411_v12, %s5193_s16  ;;  %2999 = vst.msk [vmem:[#allocation4 + $0xb4] sm:$0xf] %vm275_vm4, %v3749_v27  ;;  %v3171_v24 = vpop.permute.xlu0 %3170  ;;  %v3525_v55 = vpack.c.bf16 %v3509_v26, %v3509_v26  ;;  %v3126_v1 = vld [vmem:[#allocation2 + $0x82] sm:$0xff]  ;;  %v3127_v20 = vld [vmem:[#allocation2 + $0x8a] sm:$0xff]  ;;  %v3526_v15 = vpack.c.bf16 %v3510_v35, %v3510_v35 }
 0x498   :  { %3101 = vst.msk [vmem:[#allocation4 + $0x3c] sm:$0xf] %vm388_vm5, %v3059_v28  ;;  %v3142_v62 = vpack.c.bf16 %v3126_v1, %v3126_v1  ;;  %v3143_v11 = vpack.c.bf16 %v3127_v20, %v3127_v20 }
 0x499   :  { %3213 = vst.msk [vmem:[#allocation4 + $0x3c] sm:$0xf] %vm501_vm6, %v3171_v24 }
 0x49a   :  { %3325 = vst.msk [vmem:[#allocation4 + $0x3c] sm:$0xf] %vm614_vm7, %v6176_v50  ;;  %v4785_v44 = vld [vmem:[#allocation4 + $0x30] sm:$0xf] }
 0x49b   :  { %3382 = vst.msk [vmem:[#allocation4 + $0xac] sm:$0xf] %vm275_vm4, %v3749_v27  ;;  %v3527_v27 = vpack.c.bf16 %v3511_v59, %v3511_v59 }
 0x49d   :  { %v5077_v60 = vld [vmem:[#allocation4 + $0xa0] sm:$0xf0]  ;;  %3074 = vrot.lane.b32.xlu1 %v3029_v31, %s5193_s16  ;;  %v3665_v41 = vpop.permute.xlu1 %3664 }
 0x49e   :  { %3298 = vrot.lane.b32.xlu2 %v3253_v52, %s5195_s0  ;;  %v4842_v40 = vor.u32 %v5077_v60, %v4841_v39  ;;  %v3287_v0 = vpop.permute.xlu2 %3286 }
 0x49f   :  { %3186 = vrot.lane.b32.xlu0 %v3141_v38, %s5191_s20  ;;  %v3441_v34 = vpop.permute.xlu0 %3440 }
 0x4a0   :  { %3484 = vst.msk [vmem:[#allocation4 + $0x34] sm:$0xf] %vm388_vm5, %v3441_v34 }
 0x4a1   :  { %4262 = vmatmul.bf16.gmra.mxu1 %v4842_v40  ;;  %v5064_v61 = vld [vmem:[#allocation4 + $0x38] sm:$0xf0]  ;;  %3596 = vst.msk [vmem:[#allocation4 + $0x34] sm:$0xf] %vm501_vm6, %v6189_v30 }
 0x4a2   :  { %v4786_v25 = vor.u32 %v5064_v61, %v4785_v44  ;;  %3708 = vst.msk [vmem:[#allocation4 + $0x34] sm:$0xf] %vm614_vm7, %v3665_v41 }
 0x4a4   :  { %4144 = vmatmul.bf16.gmra.mxu3 %v4786_v25  ;;  %v6276_v25 = vld [vmem:[%s6332_s3 + $0x3] ss:$0 sm:$0xff]  ;;  %s5196_s3 = smov [#allocation8]  }
 0x4a5   :  { %3680 = vrot.lane.b32.xlu1 %v3253_v52, %s5195_s0  ;;  %v3443_v48 = vpop.permute.xlu1 %3442  ;;  %s4309_s26 = sshll.u32 %s5196_s3, 4  ;;  %s4310_s26 = int_to_ptr.vmem [resolvable:$true] %s4309_s26 }
 0x4a6   :  { %3568 = vrot.lane.b32.xlu2 %v3524_v53, %s5191_s20  ;;  %v3557_v49 = vpop.permute.xlu2 %3556  ;;  %3485 = vst.msk [vmem:[#allocation4 + $0x40] sm:$0xf] %vm388_vm5, %v3443_v48  ;;  %v4233_v53 = vpop.f32.mrf.mxu1 }
 0x4a7   :  { %3456 = vrot.lane.b32.xlu0 %v3029_v31, %s5193_s16  ;;  %v3555_v50 = vpop.permute.xlu0 %3554 }
 0x4a8   :  { %3597 = vst.msk [vmem:[#allocation4 + $0x40] sm:$0xf] %vm501_vm6, %v3555_v50 }
 0x4a9   :  { %3709 = vst.msk [vmem:[#allocation4 + $0x40] sm:$0xf] %vm614_vm7, %v6202_v16  ;;  %v5063_v3 = vld [vmem:[#allocation4 + $0x34] sm:$0xf] }
 0x4aa   :  { %v3623_v16 = vld [vmem:[#allocation2 + $0x97] sm:$0xff] }
 0x4ab   :  { %v3639_v23 = vpack.c.bf16 %v3623_v16, %v3623_v16 }
 0x4ad   :  { %3458 = vrot.lane.b32.xlu1 %v3413_v2, %s5193_s16  ;;  %v3063_v56 = vpop.permute.xlu1 %3062 }
 0x4ae   :  { %3682 = vrot.lane.b32.xlu2 %v3637_v54, %s5195_s0  ;;  %v3177_v57 = vpop.permute.xlu2 %3176  ;;  %3103 = vst.msk [vmem:[#allocation4 + $0x54] sm:$0xf] %vm388_vm5, %v3063_v56 }
 0x4af   :  { %3570 = vrot.lane.b32.xlu0 %v3525_v55, %s5191_s20  ;;  %v3061_v58 = vpop.permute.xlu0 %3060 }
 0x4b0   :  { %3102 = vst.msk [vmem:[#allocation4 + $0x48] sm:$0xf] %vm388_vm5, %v3061_v58  ;;  %v4787_v45 = vld [vmem:[#allocation4 + $0x3c] sm:$0xf0] }
 0x4b1   :  { %3214 = vst.msk [vmem:[#allocation4 + $0x48] sm:$0xf] %vm501_vm6, %v3173_v17  ;;  %v4790_v42 = vor.u32 %v5063_v3, %v4787_v45 }
 0x4b3   :  { %4193 = vmatmul.bf16.gmra.mxu0 %v4790_v42  ;;  %v4235_v42 = vpop.f32.mrf.mxu1 }
 0x4b5   :  { %3078 = vrot.lane.b32.xlu1 %v3031_v4, %s5193_s16  ;;  %v3285_v30 = vpop.permute.xlu1 %3284 }
 0x4b6   :  { %3188 = vrot.lane.b32.xlu2 %v3142_v62, %s5191_s20  ;;  %3326 = vst.msk [vmem:[#allocation4 + $0x48] sm:$0xf] %vm614_vm7, %v3285_v30 }
 0x4b7   :  { %3076 = vrot.lane.b32.xlu0 %v3413_v2, %s5193_s16  ;;  %v3175_v6 = vpop.permute.xlu0 %3174 }
 0x4b8   :  { %v3291_v5 = vpop.permute.xlu2 %3290  ;;  %3215 = vst.msk [vmem:[#allocation4 + $0x54] sm:$0xf] %vm501_vm6, %v3175_v6 }
 0x4b9   :  { %3327 = vst.msk [vmem:[#allocation4 + $0x54] sm:$0xf] %vm614_vm7, %v3287_v0 }
 0x4bd   :  { %3300 = vrot.lane.b32.xlu1 %v3637_v54, %s5195_s0  ;;  %v3669_v12 = vpop.permute.xlu1 %3668  ;;  %v4797_v13 = vld [vmem:[#allocation4 + $0x48] sm:$0xf] }
 0x4be   :  { %3302 = vrot.lane.b32.xlu2 %v3255_v10, %s5195_s0 }
 0x4bf   :  { %3190 = vrot.lane.b32.xlu0 %v3143_v11, %s5191_s20  ;;  %v3445_v14 = vpop.permute.xlu0 %3444 }
 0x4c0   :  { %v3561_v19 = vpop.permute.xlu2 %3560  ;;  %3486 = vst.msk [vmem:[#allocation4 + $0x4c] sm:$0xf] %vm388_vm5, %v3445_v14  ;;  %v5067_v21 = vld [vmem:[#allocation4 + $0x50] sm:$0xf0] }
 0x4c1   :  { %3598 = vst.msk [vmem:[#allocation4 + $0x4c] sm:$0xf] %vm501_vm6, %v3557_v49  ;;  %v4798_v36 = vor.u32 %v5067_v21, %v4797_v13  ;;  %v4238_v21 = vpop.f32.mrf.mxu1 }
 0x4c2   :  { %3710 = vst.msk [vmem:[#allocation4 + $0x4c] sm:$0xf] %vm614_vm7, %v3669_v12 }
 0x4c3   :  { %4149 = vmatmul.bf16.gmra.mxu3 %v4798_v36 }
 0x4c5   :  { %3684 = vrot.lane.b32.xlu1 %v3255_v10, %s5195_s0  ;;  %v3289_v29 = vpop.permute.xlu1 %3288 }
 0x4c6   :  { %3572 = vrot.lane.b32.xlu2 %v3526_v15, %s5191_s20 }
 0x4c7   :  { %3460 = vrot.lane.b32.xlu0 %v3031_v4, %s5193_s16  ;;  %v3065_v43 = vpop.permute.xlu0 %3064 }
 0x4c8   :  { %3104 = vst.msk [vmem:[#allocation4 + $0x60] sm:$0xf] %vm388_vm5, %v3065_v43  ;;  %v3675_v18 = vpop.permute.xlu2 %3674 }
 0x4c9   :  { %3216 = vst.msk [vmem:[#allocation4 + $0x60] sm:$0xf] %vm501_vm6, %v3177_v57  ;;  %v5066_v47 = vld [vmem:[#allocation4 + $0x4c] sm:$0xf] }
 0x4ca   :  { %3328 = vst.msk [vmem:[#allocation4 + $0x60] sm:$0xf] %vm614_vm7, %v3289_v29  ;;  %v4802_v9 = vor.u32 %v5066_v47, %v4799_v22 }
 0x4cc   :  { %4198 = vmatmul.bf16.gmra.mxu0 %v4802_v9 }
 0x4ce   :  { %3686 = vrot.lane.b32.xlu2 %v3639_v23, %s5195_s0 }
 0x4cf   :  { %3574 = vrot.lane.b32.xlu0 %v3527_v27, %s5191_s20  ;;  %v3067_v28 = vpop.permute.xlu1 %3066 }
 0x4d0   :  { %3105 = vst.msk [vmem:[#allocation4 + $0x6c] sm:$0xf] %vm388_vm5, %v3067_v28  ;;  %v3181_v24 = vpop.permute.xlu2 %3180 }
 0x4d1   :  { %v3179_v17 = vpop.permute.xlu0 %3178  ;;  %v4809_v37 = vld [vmem:[#allocation4 + $0x60] sm:$0xf] }
 0x4d2   :  { %3217 = vst.msk [vmem:[#allocation4 + $0x6c] sm:$0xf] %vm501_vm6, %v3179_v17 }
 0x4d3   :  { %3329 = vst.msk [vmem:[#allocation4 + $0x6c] sm:$0xf] %vm614_vm7, %v3291_v5 }
 0x4d7   :  { %v3673_v32 = vpop.permute.xlu1 %3672 }
 0x4d8   :  { %v3295_v38 = vpop.permute.xlu2 %3294 }
 0x4d9   :  { %v3449_v33 = vpop.permute.xlu0 %3448 }
 0x4da   :  { %3488 = vst.msk [vmem:[#allocation4 + $0x64] sm:$0xf] %vm388_vm5, %v3449_v33  ;;  %v5070_v31 = vld [vmem:[#allocation4 + $0x68] sm:$0xf0]  ;;  %v4240_v33 = vpop.f32.mrf.mxu1 }
 0x4db   :  { %3600 = vst.msk [vmem:[#allocation4 + $0x64] sm:$0xf] %vm501_vm6, %v3561_v19  ;;  %v4810_v52 = vor.u32 %v5070_v31, %v4809_v37 }
 0x4dc   :  { %3712 = vst.msk [vmem:[#allocation4 + $0x64] sm:$0xf] %vm614_vm7, %v3673_v32 }
 0x4dd   :  { %4154 = vmatmul.bf16.gmra.mxu3 %v4810_v52 }
 0x4df   :  { %v3451_v39 = vpop.permute.xlu1 %3450 }
 0x4e0   :  { %3489 = vst.msk [vmem:[#allocation4 + $0x70] sm:$0xf] %vm388_vm5, %v3451_v39  ;;  %v3565_v40 = vpop.permute.xlu2 %3564 }
 0x4e1   :  { %v3563_v60 = vpop.permute.xlu0 %3562 }
 0x4e2   :  { %3601 = vst.msk [vmem:[#allocation4 + $0x70] sm:$0xf] %vm501_vm6, %v3563_v60  ;;  %v4853_v60 = vld [vmem:[#allocation4 + $0xb0] sm:$0xf] }
 0x4e3   :  { %3713 = vst.msk [vmem:[#allocation4 + $0x70] sm:$0xf] %vm614_vm7, %v3675_v18  ;;  %v5069_v34 = vld [vmem:[#allocation4 + $0x64] sm:$0xf] }
 0x4e6   :  { %v4135_v44 = vpop.f32.mrf.mxu3 }
 0x4e7   :  { %v3293_v41 = vpop.permute.xlu1 %3292  ;;  %v4136_v48 = vadd.f32 %v6276_v25, %v4135_v44 }
 0x4e8   :  { %v3679_v51 = vpop.permute.xlu2 %3678 }
 0x4e9   :  { %v3069_v0 = vpop.permute.xlu0 %3068 }
 0x4ea   :  { %3106 = vst.msk [vmem:[#allocation4 + $0x78] sm:$0xf] %vm388_vm5, %v3069_v0  ;;  %v4811_v8 = vld [vmem:[#allocation4 + $0x6c] sm:$0xf0] }
 0x4eb   :  { %3218 = vst.msk [vmem:[#allocation4 + $0x78] sm:$0xf] %vm501_vm6, %v3181_v24  ;;  %v4814_v61 = vor.u32 %v5069_v34, %v4811_v8 }
 0x4ec   :  { %3330 = vst.msk [vmem:[#allocation4 + $0x78] sm:$0xf] %vm614_vm7, %v3293_v41  ;;  %v5080_v41 = vld [vmem:[#allocation4 + $0xb8] sm:$0xf0] }
 0x4ed   :  { %4203 = vmatmul.bf16.gmra.mxu0 %v4814_v61  ;;  %v4854_v0 = vor.u32 %v5080_v41, %v4853_v60 }
 0x4ee   :  { %v4137_v54 = vpop.f32.mrf.mxu3 }
 0x4ef   :  { %v3071_v49 = vpop.permute.xlu1 %3070  ;;  %v4138_v56 = vadd.f32 %v6276_v25, %v4137_v54  ;;  %4267 = vmatmul.bf16.gmra.mxu1 %v4854_v0 }
 0x4f0   :  { %3107 = vst.msk [vmem:[#allocation4 + $0x84] sm:$0xf] %vm388_vm5, %v3071_v49  ;;  %v3185_v62 = vpop.permute.xlu2 %3184 }
 0x4f1   :  { %v3183_v50 = vpop.permute.xlu0 %3182  ;;  %v4184_v46 = vpop.f32.mrf.mxu0 }
 0x4f2   :  { %3219 = vst.msk [vmem:[#allocation4 + $0x84] sm:$0xf] %vm501_vm6, %v3183_v50  ;;  %v4185_v26 = vadd.f32 %v4184_v46, %v4136_v48  ;;  %v4243_v50 = vpop.f32.mrf.mxu1 }
 0x4f3   :  { %3331 = vst.msk [vmem:[#allocation4 + $0x84] sm:$0xf] %vm614_vm7, %v3295_v38  ;;  %v4821_v3 = vld [vmem:[#allocation4 + $0x78] sm:$0xf] }
 0x4f4   :  { %v4234_v2 = vadd.f32 %v4233_v53, %v4185_v26 }
 0x4f6   :  { %v4273_v55 = vmax.f32 %v4234_v2, 0.0 }
 0x4f7   :  { %v3677_v57 = vpop.permute.xlu1 %3676 }
 0x4f8   :  { %4289 = vst [vmem:[#allocation8] sm:$0xff] %v4273_v55  ;;  %v3299_v20 = vpop.permute.xlu2 %3298 }
 0x4f9   :  { %v3453_v58 = vpop.permute.xlu0 %3452  ;;  %v4186_v63 = vpop.f32.mrf.mxu0 }
 0x4fa   :  { %3490 = vst.msk [vmem:[#allocation4 + $0x7c] sm:$0xf] %vm388_vm5, %v3453_v58  ;;  %v4187_v1 = vadd.f32 %v4186_v63, %v4138_v56  ;;  %v5073_v45 = vld [vmem:[#allocation4 + $0x80] sm:$0xf0] }
 0x4fb   :  { %3602 = vst.msk [vmem:[#allocation4 + $0x7c] sm:$0xf] %vm501_vm6, %v3565_v40  ;;  %v4822_v4 = vor.u32 %v5073_v45, %v4821_v3 }
 0x4fc   :  { %3714 = vst.msk [vmem:[#allocation4 + $0x7c] sm:$0xf] %vm614_vm7, %v3677_v57  ;;  %v4236_v30 = vadd.f32 %v4235_v42, %v4187_v1 }
 0x4fd   :  { %4159 = vmatmul.bf16.gmra.mxu3 %v4822_v4 }
 0x4fe   :  { %v4274_v5 = vmax.f32 %v4236_v30, 0.0 }
 0x4ff   :  { %v3455_v6 = vpop.permute.xlu1 %3454 }
 0x500   :  { %4290 = vst [vmem:[#allocation8 + $0x8] sm:$0xff] %v4274_v5  ;;  %v3569_v35 = vpop.permute.xlu2 %3568 }
 0x501   :  { %3491 = vst.msk [vmem:[#allocation4 + $0x88] sm:$0xf] %vm388_vm5, %v3455_v6  ;;  %v3567_v7 = vpop.permute.xlu0 %3566 }
 0x502   :  { %3603 = vst.msk [vmem:[#allocation4 + $0x88] sm:$0xf] %vm501_vm6, %v3567_v7 }
 0x503   :  { %3715 = vst.msk [vmem:[#allocation4 + $0x88] sm:$0xf] %vm614_vm7, %v3679_v51  ;;  %v5072_v12 = vld [vmem:[#allocation4 + $0x7c] sm:$0xf] }
 0x506   :  { %v4140_v19 = vpop.f32.mrf.mxu3 }
 0x507   :  { %v3297_v10 = vpop.permute.xlu1 %3296  ;;  %v4141_v36 = vadd.f32 %v6276_v25, %v4140_v19 }
 0x508   :  { %v3683_v28 = vpop.permute.xlu2 %3682 }
 0x509   :  { %v3073_v11 = vpop.permute.xlu0 %3072 }
 0x50a   :  { %3108 = vst.msk [vmem:[#allocation4 + $0x90] sm:$0xf] %vm388_vm5, %v3073_v11  ;;  %v4823_v13 = vld [vmem:[#allocation4 + $0x84] sm:$0xf0] }
 0x50b   :  { %3220 = vst.msk [vmem:[#allocation4 + $0x90] sm:$0xf] %vm501_vm6, %v3185_v62  ;;  %v4826_v14 = vor.u32 %v5072_v12, %v4823_v13  ;;  %v4245_v62 = vpop.f32.mrf.mxu1 }
 0x50c   :  { %3332 = vst.msk [vmem:[#allocation4 + $0x90] sm:$0xf] %vm614_vm7, %v3297_v10 }
 0x50d   :  { %4208 = vmatmul.bf16.gmra.mxu0 %v4826_v14 }
 0x50e   :  { %v4142_v18 = vpop.f32.mrf.mxu3 }
 0x50f   :  { %v3075_v15 = vpop.permute.xlu1 %3074  ;;  %v4143_v22 = vadd.f32 %v6276_v25, %v4142_v18 }
 0x510   :  { %3109 = vst.msk [vmem:[#allocation4 + $0x9c] sm:$0xf] %vm388_vm5, %v3075_v15  ;;  %v3189_v40 = vpop.permute.xlu2 %3188 }
 0x511   :  { %v3187_v29 = vpop.permute.xlu0 %3186  ;;  %v4189_v16 = vpop.f32.mrf.mxu0 }
 0x512   :  { %3221 = vst.msk [vmem:[#allocation4 + $0x9c] sm:$0xf] %vm501_vm6, %v3187_v29  ;;  %v4190_v43 = vadd.f32 %v4189_v16, %v4141_v36 }
 0x513   :  { %3333 = vst.msk [vmem:[#allocation4 + $0x9c] sm:$0xf] %vm614_vm7, %v3299_v20  ;;  %v4833_v24 = vld [vmem:[#allocation4 + $0x90] sm:$0xf]  ;;  %v4248_v13 = vpop.f32.mrf.mxu1 }
 0x514   :  { %v4239_v59 = vadd.f32 %v4238_v21, %v4190_v43 }
 0x516   :  { %v4275_v47 = vmax.f32 %v4239_v59, 0.0 }
 0x517   :  { %v3681_v23 = vpop.permute.xlu1 %3680 }
 0x518   :  { %4291 = vst [vmem:[#allocation8 + $0x10] sm:$0xff] %v4275_v47  ;;  %v3303_v49 = vpop.permute.xlu2 %3302 }
 0x519   :  { %v3457_v9 = vpop.permute.xlu0 %3456  ;;  %v4191_v27 = vpop.f32.mrf.mxu0 }
 0x51a   :  { %3492 = vst.msk [vmem:[#allocation4 + $0x94] sm:$0xf] %vm388_vm5, %v3457_v9  ;;  %v4192_v17 = vadd.f32 %v4191_v27, %v4143_v22  ;;  %v5076_v32 = vld [vmem:[#allocation4 + $0x98] sm:$0xf0] }
 0x51b   :  { %3604 = vst.msk [vmem:[#allocation4 + $0x94] sm:$0xf] %vm501_vm6, %v3569_v35  ;;  %v4834_v37 = vor.u32 %v5076_v32, %v4833_v24  ;;  %v4250_v47 = vpop.f32.mrf.mxu1 }
 0x51c   :  { %3716 = vst.msk [vmem:[#allocation4 + $0x94] sm:$0xf] %vm614_vm7, %v3681_v23  ;;  %v4241_v31 = vadd.f32 %v4240_v33, %v4192_v17 }
 0x51d   :  { %4164 = vmatmul.bf16.gmra.mxu3 %v4834_v37 }
 0x51e   :  { %v4276_v52 = vmax.f32 %v4241_v31, 0.0 }
 0x51f   :  { %v3459_v38 = vpop.permute.xlu1 %3458 }
 0x520   :  { %4292 = vst [vmem:[#allocation8 + $0x18] sm:$0xff] %v4276_v52  ;;  %v3573_v58 = vpop.permute.xlu2 %3572 }
 0x521   :  { %3493 = vst.msk [vmem:[#allocation4 + $0xa0] sm:$0xf] %vm388_vm5, %v3459_v38  ;;  %v3571_v39 = vpop.permute.xlu0 %3570 }
 0x522   :  { %3605 = vst.msk [vmem:[#allocation4 + $0xa0] sm:$0xf] %vm501_vm6, %v3571_v39 }
 0x523   :  { %3717 = vst.msk [vmem:[#allocation4 + $0xa0] sm:$0xf] %vm614_vm7, %v3683_v28  ;;  %v5075_v44 = vld [vmem:[#allocation4 + $0x94] sm:$0xf]  ;;  %v4253_v28 = vpop.f32.mrf.mxu1 }
 0x527   :  { %v3079_v34 = vpop.permute.xlu1 %3078  ;;  %v4145_v53 = vpop.f32.mrf.mxu3 }
 0x528   :  { %3111 = vst.msk [vmem:[#allocation4 + $0xb4] sm:$0xf] %vm388_vm5, %v3079_v34  ;;  %v4146_v46 = vadd.f32 %v6276_v25, %v4145_v53  ;;  %v3687_v20 = vpop.permute.xlu2 %3686 }
 0x529   :  { %v3077_v8 = vpop.permute.xlu0 %3076 }
 0x52a   :  { %3110 = vst.msk [vmem:[#allocation4 + $0xa8] sm:$0xf] %vm388_vm5, %v3077_v8  ;;  %v4835_v61 = vld [vmem:[#allocation4 + $0x9c] sm:$0xf0] }
 0x52b   :  { %3222 = vst.msk [vmem:[#allocation4 + $0xa8] sm:$0xf] %vm501_vm6, %v3189_v40  ;;  %v4838_v48 = vor.u32 %v5075_v44, %v4835_v61  ;;  %v4255_v39 = vpop.f32.mrf.mxu1 }
 0x52d   :  { %4213 = vmatmul.bf16.gmra.mxu0 %v4838_v48 }
 0x52f   :  { %v3301_v51 = vpop.permute.xlu1 %3300  ;;  %v4147_v56 = vpop.f32.mrf.mxu3 }
 0x530   :  { %3334 = vst.msk [vmem:[#allocation4 + $0xa8] sm:$0xf] %vm614_vm7, %v3301_v51  ;;  %v4194_v2 = vpop.f32.mrf.mxu0  ;;  %v4148_v63 = vadd.f32 %v6276_v25, %v4147_v56 }
 0x531   :  { %v3191_v26 = vpop.permute.xlu0 %3190  ;;  %v4195_v54 = vadd.f32 %v4194_v2, %v4146_v46 }
 0x532   :  { %3223 = vst.msk [vmem:[#allocation4 + $0xb4] sm:$0xf] %vm501_vm6, %v3191_v26 }
 0x533   :  { %3335 = vst.msk [vmem:[#allocation4 + $0xb4] sm:$0xf] %vm614_vm7, %v3303_v49  ;;  %v4244_v55 = vadd.f32 %v4243_v50, %v4195_v54  ;;  %v4258_v34 = vpop.f32.mrf.mxu1 }
 0x535   :  { %v4277_v57 = vmax.f32 %v4244_v55, 0.0 }
 0x537   :  { %4293 = vst [vmem:[#allocation8 + $0x20] sm:$0xff] %v4277_v57  ;;  %v4845_v1 = vld [vmem:[#allocation4 + $0xa8] sm:$0xf]  ;;  %v3685_v30 = vpop.permute.xlu1 %3684 }
 0x538   :  { %v4196_v45 = vpop.f32.mrf.mxu0 }
 0x539   :  { %v3461_v3 = vpop.permute.xlu0 %3460  ;;  %v4197_v42 = vadd.f32 %v4196_v45, %v4148_v63 }
 0x53a   :  { %3494 = vst.msk [vmem:[#allocation4 + $0xac] sm:$0xf] %vm388_vm5, %v3461_v3  ;;  %v5079_v4 = vld [vmem:[#allocation4 + $0xb0] sm:$0xf0] }
 0x53b   :  { %3606 = vst.msk [vmem:[#allocation4 + $0xac] sm:$0xf] %vm501_vm6, %v3573_v58  ;;  %v4846_v5 = vor.u32 %v5079_v4, %v4845_v1  ;;  %v4246_v6 = vadd.f32 %v4245_v62, %v4197_v42  ;;  %v4260_v51 = vpop.f32.mrf.mxu1 }
 0x53c   :  { %3718 = vst.msk [vmem:[#allocation4 + $0xac] sm:$0xf] %vm614_vm7, %v3685_v30 }
 0x53d   :  { %4169 = vmatmul.bf16.gmra.mxu3 %v4846_v5  ;;  %v4278_v7 = vmax.f32 %v4246_v6, 0.0 }
 0x53f   :  { %4294 = vst [vmem:[#allocation8 + $0x28] sm:$0xff] %v4278_v7 }
 0x541   :  { %v3575_v10 = vpop.permute.xlu0 %3574 }
 0x542   :  { %3607 = vst.msk [vmem:[#allocation4 + $0xb8] sm:$0xf] %vm501_vm6, %v3575_v10 }
 0x543   :  { %3719 = vst.msk [vmem:[#allocation4 + $0xb8] sm:$0xf] %vm614_vm7, %v3687_v20  ;;  %v5078_v14 = vld [vmem:[#allocation4 + $0xac] sm:$0xf]  ;;  %v4263_v56 = vpop.f32.mrf.mxu1 }
 0x546   :  { %v4150_v11 = vpop.f32.mrf.mxu3 }
 0x547   :  { %v4151_v12 = vadd.f32 %v6276_v25, %v4150_v11 }
 0x549   :  { %v4199_v19 = vpop.f32.mrf.mxu0 }
 0x54a   :  { %v4847_v21 = vld [vmem:[#allocation4 + $0xb4] sm:$0xf0]  ;;  %v4200_v35 = vadd.f32 %v4199_v19, %v4151_v12 }
 0x54b   :  { %v4850_v36 = vor.u32 %v5078_v14, %v4847_v21  ;;  %v4265_v62 = vpop.f32.mrf.mxu1 }
 0x54c   :  { %v4249_v15 = vadd.f32 %v4248_v13, %v4200_v35 }
 0x54d   :  { %4218 = vmatmul.bf16.gmra.mxu0 %v4850_v36 }
 0x54e   :  { %v4279_v29 = vmax.f32 %v4249_v15, 0.0  ;;  %v4152_v16 = vpop.f32.mrf.mxu3 }
 0x54f   :  { %v4153_v43 = vadd.f32 %v6276_v25, %v4152_v16 }
 0x550   :  { %4295 = vst [vmem:[#allocation8 + $0x30] sm:$0xff] %v4279_v29 }
 0x551   :  { %v4201_v59 = vpop.f32.mrf.mxu0 }
 0x552   :  { %v4202_v18 = vadd.f32 %v4201_v59, %v4153_v43 }
 0x554   :  { %v4251_v22 = vadd.f32 %v4250_v47, %v4202_v18 }
 0x556   :  { %v4280_v23 = vmax.f32 %v4251_v22, 0.0 }
 0x558   :  { %4296 = vst [vmem:[#allocation8 + $0x38] sm:$0xff] %v4280_v23 }
 0x560   :  { %v4155_v9 = vpop.f32.mrf.mxu3 }
 0x561   :  { %v4156_v27 = vadd.f32 %v6276_v25, %v4155_v9 }
 0x568   :  { %v4157_v33 = vpop.f32.mrf.mxu3 }
 0x569   :  { %v4158_v31 = vadd.f32 %v6276_v25, %v4157_v33 }
 0x56a   :  { %v4204_v17 = vpop.f32.mrf.mxu0 }
 0x56b   :  { %v4205_v24 = vadd.f32 %v4204_v17, %v4156_v27 }
 0x56c   :  { %v4268_v20 = vpop.f32.mrf.mxu1 }
 0x56d   :  { %v4254_v32 = vadd.f32 %v4253_v28, %v4205_v24 }
 0x56f   :  { %v4281_v37 = vmax.f32 %v4254_v32, 0.0 }
 0x571   :  { %4297 = vst [vmem:[#allocation8 + $0x40] sm:$0xff] %v4281_v37 }
 0x572   :  { %v4206_v52 = vpop.f32.mrf.mxu0 }
 0x573   :  { %v4207_v38 = vadd.f32 %v4206_v52, %v4158_v31 }
 0x574   :  { %v4270_v36 = vpop.f32.mrf.mxu1 }
 0x575   :  { %v4256_v60 = vadd.f32 %v4255_v39, %v4207_v38 }
 0x577   :  { %v4282_v40 = vmax.f32 %v4256_v60, 0.0 }
 0x579   :  { %4298 = vst [vmem:[#allocation8 + $0x48] sm:$0xff] %v4282_v40 }
 0x580   :  { %v4160_v41 = vpop.f32.mrf.mxu3 }
 0x581   :  { %v4161_v0 = vadd.f32 %v6276_v25, %v4160_v41 }
 0x588   :  { %v4162_v53 = vpop.f32.mrf.mxu3 }
 0x589   :  { %v4163_v49 = vadd.f32 %v6276_v25, %v4162_v53 }
 0x58a   :  { %v4209_v8 = vpop.f32.mrf.mxu0 }
 0x58b   :  { %v4210_v44 = vadd.f32 %v4209_v8, %v4161_v0 }
 0x58d   :  { %v4259_v61 = vadd.f32 %v4258_v34, %v4210_v44 }
 0x58f   :  { %v4283_v48 = vmax.f32 %v4259_v61, 0.0 }
 0x591   :  { %4299 = vst [vmem:[#allocation8 + $0x50] sm:$0xff] %v4283_v48 }
 0x592   :  { %v4211_v50 = vpop.f32.mrf.mxu0 }
 0x593   :  { %v4212_v46 = vadd.f32 %v4211_v50, %v4163_v49 }
 0x595   :  { %v4261_v26 = vadd.f32 %v4260_v51, %v4212_v46 }
 0x597   :  { %v4284_v2 = vmax.f32 %v4261_v26, 0.0 }
 0x599   :  { %4300 = vst [vmem:[#allocation8 + $0x58] sm:$0xff] %v4284_v2 }
 0x5a0   :  { %v4165_v54 = vpop.f32.mrf.mxu3 }
 0x5a1   :  { %v4166_v55 = vadd.f32 %v6276_v25, %v4165_v54 }
 0x5a8   :  { %v4167_v1 = vpop.f32.mrf.mxu3 }
 0x5a9   :  { %v4168_v45 = vadd.f32 %v6276_v25, %v4167_v1 }
 0x5aa   :  { %v4214_v57 = vpop.f32.mrf.mxu0 }
 0x5ab   :  { %v4215_v58 = vadd.f32 %v4214_v57, %v4166_v55 }
 0x5ad   :  { %v4264_v63 = vadd.f32 %v4263_v56, %v4215_v58 }
 0x5af   :  { %v4285_v3 = vmax.f32 %v4264_v63, 0.0 }
 0x5b1   :  { %4301 = vst [vmem:[#allocation8 + $0x60] sm:$0xff] %v4285_v3 }
 0x5b2   :  { %v4216_v42 = vpop.f32.mrf.mxu0 }
 0x5b3   :  { %v4217_v4 = vadd.f32 %v4216_v42, %v4168_v45 }
 0x5b5   :  { %v4266_v30 = vadd.f32 %v4265_v62, %v4217_v4 }
 0x5b7   :  { %v4286_v5 = vmax.f32 %v4266_v30, 0.0 }
 0x5b9   :  { %4302 = vst [vmem:[#allocation8 + $0x68] sm:$0xff] %v4286_v5 }
 0x5c0   :  { %v4170_v6 = vpop.f32.mrf.mxu3 }
 0x5c1   :  { %v4171_v7 = vadd.f32 %v6276_v25, %v4170_v6 }
 0x5c8   :  { %v4172_v13 = vpop.f32.mrf.mxu3 }
 0x5c9   :  { %v4173_v14 = vadd.f32 %v6276_v25, %v4172_v13 }
 0x5ca   :  { %v4219_v10 = vpop.f32.mrf.mxu0 }
 0x5cb   :  { %v4220_v11 = vadd.f32 %v4219_v10, %v4171_v7 }
 0x5cd   :  { %v4269_v12 = vadd.f32 %v4268_v20, %v4220_v11 }
 0x5cf   :  { %v4287_v19 = vmax.f32 %v4269_v12, 0.0 }
 0x5d1   :  { %4303 = vst [vmem:[#allocation8 + $0x70] sm:$0xff] %v4287_v19 }
 0x5d2   :  { %v4221_v21 = vpop.f32.mrf.mxu0 }
 0x5d3   :  { %v4222_v35 = vadd.f32 %v4221_v21, %v4173_v14 }
 0x5d5   :  { %v4271_v15 = vadd.f32 %v4270_v36, %v4222_v35 }
 0x5d7   :  { %v4288_v29 = vmax.f32 %v4271_v15, 0.0 }
 0x5d9   :  { %4304 = vst [vmem:[#allocation8 + $0x78] sm:$0xff] %v4288_v29 }
 0x5da   :  { %4317 = dma.vmem_to_hbm [thread:$0]  %s4310_s26, 2048, %s4312_s29, [#allocation7], %s5197_s30, %s5197_s30, %s5198_s5  }
 0x5db   :  { %5188 = dma.done.wait [#allocation7], 2048  }
 0x5dc   :  { %5189 = vsyncadd [#allocation7], 4294965248 }
 0x5dd   :  { %4322 = vsyncpa [#allocation6], 1 }
 0x5de   :  { %4323 = vsyncpa [#allocation7], 1 }

</bundles_post_ra>
